<compile_context>
chip_gen: v7x
topology: tpu7x:2x2x1
jax: 0.10.0
libtpu: 0.0.40
codegen_flags: <defaults>
</compile_context>

<pallas_src>
import math
import functools

import jax
import jax.numpy as jnp
from jax.experimental import pallas as pl
from jax.experimental.pallas import tpu as pltpu

# ---------------- small config (same structure as SmolLM2Config) ----------------
N_EMBD = 256
N_HIDDEN = 512
N_HEAD = 4
N_KV_HEADS = 2
HEAD_DIM = N_EMBD // N_HEAD            # 64
GROUP_SIZE = N_HEAD // N_KV_HEADS      # 2
BLOCK_SIZE = 64                        # rope table length (= max seq here)
NORM_EPS = 1e-5
ROPE_THETA = 100000
DTYPE = jnp.bfloat16

QKV_DIM = N_EMBD + 2 * N_KV_HEADS * HEAD_DIM   # 512 = q(256) | k(128) | v(128)
N_ROPE_HEADS = N_HEAD + N_KV_HEADS             # heads that get RoPE (q + k) = 6
ROPE_DIM = N_ROPE_HEADS * HEAD_DIM              # 384 rope columns (q|k only)


# =====================================================================
# Single fused kernel: RMSNorm1 + QKV + RoPE + causal GQA attention +
#                      o_proj + residual + RMSNorm2 + SwiGLU FFN + residual
# Grid: (B,)  -- one batch per grid step ("parallel" so v7x uses both TCs).
# =====================================================================
def _block_kernel(x_ref, ln1_ref, wqkv_ref, wrot_ref, cos_ref, sin_ref,
                  wo_ref, ln2_ref, wgu_ref, wd_ref, o_ref,
                  *, eps, n_head, n_kv, head_dim, n_hidden, scale):
    x = x_ref[0].astype(jnp.float32)                         # (T, C) f32
    T = x.shape[0]
    group = n_head // n_kv

    # ---- RMSNorm 1 ----
    g1 = ln1_ref[...].astype(jnp.float32)                    # (1, C)
    ms1 = jnp.mean(x * x, axis=-1, keepdims=True)
    h1 = (x * jax.lax.rsqrt(ms1 + eps) * g1).astype(wqkv_ref.dtype)   # (T, C) bf16

    # ---- fused QKV projection + RoPE ----
    # qkv = [q | k | v]; rot = rotate-half(q|k) with sign folded into the
    # (trimmed, 384-col) weight.  RoPE = qkv*cos + rot*sin on the q|k columns;
    # v columns pass through untouched.
    qkv = jnp.dot(h1, wqkv_ref[...], preferred_element_type=jnp.float32)  # (T, 512)
    rot = jnp.dot(h1, wrot_ref[...], preferred_element_type=jnp.float32)  # (T, 384)
    roped = qkv[:, :ROPE_DIM] * cos_ref[...] + rot * sin_ref[...]         # (T, 384) f32
    qk = roped.astype(x_ref.dtype)                                        # bf16
    v_all = qkv[:, ROPE_DIM:].astype(x_ref.dtype)                         # (T, 128) bf16

    # ---- causal GQA attention (group heads stacked into one MXU call) ----
    k_off = n_head * head_dim                                 # 256 within qk
    # causal mask for the stacked (group*T, T) score matrix
    row = jax.lax.broadcasted_iota(jnp.int32, (group * T, T), 0) % T
    col = jax.lax.broadcasted_iota(jnp.int32, (group * T, T), 1)
    causal = col <= row

    out_slabs = []
    for kv in range(n_kv):
        k = qk[:, k_off + kv * head_dim: k_off + (kv + 1) * head_dim]     # (T, 64)
        v = v_all[:, kv * head_dim: (kv + 1) * head_dim]                  # (T, 64)
        # stack the `group` q heads that share this kv head -> (group*T, 64)
        q_stack = jnp.concatenate(
            [qk[:, (kv * group + g) * head_dim: (kv * group + g + 1) * head_dim]
             for g in range(group)], axis=0)
        s = jax.lax.dot_general(q_stack, k, (((1,), (1,)), ((), ())),
                                preferred_element_type=jnp.float32) * scale
        s = jnp.where(causal, s, -jnp.inf)
        s = s - jnp.max(s, axis=-1, keepdims=True)
        p = jnp.exp(s)
        p = p / jnp.sum(p, axis=-1, keepdims=True)            # exact softmax
        o = jnp.dot(p.astype(v.dtype), v,
                    preferred_element_type=jnp.float32)       # (group*T, 64)
        # un-stack heads -> one 128-lane-aligned slab (T, group*head_dim)
        out_slabs.append(jnp.concatenate(
            [o[g * T:(g + 1) * T] for g in range(group)], axis=-1))
    attn = jnp.concatenate(out_slabs, axis=-1).astype(x_ref.dtype)        # (T, C)

    # ---- o_proj + residual 1 ----
    y = x + jnp.dot(attn, wo_ref[...], preferred_element_type=jnp.float32)  # (T, C) f32

    # ---- RMSNorm 2 + SwiGLU FFN + residual 2 ----
    g2 = ln2_ref[...].astype(jnp.float32)
    ms2 = jnp.mean(y * y, axis=-1, keepdims=True)
    h2 = (y * jax.lax.rsqrt(ms2 + eps) * g2).astype(wgu_ref.dtype)          # bf16
    gu = jnp.dot(h2, wgu_ref[...], preferred_element_type=jnp.float32)      # (T, 2H)
    gate = gu[:, :n_hidden]
    up = gu[:, n_hidden:]
    act = (gate * jax.nn.sigmoid(gate) * up).astype(wd_ref.dtype)           # SiLU*up
    d = jnp.dot(act, wd_ref[...], preferred_element_type=jnp.float32)       # (T, C)

    o_ref[0] = (y + d).astype(o_ref.dtype)


# ---------------- host-side precompute (matches pre_compute_rope) ----------------
def precompute_rope_tables():
    positions = jnp.arange(BLOCK_SIZE, dtype=jnp.float32)
    thetas = 1.0 / (ROPE_THETA ** (jnp.arange(0, HEAD_DIM, 2, dtype=jnp.float32)
                                   / HEAD_DIM))
    pos_thetas = jnp.outer(positions, thetas)
    pos_thetas = jnp.concatenate([pos_thetas, pos_thetas], axis=-1)   # (BS, HD)
    cos = jnp.cos(pos_thetas)
    sin = jnp.sin(pos_thetas)
    # tile across the 6 rope (q + k) heads only; keep float32 (VMEM-resident,
    # removes rotation-angle quantization)
    cos_rope = jnp.tile(cos, (1, N_ROPE_HEADS))                        # (BS, 384)
    sin_rope = jnp.tile(sin, (1, N_ROPE_HEADS))
    return cos_rope.astype(jnp.float32), sin_rope.astype(jnp.float32)


def fold_rope_rotation(wqk_t):
    """Per-head rotate-half (cat(-x2, x1)) folded into the Q|K weight columns.

    Input is the (C, 384) q|k part of the fused QKV weight.  For every rope
    head, column block [w1 | w2] -> [-w2 | w1].  Column permutation + negation
    of bf16 weights is exact.
    """
    half = HEAD_DIM // 2
    cols = []
    for h in range(N_ROPE_HEADS):
        blk = wqk_t[:, h * HEAD_DIM:(h + 1) * HEAD_DIM]
        w1, w2 = blk[:, :half], blk[:, half:]
        cols.append(jnp.concatenate([-w2, w1], axis=-1))
    return jnp.concatenate(cols, axis=-1)                              # (C, 384)


# ---------------- Block forward (single fused pallas_call) ----------------
def block_forward(x, params):
    B, T, C = x.shape
    cos = params["cos_rope"][:T]                                       # (T, 384) f32
    sin = params["sin_rope"][:T]

    out = pl.pallas_call(
        functools.partial(_block_kernel, eps=NORM_EPS, n_head=N_HEAD,
                          n_kv=N_KV_HEADS, head_dim=HEAD_DIM,
                          n_hidden=N_HIDDEN, scale=1.0 / math.sqrt(HEAD_DIM)),
        out_shape=jax.ShapeDtypeStruct((B, T, C), x.dtype),
        grid=(B,),
        in_specs=[
            pl.BlockSpec((1, T, C), lambda b: (b, 0, 0)),              # x
            pl.BlockSpec((1, C), lambda b: (0, 0)),                    # ln1 weight
            pl.BlockSpec((C, QKV_DIM), lambda b: (0, 0)),              # fused QKV
            pl.BlockSpec((C, ROPE_DIM), lambda b: (0, 0)),             # rotated Q|K
            pl.BlockSpec((T, ROPE_DIM), lambda b: (0, 0)),             # cos (f32)
            pl.BlockSpec((T, ROPE_DIM), lambda b: (0, 0)),             # sin (f32)
            pl.BlockSpec((C, C), lambda b: (0, 0)),                    # o_proj
            pl.BlockSpec((1, C), lambda b: (0, 0)),                    # ln2 weight
            pl.BlockSpec((C, 2 * N_HIDDEN), lambda b: (0, 0)),         # gate|up fused
            pl.BlockSpec((N_HIDDEN, C), lambda b: (0, 0)),             # down
        ],
        out_specs=pl.BlockSpec((1, T, C), lambda b: (b, 0, 0)),
        compiler_params=pltpu.CompilerParams(
            dimension_semantics=("parallel",)),                        # 2 TCs on v7x
    )(x, params["ln1_w"], params["wqkv_t"], params["wqk_rot_t"], cos, sin,
      params["wo_t"], params["ln2_w"], params["wgu_t"], params["wd_t"])
    return out


# ---------------- deterministic parameter init ----------------
def init_params(key):
    ks = jax.random.split(key, 7)

    def w(k, shape):
        return (0.02 * jax.random.normal(k, shape, dtype=jnp.float32)).astype(DTYPE)

    # weights stored pre-transposed: (in_dim, out_dim) so y = x @ w_t
    wq_t = w(ks[0], (N_EMBD, N_EMBD))
    wk_t = w(ks[1], (N_EMBD, N_KV_HEADS * HEAD_DIM))
    wv_t = w(ks[2], (N_EMBD, N_KV_HEADS * HEAD_DIM))
    wqkv_t = jnp.concatenate([wq_t, wk_t, wv_t], axis=1)               # (C, 512)
    wg_t = w(ks[4], (N_EMBD, N_HIDDEN))
    wu_t = w(ks[5], (N_EMBD, N_HIDDEN))

    cos_rope, sin_rope = precompute_rope_tables()
    params = {
        "ln1_w": jnp.ones((1, N_EMBD), dtype=DTYPE),
        "ln2_w": jnp.ones((1, N_EMBD), dtype=DTYPE),
        "wqkv_t": wqkv_t,
        "wqk_rot_t": fold_rope_rotation(wqkv_t[:, :ROPE_DIM]),         # (C, 384)
        "wo_t": w(ks[3], (N_EMBD, N_EMBD)),
        "wgu_t": jnp.concatenate([wg_t, wu_t], axis=1),                # (C, 1024)
        "wd_t": w(ks[6], (N_HIDDEN, N_EMBD)),
        "cos_rope": cos_rope,
        "sin_rope": sin_rope,
    }
    return params


if __name__ == "__main__":
    key = jax.random.PRNGKey(0)
    pkey, xkey = jax.random.split(key)
    params = init_params(pkey)

    B, T = 2, 64
    x = (0.1 * jax.random.normal(xkey, (B, T, N_EMBD), dtype=jnp.float32)).astype(DTYPE)

    out = jax.jit(block_forward)(x, params)
    jax.block_until_ready(out)

    assert out.shape == (B, T, N_EMBD), out.shape
    assert out.dtype == DTYPE, out.dtype
    assert bool(jnp.all(jnp.isfinite(out.astype(jnp.float32))))
    print("KERNEL_OK")
</pallas_src>

<mosaic_0001>
module attributes {stable_mosaic.version = 11 : i64} {
  func.func @_block_kernel(%arg0: i32, %arg1: memref<1x64x256xbf16, #tpu.memory_space<vmem>>, %arg2: memref<1x256xbf16, #tpu.memory_space<vmem>>, %arg3: memref<256x512xbf16, #tpu.memory_space<vmem>>, %arg4: memref<256x384xbf16, #tpu.memory_space<vmem>>, %arg5: memref<64x384xf32, #tpu.memory_space<vmem>>, %arg6: memref<64x384xf32, #tpu.memory_space<vmem>>, %arg7: memref<256x256xbf16, #tpu.memory_space<vmem>>, %arg8: memref<1x256xbf16, #tpu.memory_space<vmem>>, %arg9: memref<256x1024xbf16, #tpu.memory_space<vmem>>, %arg10: memref<512x256xbf16, #tpu.memory_space<vmem>>, %arg11: memref<1x64x256xbf16, #tpu.memory_space<vmem>>) attributes {dimension_semantics = [#tpu.dimension_semantics<parallel>], iteration_bounds = array<i64: 2>, scalar_prefetch = 0 : i64, scratch_operands = 0 : i64, tpu.core_type = #tpu.core_type<tc>, window_params = [{transform_indices = @transform_0, window_bounds = array<i64: 1, 64, 256>}, {pipeline_mode = #tpu.pipeline_mode<synchronous>, transform_indices = @transform_1, window_bounds = array<i64: 1, 256>}, {pipeline_mode = #tpu.pipeline_mode<synchronous>, transform_indices = @transform_2, window_bounds = array<i64: 256, 512>}, {pipeline_mode = #tpu.pipeline_mode<synchronous>, transform_indices = @transform_3, window_bounds = array<i64: 256, 384>}, {pipeline_mode = #tpu.pipeline_mode<synchronous>, transform_indices = @transform_4, window_bounds = array<i64: 64, 384>}, {pipeline_mode = #tpu.pipeline_mode<synchronous>, transform_indices = @transform_5, window_bounds = array<i64: 64, 384>}, {pipeline_mode = #tpu.pipeline_mode<synchronous>, transform_indices = @transform_6, window_bounds = array<i64: 256, 256>}, {pipeline_mode = #tpu.pipeline_mode<synchronous>, transform_indices = @transform_7, window_bounds = array<i64: 1, 256>}, {pipeline_mode = #tpu.pipeline_mode<synchronous>, transform_indices = @transform_8, window_bounds = array<i64: 256, 1024>}, {pipeline_mode = #tpu.pipeline_mode<synchronous>, transform_indices = @transform_9, window_bounds = array<i64: 512, 256>}, {transform_indices = @transform_10, window_bounds = array<i64: 1, 64, 256>}]} {
    %c0 = arith.constant 0 : index
    %c0_0 = arith.constant 0 : index
    %c0_1 = arith.constant 0 : index
    %0 = vector.load %arg1[%c0, %c0_0, %c0_1] : memref<1x64x256xbf16, #tpu.memory_space<vmem>>, vector<1x64x256xbf16>
    %1 = vector.shape_cast %0 : vector<1x64x256xbf16> to vector<64x256xbf16>
    %2 = arith.extf %1 : vector<64x256xbf16> to vector<64x256xf32>
    %c0_2 = arith.constant 0 : index
    %c0_3 = arith.constant 0 : index
    %3 = vector.load %arg2[%c0_2, %c0_3] : memref<1x256xbf16, #tpu.memory_space<vmem>>, vector<1x256xbf16>
    %4 = arith.extf %3 : vector<1x256xbf16> to vector<1x256xf32>
    %5 = arith.mulf %2, %2 : vector<64x256xf32>
    %cst = arith.constant dense<0.000000e+00> : vector<64xf32>
    %6 = vector.multi_reduction <add>, %5, %cst [1] : vector<64x256xf32> to vector<64xf32>
    %7 = vector.shape_cast %6 : vector<64xf32> to vector<64x1xf32>
    %cst_4 = arith.constant 2.560000e+02 : f32
    %8 = vector.broadcast %cst_4 : f32 to vector<64x1xf32>
    %9 = arith.divf %7, %8 : vector<64x1xf32>
    %cst_5 = arith.constant 9.99999974E-6 : f32
    %10 = vector.broadcast %cst_5 : f32 to vector<64x1xf32>
    %11 = arith.addf %9, %10 : vector<64x1xf32>
    %12 = math.rsqrt %11 : vector<64x1xf32>
    %13 = vector.broadcast %12 : vector<64x1xf32> to vector<64x256xf32>
    %14 = arith.mulf %2, %13 : vector<64x256xf32>
    %15 = vector.broadcast %4 : vector<1x256xf32> to vector<64x256xf32>
    %16 = arith.mulf %14, %15 : vector<64x256xf32>
    %17 = arith.truncf %16 : vector<64x256xf32> to vector<64x256xbf16>
    %c0_6 = arith.constant 0 : index
    %c0_7 = arith.constant 0 : index
    %18 = vector.load %arg3[%c0_6, %c0_7] : memref<256x512xbf16, #tpu.memory_space<vmem>>, vector<256x512xbf16>
    %cst_8 = arith.constant dense<0.000000e+00> : vector<64x512xf32>
    %19 = tpu.matmul %17, %18, %cst_8 {dimension_numbers = #tpu.dot_dimension_numbers<[1], [0], [0], [1], [0, 0, 1, 1], [], []>} : vector<64x256xbf16>, vector<256x512xbf16>, vector<64x512xf32> -> vector<64x512xf32>
    %c0_9 = arith.constant 0 : index
    %c0_10 = arith.constant 0 : index
    %20 = vector.load %arg4[%c0_9, %c0_10] : memref<256x384xbf16, #tpu.memory_space<vmem>>, vector<256x384xbf16>
    %cst_11 = arith.constant dense<0.000000e+00> : vector<64x384xf32>
    %21 = tpu.matmul %17, %20, %cst_11 {dimension_numbers = #tpu.dot_dimension_numbers<[1], [0], [0], [1], [0, 0, 1, 1], [], []>} : vector<64x256xbf16>, vector<256x384xbf16>, vector<64x384xf32> -> vector<64x384xf32>
    %22 = vector.extract_strided_slice %19 {offsets = [0, 0], sizes = [64, 384], strides = [1, 1]} : vector<64x512xf32> to vector<64x384xf32>
    %c0_12 = arith.constant 0 : index
    %c0_13 = arith.constant 0 : index
    %23 = vector.load %arg5[%c0_12, %c0_13] : memref<64x384xf32, #tpu.memory_space<vmem>>, vector<64x384xf32>
    %24 = arith.mulf %22, %23 : vector<64x384xf32>
    %c0_14 = arith.constant 0 : index
    %c0_15 = arith.constant 0 : index
    %25 = vector.load %arg6[%c0_14, %c0_15] : memref<64x384xf32, #tpu.memory_space<vmem>>, vector<64x384xf32>
    %26 = arith.mulf %21, %25 : vector<64x384xf32>
    %27 = arith.addf %24, %26 : vector<64x384xf32>
    %28 = arith.truncf %27 : vector<64x384xf32> to vector<64x384xbf16>
    %29 = vector.extract_strided_slice %19 {offsets = [0, 384], sizes = [64, 128], strides = [1, 1]} : vector<64x512xf32> to vector<64x128xf32>
    %30 = arith.truncf %29 : vector<64x128xf32> to vector<64x128xbf16>
    %31 = tpu.iota {dimensions = array<i32: 0>} : vector<128x64xi32>
    %c64_i32 = arith.constant 64 : i32
    %c0_i32 = arith.constant 0 : i32
    %32 = arith.cmpi eq, %c64_i32, %c0_i32 : i32
    %c1_i32 = arith.constant 1 : i32
    %33 = arith.select %32, %c1_i32, %c64_i32 : i32
    %34 = vector.broadcast %33 : i32 to vector<128x64xi32>
    %35 = arith.remsi %31, %34 : vector<128x64xi32>
    %c0_i32_16 = arith.constant 0 : i32
    %36 = vector.broadcast %c0_i32_16 : i32 to vector<128x64xi32>
    %37 = arith.cmpi ne, %35, %36 : vector<128x64xi32>
    %c0_i32_17 = arith.constant 0 : i32
    %38 = vector.broadcast %c0_i32_17 : i32 to vector<128x64xi32>
    %39 = arith.cmpi slt, %35, %38 : vector<128x64xi32>
    %c0_i32_18 = arith.constant 0 : i32
    %40 = arith.cmpi slt, %33, %c0_i32_18 : i32
    %41 = vector.broadcast %40 : i1 to vector<128x64xi1>
    %42 = vector.broadcast %41 : vector<128x64xi1> to vector<128x64xi1>
    %43 = arith.xori %39, %42 : vector<128x64xi1>
    %44 = arith.andi %43, %37 : vector<128x64xi1>
    %45 = vector.broadcast %33 : i32 to vector<128x64xi32>
    %46 = arith.addi %35, %45 : vector<128x64xi32>
    %47 = arith.select %44, %46, %35 : vector<128x64xi1>, vector<128x64xi32>
    %48 = tpu.iota {dimensions = array<i32: 1>} : vector<128x64xi32>
    %49 = arith.cmpi sle, %48, %47 : vector<128x64xi32>
    %50 = vector.extract_strided_slice %28 {offsets = [0, 256], sizes = [64, 64], strides = [1, 1]} : vector<64x384xbf16> to vector<64x64xbf16>
    %51 = vector.extract_strided_slice %30 {offsets = [0, 0], sizes = [64, 64], strides = [1, 1]} : vector<64x128xbf16> to vector<64x64xbf16>
    %52 = vector.extract_strided_slice %28 {offsets = [0, 0], sizes = [64, 64], strides = [1, 1]} : vector<64x384xbf16> to vector<64x64xbf16>
    %53 = vector.extract_strided_slice %28 {offsets = [0, 64], sizes = [64, 64], strides = [1, 1]} : vector<64x384xbf16> to vector<64x64xbf16>
    %54 = tpu.concatenate %52, %53 in 0 : vector<64x64xbf16>, vector<64x64xbf16> -> vector<128x64xbf16>
    %cst_19 = arith.constant dense<0.000000e+00> : vector<128x64xf32>
    %55 = tpu.matmul %54, %50, %cst_19 {dimension_numbers = #tpu.dot_dimension_numbers<[1], [1], [0], [0], [0, 0, 1, 0], [], []>} : vector<128x64xbf16>, vector<64x64xbf16>, vector<128x64xf32> -> vector<128x64xf32>
    %cst_20 = arith.constant 1.250000e-01 : f32
    %56 = vector.broadcast %cst_20 : f32 to vector<128x64xf32>
    %57 = arith.mulf %55, %56 : vector<128x64xf32>
    %cst_21 = arith.constant 0xFF800000 : f32
    %58 = vector.broadcast %cst_21 : f32 to vector<128x64xf32>
    %59 = arith.select %49, %57, %58 : vector<128x64xi1>, vector<128x64xf32>
    %cst_22 = arith.constant dense<0xFF800000> : vector<128xf32>
    %60 = vector.multi_reduction <maximumf>, %59, %cst_22 [1] : vector<128x64xf32> to vector<128xf32>
    %61 = vector.shape_cast %60 : vector<128xf32> to vector<128x1xf32>
    %62 = vector.broadcast %61 : vector<128x1xf32> to vector<128x64xf32>
    %63 = arith.subf %59, %62 : vector<128x64xf32>
    %64 = math.exp %63 : vector<128x64xf32>
    %cst_23 = arith.constant dense<0.000000e+00> : vector<128xf32>
    %65 = vector.multi_reduction <add>, %64, %cst_23 [1] : vector<128x64xf32> to vector<128xf32>
    %66 = vector.shape_cast %65 : vector<128xf32> to vector<128x1xf32>
    %67 = vector.broadcast %66 : vector<128x1xf32> to vector<128x64xf32>
    %68 = arith.divf %64, %67 : vector<128x64xf32>
    %69 = arith.truncf %68 : vector<128x64xf32> to vector<128x64xbf16>
    %cst_24 = arith.constant dense<0.000000e+00> : vector<128x64xf32>
    %70 = tpu.matmul %69, %51, %cst_24 {dimension_numbers = #tpu.dot_dimension_numbers<[1], [0], [0], [1], [0, 0, 1, 1], [], []>} : vector<128x64xbf16>, vector<64x64xbf16>, vector<128x64xf32> -> vector<128x64xf32>
    %71 = vector.extract_strided_slice %70 {offsets = [0, 0], sizes = [64, 64], strides = [1, 1]} : vector<128x64xf32> to vector<64x64xf32>
    %72 = vector.extract_strided_slice %70 {offsets = [64, 0], sizes = [64, 64], strides = [1, 1]} : vector<128x64xf32> to vector<64x64xf32>
    %73 = tpu.concatenate %71, %72 in 1 : vector<64x64xf32>, vector<64x64xf32> -> vector<64x128xf32>
    %74 = vector.extract_strided_slice %28 {offsets = [0, 320], sizes = [64, 64], strides = [1, 1]} : vector<64x384xbf16> to vector<64x64xbf16>
    %75 = vector.extract_strided_slice %30 {offsets = [0, 64], sizes = [64, 64], strides = [1, 1]} : vector<64x128xbf16> to vector<64x64xbf16>
    %76 = vector.extract_strided_slice %28 {offsets = [0, 128], sizes = [64, 64], strides = [1, 1]} : vector<64x384xbf16> to vector<64x64xbf16>
    %77 = vector.extract_strided_slice %28 {offsets = [0, 192], sizes = [64, 64], strides = [1, 1]} : vector<64x384xbf16> to vector<64x64xbf16>
    %78 = tpu.concatenate %76, %77 in 0 : vector<64x64xbf16>, vector<64x64xbf16> -> vector<128x64xbf16>
    %cst_25 = arith.constant dense<0.000000e+00> : vector<128x64xf32>
    %79 = tpu.matmul %78, %74, %cst_25 {dimension_numbers = #tpu.dot_dimension_numbers<[1], [1], [0], [0], [0, 0, 1, 0], [], []>} : vector<128x64xbf16>, vector<64x64xbf16>, vector<128x64xf32> -> vector<128x64xf32>
    %cst_26 = arith.constant 1.250000e-01 : f32
    %80 = vector.broadcast %cst_26 : f32 to vector<128x64xf32>
    %81 = arith.mulf %79, %80 : vector<128x64xf32>
    %cst_27 = arith.constant 0xFF800000 : f32
    %82 = vector.broadcast %cst_27 : f32 to vector<128x64xf32>
    %83 = arith.select %49, %81, %82 : vector<128x64xi1>, vector<128x64xf32>
    %cst_28 = arith.constant dense<0xFF800000> : vector<128xf32>
    %84 = vector.multi_reduction <maximumf>, %83, %cst_28 [1] : vector<128x64xf32> to vector<128xf32>
    %85 = vector.shape_cast %84 : vector<128xf32> to vector<128x1xf32>
    %86 = vector.broadcast %85 : vector<128x1xf32> to vector<128x64xf32>
    %87 = arith.subf %83, %86 : vector<128x64xf32>
    %88 = math.exp %87 : vector<128x64xf32>
    %cst_29 = arith.constant dense<0.000000e+00> : vector<128xf32>
    %89 = vector.multi_reduction <add>, %88, %cst_29 [1] : vector<128x64xf32> to vector<128xf32>
    %90 = vector.shape_cast %89 : vector<128xf32> to vector<128x1xf32>
    %91 = vector.broadcast %90 : vector<128x1xf32> to vector<128x64xf32>
    %92 = arith.divf %88, %91 : vector<128x64xf32>
    %93 = arith.truncf %92 : vector<128x64xf32> to vector<128x64xbf16>
    %cst_30 = arith.constant dense<0.000000e+00> : vector<128x64xf32>
    %94 = tpu.matmul %93, %75, %cst_30 {dimension_numbers = #tpu.dot_dimension_numbers<[1], [0], [0], [1], [0, 0, 1, 1], [], []>} : vector<128x64xbf16>, vector<64x64xbf16>, vector<128x64xf32> -> vector<128x64xf32>
    %95 = vector.extract_strided_slice %94 {offsets = [0, 0], sizes = [64, 64], strides = [1, 1]} : vector<128x64xf32> to vector<64x64xf32>
    %96 = vector.extract_strided_slice %94 {offsets = [64, 0], sizes = [64, 64], strides = [1, 1]} : vector<128x64xf32> to vector<64x64xf32>
    %97 = tpu.concatenate %95, %96 in 1 : vector<64x64xf32>, vector<64x64xf32> -> vector<64x128xf32>
    %98 = tpu.concatenate %73, %97 in 1 : vector<64x128xf32>, vector<64x128xf32> -> vector<64x256xf32>
    %99 = arith.truncf %98 : vector<64x256xf32> to vector<64x256xbf16>
    %c0_31 = arith.constant 0 : index
    %c0_32 = arith.constant 0 : index
    %100 = vector.load %arg7[%c0_31, %c0_32] : memref<256x256xbf16, #tpu.memory_space<vmem>>, vector<256x256xbf16>
    %cst_33 = arith.constant dense<0.000000e+00> : vector<64x256xf32>
    %101 = tpu.matmul %99, %100, %cst_33 {dimension_numbers = #tpu.dot_dimension_numbers<[1], [0], [0], [1], [0, 0, 1, 1], [], []>} : vector<64x256xbf16>, vector<256x256xbf16>, vector<64x256xf32> -> vector<64x256xf32>
    %102 = arith.addf %2, %101 : vector<64x256xf32>
    %c0_34 = arith.constant 0 : index
    %c0_35 = arith.constant 0 : index
    %103 = vector.load %arg8[%c0_34, %c0_35] : memref<1x256xbf16, #tpu.memory_space<vmem>>, vector<1x256xbf16>
    %104 = arith.extf %103 : vector<1x256xbf16> to vector<1x256xf32>
    %105 = arith.mulf %102, %102 : vector<64x256xf32>
    %cst_36 = arith.constant dense<0.000000e+00> : vector<64xf32>
    %106 = vector.multi_reduction <add>, %105, %cst_36 [1] : vector<64x256xf32> to vector<64xf32>
    %107 = vector.shape_cast %106 : vector<64xf32> to vector<64x1xf32>
    %cst_37 = arith.constant 2.560000e+02 : f32
    %108 = vector.broadcast %cst_37 : f32 to vector<64x1xf32>
    %109 = arith.divf %107, %108 : vector<64x1xf32>
    %cst_38 = arith.constant 9.99999974E-6 : f32
    %110 = vector.broadcast %cst_38 : f32 to vector<64x1xf32>
    %111 = arith.addf %109, %110 : vector<64x1xf32>
    %112 = math.rsqrt %111 : vector<64x1xf32>
    %113 = vector.broadcast %112 : vector<64x1xf32> to vector<64x256xf32>
    %114 = arith.mulf %102, %113 : vector<64x256xf32>
    %115 = vector.broadcast %104 : vector<1x256xf32> to vector<64x256xf32>
    %116 = arith.mulf %114, %115 : vector<64x256xf32>
    %117 = arith.truncf %116 : vector<64x256xf32> to vector<64x256xbf16>
    %c0_39 = arith.constant 0 : index
    %c0_40 = arith.constant 0 : index
    %118 = vector.load %arg9[%c0_39, %c0_40] : memref<256x1024xbf16, #tpu.memory_space<vmem>>, vector<256x1024xbf16>
    %cst_41 = arith.constant dense<0.000000e+00> : vector<64x1024xf32>
    %119 = tpu.matmul %117, %118, %cst_41 {dimension_numbers = #tpu.dot_dimension_numbers<[1], [0], [0], [1], [0, 0, 1, 1], [], []>} : vector<64x256xbf16>, vector<256x1024xbf16>, vector<64x1024xf32> -> vector<64x1024xf32>
    %120 = vector.extract_strided_slice %119 {offsets = [0, 0], sizes = [64, 512], strides = [1, 1]} : vector<64x1024xf32> to vector<64x512xf32>
    %121 = vector.extract_strided_slice %119 {offsets = [0, 512], sizes = [64, 512], strides = [1, 1]} : vector<64x1024xf32> to vector<64x512xf32>
    %122 = arith.negf %120 : vector<64x512xf32>
    %123 = math.exp %122 : vector<64x512xf32>
    %cst_42 = arith.constant 1.000000e+00 : f32
    %124 = vector.broadcast %cst_42 : f32 to vector<64x512xf32>
    %125 = arith.addf %124, %123 : vector<64x512xf32>
    %126 = arith.divf %124, %125 : vector<64x512xf32>
    %127 = arith.mulf %120, %126 : vector<64x512xf32>
    %128 = arith.mulf %127, %121 : vector<64x512xf32>
    %129 = arith.truncf %128 : vector<64x512xf32> to vector<64x512xbf16>
    %c0_43 = arith.constant 0 : index
    %c0_44 = arith.constant 0 : index
    %130 = vector.load %arg10[%c0_43, %c0_44] : memref<512x256xbf16, #tpu.memory_space<vmem>>, vector<512x256xbf16>
    %cst_45 = arith.constant dense<0.000000e+00> : vector<64x256xf32>
    %131 = tpu.matmul %129, %130, %cst_45 {dimension_numbers = #tpu.dot_dimension_numbers<[1], [0], [0], [1], [0, 0, 1, 1], [], []>} : vector<64x512xbf16>, vector<512x256xbf16>, vector<64x256xf32> -> vector<64x256xf32>
    %132 = arith.addf %102, %131 : vector<64x256xf32>
    %133 = arith.truncf %132 : vector<64x256xf32> to vector<64x256xbf16>
    %c0_46 = arith.constant 0 : index
    %c0_47 = arith.constant 0 : index
    %c0_48 = arith.constant 0 : index
    %134 = vector.load %arg11[%c0_46, %c0_47, %c0_48] : memref<1x64x256xbf16, #tpu.memory_space<vmem>>, vector<1x64x256xbf16>
    %135 = vector.shape_cast %134 : vector<1x64x256xbf16> to vector<64x256xbf16>
    %136 = vector.shape_cast %133 : vector<64x256xbf16> to vector<1x64x256xbf16>
    tpu.vector_store %arg11[%c0_46, %c0_47, %c0_48], %136 {strides = array<i32>} : memref<1x64x256xbf16, #tpu.memory_space<vmem>>, vector<1x64x256xbf16>,
    return
  }
  func.func @transform_0(%arg0: i32) -> (i32, i32, i32) {
    %c0_i32 = arith.constant 0 : i32
    %c0_i32_0 = arith.constant 0 : i32
    %c0_i32_1 = arith.constant 0 : i32
    return %arg0, %c0_i32, %c0_i32_0 : i32, i32, i32
  }
  func.func @transform_1(%arg0: i32) -> (i32, i32) {
    %c0_i32 = arith.constant 0 : i32
    %c0_i32_0 = arith.constant 0 : i32
    %c0_i32_1 = arith.constant 0 : i32
    return %c0_i32, %c0_i32_0 : i32, i32
  }
  func.func @transform_2(%arg0: i32) -> (i32, i32) {
    %c0_i32 = arith.constant 0 : i32
    %c0_i32_0 = arith.constant 0 : i32
    %c0_i32_1 = arith.constant 0 : i32
    return %c0_i32, %c0_i32_0 : i32, i32
  }
  func.func @transform_3(%arg0: i32) -> (i32, i32) {
    %c0_i32 = arith.constant 0 : i32
    %c0_i32_0 = arith.constant 0 : i32
    %c0_i32_1 = arith.constant 0 : i32
    return %c0_i32, %c0_i32_0 : i32, i32
  }
  func.func @transform_4(%arg0: i32) -> (i32, i32) {
    %c0_i32 = arith.constant 0 : i32
    %c0_i32_0 = arith.constant 0 : i32
    %c0_i32_1 = arith.constant 0 : i32
    return %c0_i32, %c0_i32_0 : i32, i32
  }
  func.func @transform_5(%arg0: i32) -> (i32, i32) {
    %c0_i32 = arith.constant 0 : i32
    %c0_i32_0 = arith.constant 0 : i32
    %c0_i32_1 = arith.constant 0 : i32
    return %c0_i32, %c0_i32_0 : i32, i32
  }
  func.func @transform_6(%arg0: i32) -> (i32, i32) {
    %c0_i32 = arith.constant 0 : i32
    %c0_i32_0 = arith.constant 0 : i32
    %c0_i32_1 = arith.constant 0 : i32
    return %c0_i32, %c0_i32_0 : i32, i32
  }
  func.func @transform_7(%arg0: i32) -> (i32, i32) {
    %c0_i32 = arith.constant 0 : i32
    %c0_i32_0 = arith.constant 0 : i32
    %c0_i32_1 = arith.constant 0 : i32
    return %c0_i32, %c0_i32_0 : i32, i32
  }
  func.func @transform_8(%arg0: i32) -> (i32, i32) {
    %c0_i32 = arith.constant 0 : i32
    %c0_i32_0 = arith.constant 0 : i32
    %c0_i32_1 = arith.constant 0 : i32
    return %c0_i32, %c0_i32_0 : i32, i32
  }
  func.func @transform_9(%arg0: i32) -> (i32, i32) {
    %c0_i32 = arith.constant 0 : i32
    %c0_i32_0 = arith.constant 0 : i32
    %c0_i32_1 = arith.constant 0 : i32
    return %c0_i32, %c0_i32_0 : i32, i32
  }
  func.func @transform_10(%arg0: i32) -> (i32, i32, i32) {
    %c0_i32 = arith.constant 0 : i32
    %c0_i32_0 = arith.constant 0 : i32
    %c0_i32_1 = arith.constant 0 : i32
    return %arg0, %c0_i32, %c0_i32_0 : i32, i32, i32
  }
}

</mosaic_0001>

<bundles_post_ra>
// kernel: block_forward.1
= control target key start
LH: loop header
LB: loop body
LE: loop exit
PB: predicated region body
PF: predicated region fallthrough
CT: control target
= control target key end

     0   :  { %s9015_s0 = inlined_call_operand.hbm [shape: bf16[2,64,256], index: 0, kind: input, shape index: {}]   ;;  %s9016_s1 = inlined_call_operand.vmem [shape: bf16[1,256], index: 1, kind: input, shape index: {}]   ;;  %s9017_s2 = inlined_call_operand.hbm [shape: bf16[256,512], index: 2, kind: input, shape index: {}]   ;;  %s9018_s3 = inlined_call_operand.hbm [shape: bf16[256,384], index: 3, kind: input, shape index: {}]   ;;  %s9019_s4 = inlined_call_operand.hbm [shape: f32[64,384], index: 4, kind: input, shape index: {}]   ;;  %s9020_s5 = inlined_call_operand.hbm [shape: f32[64,384], index: 5, kind: input, shape index: {}]   ;;  %s9021_s6 = inlined_call_operand.hbm [shape: bf16[256,256], index: 6, kind: input, shape index: {}]   ;;  %s9022_s7 = inlined_call_operand.vmem [shape: bf16[1,256], index: 7, kind: input, shape index: {}]   ;;  %s9023_s8 = inlined_call_operand.hbm [shape: bf16[256,1024], index: 8, kind: input, shape index: {}]   ;;  %s9024_s9 = inlined_call_operand.hbm [shape: bf16[512,256], index: 9, kind: input, shape index: {}]   ;;  %s9025_s10 = inlined_call_operand.hbm [shape: bf16[2,64,256], index: 10, kind: output, shape index: {}]  }
   0x1   :  { %9059 = sst [smem:[#allocation40_spill]] %s9017_s2 }
   0x2   :  { %9060 = sst [smem:[#allocation41_spill]] %s9018_s3 }
   0x3   :  { %9061 = sst [smem:[#allocation42_spill]] %s9022_s7 }
   0x4   :  { %9062 = sst [smem:[#allocation43_spill]] %s9025_s10 }
   0x5   :  { %15 = vsyncpa [#allocation3], 0 }
   0x6   :  { %17 = vsyncpa [#allocation3 + $0x1], 0 }
   0x7   :  { %18 = vsyncpa [#allocation6], 0 }
   0x8   :  { %19 = vsyncpa [#allocation9], 0 }
   0x9   :  { %20 = vsyncpa [#allocation12], 0 }
   0xa   :  { %21 = vsyncpa [#allocation15], 0 }
   0xb   :  { %22 = vsyncpa [#allocation4], 0 }
   0xc   :  { %24 = vsyncpa [#allocation4 + $0x1], 0  ;;  %s7360_s13 = smov 0   ;;  %s7362_s14 = smov 0  }
   0xd   :  { %s7364_s15 = smov 0   ;;  %s7366_s16 = smov 0  }
   0xe LB: > { %s7283_s17 = smov [#allocation5]   ;;  %s7381_s19 = sadd.s32 4294967295, %s7281_s16   ;;  %s7281_s16 = sphi %s7366_s16, %s9167_s16   ;;  %s7277_s15 = sphi %s7364_s15, %s9166_s15   ;;  %s7273_s14 = sphi %s7362_s14, %s9165_s14   ;;  %s7269_s13 = sphi %s7360_s13, %s9164_s13  }
   0xf   : > { %s291_s18 = sshll.u32 %s7283_s17, 4  ;;  %p5558_p0 = scmp.ge.s32.totalorder %s7281_s16, 1  ;;  %s7386_s18 = int_to_ptr.vmem [resolvable:$true] %s291_s18 }
  0x10   : > { %p9027_p1 = scmp.eq.s32.totalorder %s7381_s19, 0  ;;  %p276_p2 = scmp.lt.s32.totalorder %s7281_s16, 3 }
  0x11   : > { %s7284_s21 = smov [#allocation8]   ;;  %s7285_s24 = smov [#allocation11]  }
  0x12   : > { %p7388_p3 = pnand %p5558_p0, %p276_p2  ;;  %s317_s22 = sshll.u32 %s7284_s21, 4  ;;  %s7401_s22 = int_to_ptr.vmem [resolvable:$true] %s317_s22 }
  0x13   : > { %s7403_s25 = sshll.u32 %s7285_s24, 4  ;;  %s9065_s2 = sld [smem:[#allocation40_spill]]  ;;  %s344_s25 = int_to_ptr.vmem [resolvable:$true] %s7403_s25 }
  0x14   : > { %s9063_s20 = scalar_select %p7388_p3, 1, 0 }
  0x15   : > { %p6243_p5 = pneg %p7388_p3 }
  0x17   : > { %p7397_p6 = pnand %p6243_p5, %p9027_p1 }
  0x19   : > { %s6973_s28 = scalar_lea.hbm %s9065_s2, 8192  ;;  %p7413_p8 = pneg %p7397_p6 }
  0x1a   : > { %p6974_p7 = scmp.ne.s32.totalorder %s9065_s2, %s6973_s28  ;;  %p6980_p11 = scmp.lt.u32.totalorder %s6973_s28, %s9065_s2 }
  0x1c   : > { %p6976_p9 = pnand %p7413_p8, %p6974_p7 }
  0x1e   : > { %p6977_p10 = pneg %p6976_p9 }
  0x20   : > { %p6982_p12 = pnand %p6980_p11, %p6977_p10 }
  0x22   : > { %6985 = shalt.err (!%p6982_p12)
}
  0x23   : > { %s6986_s21 = scalar_lea.vmem %s7386_s18, 8192  ;;  %p6994_p5 = scmp.lt.s32.totalorder %s7386_s18, %s7386_s18 }
  0x24   : > { %p6987_p13 = scmp.ne.s32.totalorder %s7386_s18, %s6986_s21  ;;  %p6995_p4 = scmp.lt.s32.totalorder %s6986_s21, %s6986_s21 }
  0x26   : > { %p6989_p0 = pnand %p6987_p13, %p7413_p8  ;;  %p6996_p7 = por %p6995_p4, %p6994_p5 }
  0x28   : > { %p6990_p2 = pneg %p6989_p0 }
  0x2a   : > { %p6997_p9 = pnand %p6996_p7, %p6990_p2 }
  0x2c   : > { %7000 = shalt.err (!%p6997_p9)
}
  0x2d   : > { %s7286_s24 = smov 256   ;;  %s7287_s26 = smov 16  }
  0x2e   : > { %6246 = dma.hbm_to_vmem [thread:$0]  (!%p7397_p6), %s9065_s2, 8192, %s7386_s18, [#allocation6], %s7286_s24, %s7286_s24, %s7287_s26  }
  0x2f   : > { %s7001_s12 = scalar_lea.hbm %s9019_s4, 3072 }
  0x30   : > { %p7002_p4 = scmp.ne.s32.totalorder %s9019_s4, %s7001_s12  ;;  %p7008_p12 = scmp.lt.u32.totalorder %s7001_s12, %s9019_s4 }
  0x32   : > { %p7004_p10 = pnand %p7002_p4, %p7413_p8 }
  0x34   : > { %p7005_p11 = pneg %p7004_p10 }
  0x36   : > { %p7010_p13 = pnand %p7008_p12, %p7005_p11 }
  0x38   : > { %7013 = shalt.err (!%p7010_p13)
}
  0x39   : > { %s7014_s18 = scalar_lea.vmem %s7401_s22, 3072  ;;  %p7022_p7 = scmp.lt.s32.totalorder %s7401_s22, %s7401_s22 }
  0x3a   : > { %p7015_p0 = scmp.ne.s32.totalorder %s7401_s22, %s7014_s18  ;;  %p7023_p9 = scmp.lt.s32.totalorder %s7014_s18, %s7014_s18 }
  0x3c   : > { %p7017_p2 = pnand %p7015_p0, %p7413_p8  ;;  %p7024_p4 = por %p7023_p9, %p7022_p7 }
  0x3e   : > { %p7018_p5 = pneg %p7017_p2 }
  0x40   : > { %p7025_p10 = pnand %p7024_p4, %p7018_p5 }
  0x42   : > { %7028 = shalt.err (!%p7025_p10)
}
  0x43   : > { %s9029_s10 = smov 384   ;;  %s9030_s7 = smov 24  }
  0x44   : > { %6252 = dma.hbm_to_vmem [thread:$0]  (!%p7397_p6), %s9019_s4, 3072, %s7401_s22, [#allocation9], %s9029_s10, %s9029_s10, %s9030_s7  }
  0x45   : > { %s7029_s29 = scalar_lea.hbm %s9021_s6, 4096 }
  0x46   : > { %p7030_p11 = scmp.ne.s32.totalorder %s9021_s6, %s7029_s29  ;;  %p7036_p0 = scmp.lt.u32.totalorder %s7029_s29, %s9021_s6 }
  0x48   : > { %p7032_p12 = pnand %p7030_p11, %p7413_p8 }
  0x4a   : > { %p7033_p13 = pneg %p7032_p12 }
  0x4c   : > { %p7038_p2 = pnand %p7036_p0, %p7033_p13 }
  0x4e   : > { %7041 = shalt.err (!%p7038_p2)
}
  0x4f   : > { %s7042_s18 = scalar_lea.vmem %s344_s25, 4096  ;;  %p7050_p4 = scmp.lt.s32.totalorder %s344_s25, %s344_s25 }
  0x50   : > { %p7043_p5 = scmp.ne.s32.totalorder %s344_s25, %s7042_s18  ;;  %p7051_p10 = scmp.lt.s32.totalorder %s7042_s18, %s7042_s18 }
  0x52   : > { %p7045_p7 = pnand %p7043_p5, %p7413_p8  ;;  %p7052_p1 = por %p7051_p10, %p7050_p4 }
  0x54   : > { %p7046_p9 = pneg %p7045_p7 }
  0x56   : > { %p7053_p3 = pnand %p7052_p1, %p7046_p9 }
  0x58   : > { %7056 = shalt.err (!%p7053_p3)
}
  0x59   : > { %s9031_s22 = smov 128   ;;  %s9033_s24 = smov 8  }
  0x5a   : > { %6258 = dma.hbm_to_vmem [thread:$0]  (!%p7397_p6), %s9021_s6, 4096, %s344_s25, [#allocation12], %s9031_s22, %s9031_s22, %s9033_s24  }
  0x5b   : > { %s7292_s28 = smov [#allocation7]   ;;  %s9067_s3 = sld [smem:[#allocation41_spill]] }
  0x5c   : > { %s304_s29 = sshll.u32 %s7292_s28, 4  ;;  %s305_s29 = int_to_ptr.vmem [resolvable:$true] %s304_s29 }
  0x61   : > { %s7057_s17 = scalar_lea.hbm %s9067_s3, 6144 }
  0x62   : > { %p7058_p1 = scmp.ne.s32.totalorder %s9067_s3, %s7057_s17  ;;  %p7064_p12 = scmp.lt.u32.totalorder %s7057_s17, %s9067_s3 }
  0x64   : > { %p7060_p3 = pnand %p7058_p1, %p7413_p8 }
  0x66   : > { %p7061_p11 = pneg %p7060_p3 }
  0x68   : > { %p7066_p13 = pnand %p7064_p12, %p7061_p11 }
  0x6a   : > { %7069 = shalt.err (!%p7066_p13)
}
  0x6b   : > { %s7070_s25 = scalar_lea.vmem %s305_s29, 6144  ;;  %p7078_p7 = scmp.lt.s32.totalorder %s305_s29, %s305_s29 }
  0x6c   : > { %p7071_p0 = scmp.ne.s32.totalorder %s305_s29, %s7070_s25  ;;  %p7079_p9 = scmp.lt.s32.totalorder %s7070_s25, %s7070_s25 }
  0x6e   : > { %p7073_p2 = pnand %p7071_p0, %p7413_p8  ;;  %p7080_p4 = por %p7079_p9, %p7078_p7 }
  0x70   : > { %p7074_p5 = pneg %p7073_p2 }
  0x72   : > { %p7081_p10 = pnand %p7080_p4, %p7074_p5 }
  0x74   : > { %7084 = shalt.err (!%p7081_p10)
}
  0x75   : > { %s7293_s26 = smov 192   ;;  %s7294_s27 = smov 12  }
  0x76   : > { %6249 = dma.hbm_to_vmem [thread:$0]  (!%p7397_p6), %s9067_s3, 6144, %s305_s29, [#allocation6], %s7293_s26, %s7293_s26, %s7294_s27  }
  0x77   : > { %s7295_s28 = smov [#allocation10]   ;;  %s7296_s12 = smov [#allocation13]  }
  0x78   : > { %s330_s30 = sshll.u32 %s7295_s28, 4  ;;  %s359_s17 = sshll.u32 %s7296_s12, 4  ;;  %s331_s30 = int_to_ptr.vmem [resolvable:$true] %s330_s30  ;;  %s7500_s17 = int_to_ptr.vmem [resolvable:$true] %s359_s17 }
  0x79   : > { %s7085_s25 = scalar_lea.hbm %s9020_s5, 3072 }
  0x7a   : > { %p7086_p1 = scmp.ne.s32.totalorder %s9020_s5, %s7085_s25  ;;  %p7092_p12 = scmp.lt.u32.totalorder %s7085_s25, %s9020_s5 }
  0x7c   : > { %p7088_p3 = pnand %p7086_p1, %p7413_p8 }
  0x7e   : > { %p7089_p11 = pneg %p7088_p3 }
  0x80   : > { %p7094_p13 = pnand %p7092_p12, %p7089_p11 }
  0x82   : > { %7097 = shalt.err (!%p7094_p13)
}
  0x83   : > { %s7098_s26 = scalar_lea.vmem %s331_s30, 3072  ;;  %p7106_p7 = scmp.lt.s32.totalorder %s331_s30, %s331_s30 }
  0x84   : > { %p7099_p0 = scmp.ne.s32.totalorder %s331_s30, %s7098_s26  ;;  %p7107_p9 = scmp.lt.s32.totalorder %s7098_s26, %s7098_s26 }
  0x86   : > { %p7101_p2 = pnand %p7099_p0, %p7413_p8  ;;  %p7108_p4 = por %p7107_p9, %p7106_p7 }
  0x88   : > { %p7102_p5 = pneg %p7101_p2 }
  0x8a   : > { %p7109_p10 = pnand %p7108_p4, %p7102_p5 }
  0x8c   : > { %7112 = shalt.err (!%p7109_p10)
}
  0x8d   : > { %s9068_s22 = smov 24   ;;  %s9069_s24 = smov 384  }
  0x8e   : > { %6255 = dma.hbm_to_vmem [thread:$0]  (!%p7397_p6), %s9020_s5, 3072, %s331_s30, [#allocation9], %s9069_s24, %s9069_s24, %s9068_s22  }
  0x8f   : > { %s7113_s21 = scalar_lea.hbm %s9023_s8, 16384 }
  0x90   : > { %p7114_p1 = scmp.ne.s32.totalorder %s9023_s8, %s7113_s21  ;;  %p7120_p12 = scmp.lt.u32.totalorder %s7113_s21, %s9023_s8 }
  0x92   : > { %p7116_p3 = pnand %p7114_p1, %p7413_p8 }
  0x94   : > { %p7117_p11 = pneg %p7116_p3 }
  0x96   : > { %p7122_p13 = pnand %p7120_p12, %p7117_p11 }
  0x98   : > { %7125 = shalt.err (!%p7122_p13)
}
  0x99   : > { %s7126_s30 = scalar_lea.vmem %s7500_s17, 16384  ;;  %p7134_p7 = scmp.lt.s32.totalorder %s7500_s17, %s7500_s17 }
  0x9a   : > { %p7127_p0 = scmp.ne.s32.totalorder %s7500_s17, %s7126_s30  ;;  %p7135_p9 = scmp.lt.s32.totalorder %s7126_s30, %s7126_s30 }
  0x9c   : > { %p7129_p2 = pnand %p7127_p0, %p7413_p8  ;;  %p7136_p4 = por %p7135_p9, %p7134_p7 }
  0x9e   : > { %p7130_p5 = pneg %p7129_p2 }
  0xa0   : > { %p7137_p10 = pnand %p7136_p4, %p7130_p5 }
  0xa2   : > { %7140 = shalt.err (!%p7137_p10)
}
  0xa3   : > { %s7297_s26 = smov 512   ;;  %s7298_s22 = smov 32  }
  0xa4   : > { %6261 = dma.hbm_to_vmem [thread:$0]  (!%p7397_p6), %s9023_s8, 16384, %s7500_s17, [#allocation12], %s7297_s26, %s7297_s26, %s7298_s22  }
  0xa5   : > { %s7299_s7 = smov [#allocation14]   ;;  %s7141_s18 = scalar_lea.hbm %s9024_s9, 8192 }
  0xa6   : > { %s372_s28 = sshll.u32 %s7299_s7, 4  ;;  %p7142_p1 = scmp.ne.s32.totalorder %s9024_s9, %s7141_s18  ;;  %s373_s28 = int_to_ptr.vmem [resolvable:$true] %s372_s28 }
  0xa7   : > { %p7148_p12 = scmp.lt.u32.totalorder %s7141_s18, %s9024_s9 }
  0xa8   : > { %p7144_p3 = pnand %p7142_p1, %p7413_p8 }
  0xaa   : > { %p7145_p11 = pneg %p7144_p3 }
  0xac   : > { %p7150_p13 = pnand %p7148_p12, %p7145_p11 }
  0xae   : > { %7153 = shalt.err (!%p7150_p13)
}
  0xaf   : > { %s7154_s17 = scalar_lea.vmem %s373_s28, 8192  ;;  %p7162_p7 = scmp.lt.s32.totalorder %s373_s28, %s373_s28 }
  0xb0   : > { %p7155_p0 = scmp.ne.s32.totalorder %s373_s28, %s7154_s17  ;;  %p7163_p9 = scmp.lt.s32.totalorder %s7154_s17, %s7154_s17 }
  0xb2   : > { %p7157_p2 = pnand %p7155_p0, %p7413_p8  ;;  %p7164_p4 = por %p7163_p9, %p7162_p7 }
  0xb4   : > { %p7158_p5 = pneg %p7157_p2 }
  0xb6   : > { %p7165_p10 = pnand %p7164_p4, %p7158_p5 }
  0xb8   : > { %7168 = shalt.err (!%p7165_p10)
}
  0xb9   : > { %s9070_s26 = smov 8   ;;  %s9071_s22 = smov 128  }
  0xba   : > { %6264 = dma.hbm_to_vmem [thread:$0]  (!%p7397_p6), %s9024_s9, 8192, %s373_s28, [#allocation15], %s9071_s22, %s9071_s22, %s9070_s26  }
  0xbb   : > { %s5557_s23 = sadd.s32 4294967294, %s7281_s16   ;;  %s7569_s11 = sadd.s32 1, %s7281_s16  }
  0xbc   : > { %s37_s7 = sadd.s32 1, %s7277_s15  ;;  %s34_s12 = ssub.s32 %s7281_s16, %s7569_s11 }
  0xbd   : > { %p44_p8 = scmp.ne.s32.totalorder %s7277_s15, %s7273_s14  ;;  %p35_p1 = scmp.eq.s32.totalorder %s34_s12, 0 }
  0xbe   : > { %p45_p3 = scmp.eq.s32.totalorder %s7281_s16, 0  ;;  %p50_p11 = scmp.ne.s32.totalorder %s7273_s14, %s7269_s13 }
  0xbf   : > { %p263_p12 = scmp.eq.s32.totalorder %s7381_s19, 1  ;;  %p9072_p0 = scmp.eq.s32.totalorder %s7381_s19, 0 }
  0xc0   : > { %s7581_s21 = scalar_select %p35_p1, %s7277_s15, %s37_s7  }
  0xc1   : > { %p46_p13 = por %p45_p3, %p44_p8  ;;  %p7585_p2 = por %p9072_p0, %p50_p11 }
  0xc2   : > { %p7589_p6 = por %p263_p12, %p44_p8  ;;  %p269_p5 = scmp.eq.s32.totalorder %s5557_s23, 1 }
  0xc3   : > { %p6280_p7 = scmp.lt.s32.totalorder %s7281_s16, 2  ;;  %s386_s25 = sand.u32 1, %s7277_s15  }
  0xc4   : > { %s9074_s28 = scalar_select %p7589_p6, 1, 0 }
  0xc5   : > { %p7595_p9 = por %p269_p5, %p50_p11  ;;  %s5567_s29 = sshll.u32 %s386_s25, 6 }
  0xc6   : > { %s5993_s30 = sshll.u32 %s7281_s16, 10  ;;  %s390_s7 = scalar_lea.vmem [#allocation2], %s5567_s29 }
  0xc7   : > { %s9075_s10 = scalar_select %p7595_p9, 1, 0 }
  0xc8   : > { %s7603_s27 = scalar_lea.hbm %s9015_s0, %s5993_s30  ;;  %s397_s12 = sshll.u32 %s390_s7, 4  ;;  %s7609_s12 = int_to_ptr.vmem [resolvable:$true] %s397_s12 }
  0xc9   : > { %p7605_p4 = pnand %p6280_p7, %p46_p13  ;;  %s7611_s2 = scalar_lea.sflag [#allocation3], %s386_s25 }
  0xca   : > { %s7169_s3 = scalar_lea.hbm %s7603_s27, 1024  ;;  %s7174_s17 = scalar_lea.hbm %s9015_s0, 2048 }
  0xcb   : > { %p7170_p10 = scmp.ne.s32.totalorder %s7603_s27, %s7169_s3  ;;  %p7171_p8 = pneg %p7605_p4 }
  0xcc   : > { %p7175_p11 = scmp.lt.u32.totalorder %s7603_s27, %s9015_s0  ;;  %p7176_p12 = scmp.lt.u32.totalorder %s7174_s17, %s7169_s3 }
  0xcd   : > { %p7172_p1 = pnand %p7171_p8, %p7170_p10  ;;  %p7178_p0 = scmp.lt.u32.totalorder %s7169_s3, %s7603_s27 }
  0xce   : > { %p7177_p13 = por %p7176_p12, %p7175_p11 }
  0xcf   : > { %p7173_p3 = pneg %p7172_p1 }
  0xd0   : > { %p7179_p5 = por %p7178_p0, %p7177_p13 }
  0xd2   : > { %p7180_p7 = pnand %p7179_p5, %p7173_p3 }
  0xd4   : > { %7183 = shalt.err (!%p7180_p7)
}
  0xd5   : > { %s7184_s25 = scalar_lea.vmem %s7609_s12, 1024  ;;  %s7300_s29 = smov [#allocation2]  }
  0xd6   : > { %p7185_p10 = scmp.ne.s32.totalorder %s7609_s12, %s7184_s25  ;;  %s7189_s30 = sshll.u32 %s7300_s29, 4  ;;  %s7190_s30 = int_to_ptr.vmem [resolvable:$false] %s7189_s30 }
  0xd7   : > { %s7191_s24 = scalar_lea.vmem %s7190_s30, 2048  ;;  %p7192_p6 = scmp.lt.s32.totalorder %s7609_s12, %s7190_s30 }
  0xd8   : > { %p7187_p1 = pnand %p7185_p10, %p7171_p8  ;;  %p7193_p11 = scmp.lt.s32.totalorder %s7191_s24, %s7184_s25 }
  0xda   : > { %p7188_p9 = pneg %p7187_p1  ;;  %p7194_p12 = por %p7193_p11, %p7192_p6 }
  0xdc   : > { %p7195_p13 = pnand %p7194_p12, %p7188_p9 }
  0xde   : > { %7198 = shalt.err (!%p7195_p13)
}
  0xdf   : > { %6268 = dma.hbm_to_vmem [thread:$0]  (!%p7605_p4), %s7603_s27, 1024, %s7609_s12, %s7611_s2, %s9071_s22, %s9071_s22, %s9070_s26  }
  0xe0   : > { %p9077_p8 = scmp.ne.s32.totalorder %s9063_s20, 0 }
  0xe2   : > { %409 = sbr.rel (%p9077_p8) target bundleno = 2802 (0xaf2), region = 60 }
  0xe9   : > { %s7645_s3 = sand.u32 1, %s7273_s14  }
  0xea   : > { %s5571_s17 = sshll.u32 %s7645_s3, 6  ;;  %s412_s7 = scalar_lea.sflag [#allocation3], %s7645_s3 }
  0xeb   : > { %s415_s23 = scalar_lea.vmem [#allocation2], %s5571_s17 }
  0xec   : > { %7244 = dma.done.wait (%p7585_p2), %s412_s7, 1024  }
  0xed   : > { %7246 = vsyncadd (%p7585_p2), %s412_s7, 4294966272  ;;  %p9078_p6 = scmp.eq.s32.totalorder %s7381_s19, 0 }
  0xef   : > { %7248 = dma.done.wait (%p9078_p6), [#allocation6], 14336   ;;  %p9079_p9 = pmov %p9078_p6 }
  0xf0   : > { %p9080_p4 = pmov %p9078_p6 }
  0xf1   : > { %7250 = vsyncadd (%p9079_p9), [#allocation6], 4294952960 }
  0xf2   : > { %7252 = dma.done.wait (%p9080_p4), [#allocation9], 6144   ;;  %p9081_p3 = pmov %p9080_p4 }
  0xf4   : > { %7254 = vsyncadd (%p9081_p3), [#allocation9], 4294961152  ;;  %p9082_p0 = pmov %p9081_p3 }
  0xf6   : > { %7256 = dma.done.wait (%p9082_p0), [#allocation12], 20480   ;;  %p9083_p5 = pmov %p9082_p0 }
  0xf7   : > { %p9084_p2 = pmov %p9082_p0 }
  0xf8   : > { %7258 = vsyncadd (%p9083_p5), [#allocation12], 4294946816 }
  0xf9   : > { %7260 = dma.done.wait (%p9084_p2), [#allocation15], 8192   ;;  %p9085_p7 = pmov %p9082_p0 }
  0xfa   : > { %v481_v0 = vld [vmem:[%s415_s23] sm:$0xff]  ;;  %v482_v1 = vld [vmem:[%s415_s23 + $0x8] sm:$0xff]  ;;  %v483_v2 = vld [vmem:[%s415_s23 + $0x10] sm:$0xff]  ;;  %vm1994_vm0 = vcmask 523264   ;;  %s7301_s26 = smov 64   ;;  %s9141_s27 = sld [smem:[#allocation42_spill]] }
  0xfb   : > { %7262 = vsyncadd (%p9085_p7), [#allocation15], 4294959104  ;;  %v7671_v3 = vunpack.c.l.bf16 %v481_v0  ;;  %v7673_v4 = vunpack.c.h.bf16 %v481_v0  ;;  %v7675_v5 = vunpack.c.l.bf16 %v482_v1  ;;  %v7677_v6 = vunpack.c.h.bf16 %v482_v1  ;;  %v484_v7 = vld [vmem:[%s415_s23 + $0x18] sm:$0xff]  ;;  %v486_v8 = vld [vmem:[%s415_s23 + $0x28] sm:$0xff]  ;;  %s8942_s12 = scalar_lea.vmem [#allocation16], %s5571_s17  ;;  %s6002_s29 = sshll.u32 %s7381_s19, 10 }
  0xfc   : > { %v7679_v9 = vunpack.c.l.bf16 %v483_v2  ;;  %v7681_v10 = vunpack.c.h.bf16 %v483_v2  ;;  %v7683_v11 = vunpack.c.l.bf16 %v484_v7  ;;  %v7685_v12 = vunpack.c.h.bf16 %v484_v7  ;;  %v485_v13 = vld [vmem:[%s415_s23 + $0x20] sm:$0xff]  ;;  %v488_v14 = vld [vmem:[%s415_s23 + $0x38] sm:$0xff]  ;;  %v487_v19 = vld [vmem:[%s415_s23 + $0x30] sm:$0xff]  ;;  %s5417_s25 = sshll.u32 %s8942_s12, 4  ;;  %s9160_s17 = sld [smem:[#allocation43_spill]]  ;;  %s8963_s25 = int_to_ptr.vmem [resolvable:$true] %s5417_s25 }
  0xfd   : > { %v507_v15 = vmul.f32 %v7671_v3, %v7671_v3  ;;  %v508_v16 = vmul.f32 %v7673_v4, %v7673_v4  ;;  %v509_v17 = vmul.f32 %v7675_v5, %v7675_v5  ;;  %v510_v18 = vmul.f32 %v7677_v6, %v7677_v6  ;;  %v6381_v20 = vld [vmem:[#allocation5 + $0x4] ss:$16 sps:$4 sm:$0xff]   ;;  %v6383_v21 = vld [vmem:[#allocation5] ss:$16 sps:$4 sm:$0xff]   ;;  %v6390_v42 = vld [vmem:[#allocation7 + $0x1c] ss:$12 sps:$4 sm:$0xff]  }
  0xfe   : > { %v511_v22 = vmul.f32 %v7679_v9, %v7679_v9  ;;  %v512_v23 = vmul.f32 %v7681_v10, %v7681_v10  ;;  %v513_v24 = vmul.f32 %v7683_v11, %v7683_v11  ;;  %v514_v25 = vmul.f32 %v7685_v12, %v7685_v12  ;;  %v6384_v26 = vld [vmem:[#allocation7 + $0x4] ss:$12 sps:$4 sm:$0xff]   ;;  %1015 = vmatprep.subr.bf16.mxu1 %v6381_v20  ;;  %v6386_v31 = vld [vmem:[#allocation7] ss:$12 sps:$4 sm:$0xff]   ;;  %v6404_v62 = vld [vmem:[#allocation7 + $0x48] ss:$12 sps:$4 sm:$0xff]  }
  0xff   : > { %v523_v27 = vadd.f32 %v508_v16, %v507_v15  ;;  %v526_v28 = vadd.f32 %v510_v18, %v509_v17  ;;  %v7703_v29 = vunpack.c.l.bf16 %v486_v8  ;;  %v7705_v30 = vunpack.c.h.bf16 %v486_v8  ;;  %1016 = vmatpush1.bf16.msra.mxu1 %v6383_v21  ;;  %1481 = vmatprep.subr.bf16.mxu0 %v6384_v26  ;;  %v6387_v36 = vld [vmem:[#allocation5 + $0x24] ss:$16 sps:$4 sm:$0xff]   ;;  %v6389_v37 = vld [vmem:[#allocation5 + $0x20] ss:$16 sps:$4 sm:$0xff]   ;;  %v6402_v59 = vld [vmem:[#allocation7 + $0x4c] ss:$12 sps:$4 sm:$0xff]  }
 0x100   : > { %v529_v32 = vadd.f32 %v512_v23, %v511_v22  ;;  %v532_v33 = vadd.f32 %v514_v25, %v513_v24  ;;  %v7707_v34 = vunpack.c.l.bf16 %v485_v13  ;;  %v7709_v35 = vunpack.c.h.bf16 %v485_v13  ;;  %1482 = vmatpush1.bf16.msra.mxu0 %v6386_v31  ;;  %v6392_v43 = vld [vmem:[#allocation7 + $0x18] ss:$12 sps:$4 sm:$0xff]   ;;  %1017 = vmatprep.subr.bf16.mxu1 %v6387_v36  ;;  %v6395_v49 = vld [vmem:[#allocation5 + $0x40] ss:$16 sps:$4 sm:$0xff]   ;;  %v6414_v13 = vld [vmem:[#allocation7 + $0x7c] ss:$12 sps:$4 sm:$0xff]  }
 0x101   : > { %524 = vadd.xlane.f32.xlu0 %v523_v27  ;;  %v517_v38 = vmul.f32 %v7703_v29, %v7703_v29  ;;  %v518_v39 = vmul.f32 %v7705_v30, %v7705_v30  ;;  %v7715_v40 = vunpack.c.l.bf16 %v488_v14  ;;  %v7717_v41 = vunpack.c.h.bf16 %v488_v14  ;;  %v6393_v48 = vld [vmem:[#allocation5 + $0x44] ss:$16 sps:$4 sm:$0xff]   ;;  %1483 = vmatprep.subr.bf16.mxu0 %v6390_v42  ;;  %v6398_v54 = vld [vmem:[#allocation7 + $0x30] ss:$12 sps:$4 sm:$0xff]   ;;  %v6410_v7 = vld [vmem:[#allocation7 + $0x60] ss:$12 sps:$4 sm:$0xff]  }
 0x102   : > { %530 = vadd.xlane.f32.xlu1 %v529_v32  ;;  %v515_v44 = vmul.f32 %v7707_v34, %v7707_v34  ;;  %v516_v45 = vmul.f32 %v7709_v35, %v7709_v35  ;;  %v7723_v46 = vunpack.c.l.bf16 %v487_v19  ;;  %v7725_v47 = vunpack.c.h.bf16 %v487_v19  ;;  %v6396_v50 = vld [vmem:[#allocation7 + $0x34] ss:$12 sps:$4 sm:$0xff]   ;;  %v6408_v1 = vld [vmem:[#allocation7 + $0x64] ss:$12 sps:$4 sm:$0xff]   ;;  %v6426_v21 = vld [vmem:[#allocation7 + $0xac] ss:$12 sps:$4 sm:$0xff]   ;;  %s8969_s7 = scalar_lea.hbm %s9160_s17, %s6002_s29 }
 0x103   : > { %9086 = vst [vmem:[#allocation23_spill] sm:$0xff] %v7715_v40  ;;  %9087 = vst [vmem:[#allocation24_spill] sm:$0xff] %v7717_v41  ;;  %1018 = vmatpush1.bf16.msra.mxu1 %v6389_v37  ;;  %v538_v55 = vadd.f32 %v518_v39, %v517_v38  ;;  %v521_v56 = vmul.f32 %v7715_v40, %v7715_v40  ;;  %v522_v57 = vmul.f32 %v7717_v41, %v7717_v41  ;;  %v6399_v58 = vld [vmem:[#allocation5 + $0x64] ss:$16 sps:$4 sm:$0xff]   ;;  %v6401_v60 = vld [vmem:[#allocation5 + $0x60] ss:$16 sps:$4 sm:$0xff]  }
 0x104   : > { %v535_v51 = vadd.f32 %v516_v45, %v515_v44  ;;  %v519_v52 = vmul.f32 %v7723_v46, %v7723_v46  ;;  %v520_v53 = vmul.f32 %v7725_v47, %v7725_v47  ;;  %1484 = vmatpush1.bf16.msra.mxu0 %v6392_v43  ;;  %1019 = vmatprep.subr.bf16.mxu1 %v6393_v48  ;;  %v6405_v0 = vld [vmem:[#allocation5 + $0x84] ss:$16 sps:$4 sm:$0xff]   ;;  %v6407_v2 = vld [vmem:[#allocation5 + $0x80] ss:$16 sps:$4 sm:$0xff]   ;;  %v6438_v31 = vld [vmem:[#allocation7 + $0xdc] ss:$12 sps:$4 sm:$0xff]  }
 0x105   : > { %527 = vadd.xlane.f32.xlu0 %v526_v28  ;;  %1485 = vmatprep.subr.bf16.mxu0 %v6396_v50  ;;  %v544_v63 = vadd.f32 %v522_v57, %v521_v56  ;;  %v6411_v8 = vld [vmem:[#allocation5 + $0xa4] ss:$16 sps:$4 sm:$0xff]   ;;  %v6413_v14 = vld [vmem:[#allocation5 + $0xa0] ss:$16 sps:$4 sm:$0xff]   ;;  %v6450_v43 = vld [vmem:[#allocation7 + $0x10c] ss:$12 sps:$4 sm:$0xff]  }
 0x106   : > { %533 = vadd.xlane.f32.xlu1 %v532_v33  ;;  %v541_v61 = vadd.f32 %v520_v53, %v519_v52  ;;  %v6416_v15 = vld [vmem:[#allocation7 + $0x78] ss:$12 sps:$4 sm:$0xff]   ;;  %v6420_v17 = vld [vmem:[#allocation7 + $0x94] ss:$12 sps:$4 sm:$0xff]   ;;  %v6422_v19 = vld [vmem:[#allocation7 + $0x90] ss:$12 sps:$4 sm:$0xff]  }
 0x107   : > { %1020 = vmatpush1.bf16.msra.mxu1 %v6395_v49  ;;  %v6417_v16 = vld [vmem:[#allocation5 + $0xc4] ss:$16 sps:$4 sm:$0xff]   ;;  %v6419_v18 = vld [vmem:[#allocation5 + $0xc0] ss:$16 sps:$4 sm:$0xff]   ;;  %s5404_s19 = scalar_lea.sflag [#allocation4], %s7645_s3  ;;  %s7199_s23 = scalar_lea.vmem %s8963_s25, 1024 }
 0x108   : > { %1486 = vmatpush1.bf16.msra.mxu0 %v6398_v54  ;;  %1021 = vmatprep.subr.bf16.mxu1 %v6399_v58  ;;  %v6423_v20 = vld [vmem:[#allocation5 + $0xe4] ss:$16 sps:$4 sm:$0xff]   ;;  %v6425_v22 = vld [vmem:[#allocation5 + $0xe0] ss:$16 sps:$4 sm:$0xff]   ;;  %v6462_v54 = vld [vmem:[#allocation7 + $0x13c] ss:$12 sps:$4 sm:$0xff]   ;;  %p7200_p10 = scmp.ne.s32.totalorder %s8963_s25, %s7199_s23 }
 0x109   : > { %536 = vadd.xlane.f32.xlu0 %v535_v51  ;;  %1487 = vmatprep.subr.bf16.mxu0 %v6402_v59  ;;  %v6428_v23 = vld [vmem:[#allocation7 + $0xa8] ss:$12 sps:$4 sm:$0xff]   ;;  %v6432_v25 = vld [vmem:[#allocation7 + $0xc4] ss:$12 sps:$4 sm:$0xff]   ;;  %v6434_v27 = vld [vmem:[#allocation7 + $0xc0] ss:$12 sps:$4 sm:$0xff]  }
 0x10a   : > { %539 = vadd.xlane.f32.xlu1 %v538_v55  ;;  %v6429_v24 = vld [vmem:[#allocation5 + $0x104] ss:$16 sps:$4 sm:$0xff]   ;;  %v6431_v26 = vld [vmem:[#allocation5 + $0x100] ss:$16 sps:$4 sm:$0xff]   ;;  %p9161_p1 = scmp.ne.s32.totalorder %s9074_s28, 0  ;;  %s7302_s2 = smov [#allocation16]  }
 0x10b   : > { %1022 = vmatpush1.bf16.msra.mxu1 %v6401_v60  ;;  %v6435_v28 = vld [vmem:[#allocation5 + $0x124] ss:$16 sps:$4 sm:$0xff]   ;;  %v6437_v32 = vld [vmem:[#allocation5 + $0x120] ss:$16 sps:$4 sm:$0xff]   ;;  %s7203_s20 = sshll.u32 %s7302_s2, 4  ;;  %s7204_s20 = int_to_ptr.vmem [resolvable:$false] %s7203_s20 }
 0x10c   : > { %1488 = vmatpush1.bf16.msra.mxu0 %v6404_v62  ;;  %1023 = vmatprep.subr.bf16.mxu1 %v6405_v0  ;;  %v6440_v33 = vld [vmem:[#allocation7 + $0xd8] ss:$12 sps:$4 sm:$0xff]   ;;  %v6444_v37 = vld [vmem:[#allocation7 + $0xf4] ss:$12 sps:$4 sm:$0xff]   ;;  %v6446_v39 = vld [vmem:[#allocation7 + $0xf0] ss:$12 sps:$4 sm:$0xff]   ;;  %p7201_p11 = pnand %p7200_p10, %p9161_p1  ;;  %p7206_p13 = scmp.lt.s32.totalorder %s8963_s25, %s7204_s20 }
 0x10d   : > { %542 = vadd.xlane.f32.xlu0 %v541_v61  ;;  %1489 = vmatprep.subr.bf16.mxu0 %v6408_v1  ;;  %v6441_v36 = vld [vmem:[#allocation5 + $0x144] ss:$16 sps:$4 sm:$0xff]   ;;  %v6443_v38 = vld [vmem:[#allocation5 + $0x140] ss:$16 sps:$4 sm:$0xff]   ;;  %v6474_v62 = vld [vmem:[#allocation7 + $0x16c] ss:$12 sps:$4 sm:$0xff]  }
 0x10e   : > { %545 = vadd.xlane.f32.xlu1 %v544_v63  ;;  %v6447_v42 = vld [vmem:[#allocation5 + $0x164] ss:$16 sps:$4 sm:$0xff]   ;;  %v6449_v44 = vld [vmem:[#allocation5 + $0x160] ss:$16 sps:$4 sm:$0xff]   ;;  %v6479_v0 = vld [vmem:[#allocation5 + $0xc] ss:$16 sps:$4 sm:$0xff]   ;;  %p7202_p12 = pneg %p7201_p11 }
 0x10f   : > { %1024 = vmatpush1.bf16.msra.mxu1 %v6407_v2  ;;  %v6452_v45 = vld [vmem:[#allocation7 + $0x108] ss:$12 sps:$4 sm:$0xff]   ;;  %v6455_v49 = vld [vmem:[#allocation5 + $0x180] ss:$16 sps:$4 sm:$0xff]   ;;  %v6464_v55 = vld [vmem:[#allocation7 + $0x138] ss:$12 sps:$4 sm:$0xff]  }
 0x110   : > { %1490 = vmatpush1.bf16.msra.mxu0 %v6410_v7  ;;  %1025 = vmatprep.subr.bf16.mxu1 %v6411_v8  ;;  %v6453_v48 = vld [vmem:[#allocation5 + $0x184] ss:$16 sps:$4 sm:$0xff]   ;;  %v6458_v51 = vld [vmem:[#allocation7 + $0x120] ss:$12 sps:$4 sm:$0xff]   ;;  %v6470_v59 = vld [vmem:[#allocation7 + $0x150] ss:$12 sps:$4 sm:$0xff]   ;;  %v9037_v8 = vlaneseq }
 0x111   : > { %1491 = vmatprep.subr.bf16.mxu0 %v6414_v13  ;;  %v6456_v50 = vld [vmem:[#allocation7 + $0x124] ss:$12 sps:$4 sm:$0xff]   ;;  %v6468_v58 = vld [vmem:[#allocation7 + $0x154] ss:$12 sps:$4 sm:$0xff]  }
 0x112   : > { %v6459_v52 = vld [vmem:[#allocation5 + $0x1a4] ss:$16 sps:$4 sm:$0xff]   ;;  %v6461_v53 = vld [vmem:[#allocation5 + $0x1a0] ss:$16 sps:$4 sm:$0xff]  }
 0x113   : > { %1026 = vmatpush1.bf16.msra.mxu1 %v6413_v14  ;;  %v6465_v56 = vld [vmem:[#allocation5 + $0x1c4] ss:$16 sps:$4 sm:$0xff]   ;;  %v6467_v57 = vld [vmem:[#allocation5 + $0x1c0] ss:$16 sps:$4 sm:$0xff]  }
 0x114   : > { %1492 = vmatpush1.bf16.msra.mxu0 %v6416_v15  ;;  %1027 = vmatprep.subr.bf16.mxu1 %v6417_v16  ;;  %v6471_v60 = vld [vmem:[#allocation5 + $0x1e4] ss:$16 sps:$4 sm:$0xff]   ;;  %v6473_v61 = vld [vmem:[#allocation5 + $0x1e0] ss:$16 sps:$4 sm:$0xff]  }
 0x115   : > { %1493 = vmatprep.subr.bf16.mxu0 %v6420_v17  ;;  %v6476_v63 = vld [vmem:[#allocation7 + $0x168] ss:$12 sps:$4 sm:$0xff]  }
 0x117   : > { %1028 = vmatpush1.bf16.msra.mxu1 %v6419_v18 }
 0x118   : > { %1494 = vmatpush1.bf16.msra.mxu0 %v6422_v19  ;;  %1029 = vmatprep.subr.bf16.mxu1 %v6423_v20  ;;  %v7736_v19 = vshrl.u32 %v9037_v8, 7 }
 0x119   : > { %1495 = vmatprep.subr.bf16.mxu0 %v6426_v21  ;;  %v505_v21 = vld [vmem:[%s9016_s1] sm:$0x3] }
 0x11a   : > { %9088 = vst [vmem:[#allocation25_spill] sm:$0xff] %v7736_v19 }
 0x11b   : > { %1030 = vmatpush1.bf16.msra.mxu1 %v6425_v22 }
 0x11c   : > { %1496 = vmatpush1.bf16.msra.mxu0 %v6428_v23  ;;  %1031 = vmatprep.subr.bf16.mxu1 %v6429_v24 }
 0x11d   : > { %1497 = vmatprep.subr.bf16.mxu0 %v6432_v25 }
 0x11f   : > { %1032 = vmatpush1.bf16.msra.mxu1 %v6431_v26 }
 0x120   : > { %1498 = vmatpush1.bf16.msra.mxu0 %v6434_v27  ;;  %1033 = vmatprep.subr.bf16.mxu1 %v6435_v28  ;;  %v506_v27 = vunpack.c.l.bf16 %v505_v21  ;;  %v9036_v28 = vsub.s32 2, %v7736_v19  ;;  %v6482_v21 = vld [vmem:[#allocation5 + $0x2c] ss:$16 sps:$4 sm:$0xff]  }
 0x121   : > { %1499 = vmatprep.subr.bf16.mxu0 %v6438_v31 }
 0x123   : > { %1034 = vmatpush1.bf16.msra.mxu1 %v6437_v32  ;;  %v7743_v32 = vsub.s32 0, %v7736_v19 }
 0x124   : > { %1500 = vmatpush1.bf16.msra.mxu0 %v6440_v33  ;;  %1035 = vmatprep.subr.bf16.mxu1 %v6441_v36 }
 0x125   : > { %1501 = vmatprep.subr.bf16.mxu0 %v6444_v37  ;;  %9089 = vst [vmem:[#allocation26_spill] sm:$0xff] %v7743_v32 }
 0x127   : > { %1036 = vmatpush1.bf16.msra.mxu1 %v6443_v38  ;;  %v596_v38 = vrot.slane %v506_v27, %v9036_v28 }
 0x128   : > { %1502 = vmatpush1.bf16.msra.mxu0 %v6446_v39  ;;  %1037 = vmatprep.subr.bf16.mxu1 %v6447_v42 }
 0x129   : > { %1503 = vmatprep.subr.bf16.mxu0 %v6450_v43  ;;  %v592_v43 = vrot.slane %v506_v27, %v7743_v32  ;;  %v6480_v27 = vld [vmem:[#allocation5 + $0x28] ss:$16 sps:$4 sm:$0xff]  }
 0x12b   : > { %1038 = vmatpush1.bf16.msra.mxu1 %v6449_v44 }
 0x12c   : > { %1504 = vmatpush1.bf16.msra.mxu0 %v6452_v45  ;;  %1039 = vmatprep.subr.bf16.mxu1 %v6453_v48 }
 0x12d   : > { %1505 = vmatprep.subr.bf16.mxu0 %v6456_v50 }
 0x12f   : > { %1040 = vmatpush1.bf16.msra.mxu1 %v6455_v49 }
 0x130   : > { %1506 = vmatpush1.bf16.msra.mxu0 %v6458_v51  ;;  %1041 = vmatprep.subr.bf16.mxu1 %v6459_v52  ;;  %v7749_v51 = vrot.slane %v596_v38, %v7743_v32 }
 0x131   : > { %1507 = vmatprep.subr.bf16.mxu0 %v6462_v54 }
 0x133   : > { %1042 = vmatpush1.bf16.msra.mxu1 %v6461_v53 }
 0x134   : > { %1508 = vmatpush1.bf16.msra.mxu0 %v6464_v55  ;;  %1043 = vmatprep.subr.bf16.mxu1 %v6465_v56  ;;  %v7755_v55 = vrot.slane %v592_v43, %v7743_v32  ;;  %v6483_v43 = vld [vmem:[#allocation5 + $0x48] ss:$16 sps:$4 sm:$0xff]  }
 0x135   : > { %1509 = vmatprep.subr.bf16.mxu0 %v6468_v58 }
 0x137   : > { %1044 = vmatpush1.bf16.msra.mxu1 %v6467_v57 }
 0x138   : > { %1510 = vmatpush1.bf16.msra.mxu0 %v6470_v59  ;;  %1045 = vmatprep.subr.bf16.mxu1 %v6471_v60 }
 0x139   : > { %1511 = vmatprep.subr.bf16.mxu0 %v6474_v62 }
 0x13b   : > { %1046 = vmatpush1.bf16.msra.mxu1 %v6473_v61 }
 0x13c   : > { %1512 = vmatpush1.bf16.msra.mxu0 %v6476_v63  ;;  %1088 = vmatprep.subr.bf16.mxu1 %v6479_v0 }
 0x18e   : > { %v525_v1 = vpop.xlane.xlu0 %524 }
 0x18f   : > { %v548_v2 = vmul.f32 0.00390625, %v525_v1  ;;  %v531_v7 = vpop.xlane.xlu1 %530 }
 0x190   : > { %v550_v13 = vmul.f32 0.00390625, %v531_v7 }
 0x191   : > { %v556_v14 = vadd.f32 1e-05, %v548_v2 }
 0x192   : > { %v528_v15 = vpop.xlane.xlu0 %527  ;;  %v558_v16 = vadd.f32 1e-05, %v550_v13 }
 0x193   : > { %6685 = vrsqrt.f32 %v556_v14  ;;  %v549_v17 = vmul.f32 0.00390625, %v528_v15  ;;  %v534_v18 = vpop.xlane.xlu1 %533 }
 0x194   : > { %6687 = vrsqrt.f32 %v558_v16  ;;  %v551_v20 = vmul.f32 0.00390625, %v534_v18 }
 0x195   : > { %v557_v22 = vadd.f32 1e-05, %v549_v17  ;;  %v6477_v17 = vld [vmem:[#allocation5 + $0x8] ss:$16 sps:$4 sm:$0xff]  }
 0x196   : > { %v559_v23 = vadd.f32 1e-05, %v551_v20  ;;  %v537_v24 = vpop.xlane.xlu0 %536 }
 0x197   : > { %6689 = vrsqrt.f32 %v557_v22  ;;  %v540_v25 = vpop.xlane.xlu1 %539  ;;  %v552_v26 = vmul.f32 0.00390625, %v537_v24 }
 0x198   : > { %6691 = vrsqrt.f32 %v559_v23  ;;  %v553_v31 = vmul.f32 0.00390625, %v540_v25 }
 0x199   : > { %v560_v33 = vadd.f32 1e-05, %v552_v26 }
 0x19a   : > { %v561_v36 = vadd.f32 1e-05, %v553_v31  ;;  %v543_v37 = vpop.xlane.xlu0 %542 }
 0x19b   : > { %6693 = vrsqrt.f32 %v560_v33  ;;  %v546_v39 = vpop.xlane.xlu1 %545  ;;  %v554_v42 = vmul.f32 0.00390625, %v543_v37  ;;  %v6485_v37 = vld [vmem:[#allocation5 + $0x4c] ss:$16 sps:$4 sm:$0xff]  }
 0x19c   : > { %6695 = vrsqrt.f32 %v561_v36  ;;  %v555_v44 = vmul.f32 0.00390625, %v546_v39 }
 0x19d   : > { %v6686_v45 = vpop.eup %6685  ;;  %v562_v48 = vadd.f32 1e-05, %v554_v42 }
 0x19e   : > { %v6688_v49 = vpop.eup %6687  ;;  %v563_v50 = vadd.f32 1e-05, %v555_v44  ;;  %v573_v53 = vmul.f32 %v6686_v45, %v7673_v4  ;;  %v572_v54 = vmul.f32 %v6686_v45, %v7671_v3 }
 0x19f   : > { %v577_v52 = vmul.f32 %v6688_v49, %v7681_v10  ;;  %6697 = vrsqrt.f32 %v562_v48  ;;  %v576_v13 = vmul.f32 %v6688_v49, %v7679_v9  ;;  %v6488_v49 = vld [vmem:[#allocation5 + $0x6c] ss:$16 sps:$4 sm:$0xff]  }
 0x1a0   : > { %6699 = vrsqrt.f32 %v563_v50  ;;  %v608_v62 = vmul.f32 %v7749_v51, %v573_v53  ;;  %v607_v0 = vmul.f32 %v7755_v55, %v572_v54  ;;  %v6486_v53 = vld [vmem:[#allocation5 + $0x68] ss:$16 sps:$4 sm:$0xff]  }
 0x1a1   : > { %v6690_v56 = vpop.eup %6689  ;;  %v612_v61 = vmul.f32 %v7749_v51, %v577_v52  ;;  %v611_v24 = vmul.f32 %v7755_v55, %v576_v13  ;;  %v6495_v13 = vld [vmem:[#allocation5 + $0xc8] ss:$16 sps:$4 sm:$0xff]  }
 0x1a2   : > { %v6692_v57 = vpop.eup %6691  ;;  %v575_v58 = vmul.f32 %v6690_v56, %v7677_v6  ;;  %v574_v59 = vmul.f32 %v6690_v56, %v7675_v5 }
 0x1a3   : > { %v579_v60 = vmul.f32 %v6692_v57, %v7685_v12  ;;  %v578_v14 = vmul.f32 %v6692_v57, %v7683_v11  ;;  %v6491_v57 = vld [vmem:[#allocation5 + $0x8c] ss:$16 sps:$4 sm:$0xff]  }
 0x1a4   : > { %v610_v63 = vmul.f32 %v7749_v51, %v575_v58  ;;  %v609_v1 = vmul.f32 %v7755_v55, %v574_v59 }
 0x1a5   : > { %v6694_v2 = vpop.eup %6693  ;;  %v614_v7 = vmul.f32 %v7749_v51, %v579_v60  ;;  %v613_v25 = vmul.f32 %v7755_v55, %v578_v14  ;;  %v6500_v14 = vld [vmem:[#allocation5 + $0xec] ss:$16 sps:$4 sm:$0xff]  }
 0x1a6   : > { %v6696_v15 = vpop.eup %6695  ;;  %v7768_v16 = vpack.c.bf16 %v610_v63, %v608_v62  ;;  %v7770_v18 = vpack.c.bf16 %v609_v1, %v607_v0  ;;  %v581_v20 = vmul.f32 %v6694_v2, %v7709_v35  ;;  %v580_v39 = vmul.f32 %v6694_v2, %v7707_v34  ;;  %v6494_v63 = vld [vmem:[#allocation5 + $0xac] ss:$16 sps:$4 sm:$0xff]   ;;  %v6492_v1 = vld [vmem:[#allocation5 + $0xa8] ss:$16 sps:$4 sm:$0xff]  }
 0x1a7   : > { %v7773_v22 = vpack.c.bf16 %v614_v7, %v612_v61  ;;  %v583_v23 = vmul.f32 %v6696_v15, %v7705_v30  ;;  %v7786_v38 = vpack.c.bf16 %v613_v25, %v611_v24  ;;  %v582_v42 = vmul.f32 %v6696_v15, %v7703_v29  ;;  %v6489_v61 = vld [vmem:[#allocation5 + $0x88] ss:$16 sps:$4 sm:$0xff]   ;;  %v6497_v2 = vld [vmem:[#allocation5 + $0xcc] ss:$16 sps:$4 sm:$0xff]  }
 0x1a8   : > { %1047 = vmatprep.mubr.bf16.mxu1 %v7768_v16  ;;  %1513 = vmatprep.mubr.bf16.mxu0 %v7768_v16  ;;  %v616_v31 = vmul.f32 %v7749_v51, %v581_v20  ;;  %v615_v50 = vmul.f32 %v7755_v55, %v580_v39  ;;  %v6503_v15 = vld [vmem:[#allocation5 + $0x10c] ss:$16 sps:$4 sm:$0xff]   ;;  %v6507_v24 = vld [vmem:[#allocation5 + $0x148] ss:$16 sps:$4 sm:$0xff]  }
 0x1a9   : > { %1048 = vmatmul.mubr.bf16.vlgmr.msra.gmra.mrb[0].mxu1 %v7770_v18  ;;  %1514 = vmatmul.mubr.bf16.vlgmr.msra.gmra.mrb[0].mxu0 %v7770_v18  ;;  %v6698_v26 = vpop.eup %6697  ;;  %v618_v33 = vmul.f32 %v7749_v51, %v583_v23  ;;  %v617_v52 = vmul.f32 %v7755_v55, %v582_v42  ;;  %v6506_v20 = vld [vmem:[#allocation5 + $0x12c] ss:$16 sps:$4 sm:$0xff]   ;;  %v6519_v39 = vld [vmem:[#allocation5 + $0x1c8] ss:$16 sps:$4 sm:$0xff]  }
 0x1aa   : > { %1089 = vmatpush1.bf16.msra.mxu1 %v6477_v17  ;;  %1057 = vmatprep.mubr.bf16.mxu1 %v7773_v22  ;;  %v6700_v36 = vpop.eup %6699  ;;  %v585_v45 = vmul.f32 %v6698_v26, %v7725_v47  ;;  %v584_v59 = vmul.f32 %v6698_v26, %v7723_v46  ;;  %v6501_v17 = vld [vmem:[#allocation5 + $0x108] ss:$16 sps:$4 sm:$0xff]   ;;  %v6509_v23 = vld [vmem:[#allocation5 + $0x14c] ss:$16 sps:$4 sm:$0xff]  }
 0x1ab   : > { %1090 = vmatprep.subr.bf16.mxu1 %v6482_v21  ;;  %1523 = vmatprep.mubr.bf16.mxu0 %v7773_v22  ;;  %v7790_v44 = vpack.c.bf16 %v618_v33, %v616_v31  ;;  %v587_v48 = vmul.f32 %v6700_v36, %v7717_v41  ;;  %v7802_v58 = vpack.c.bf16 %v617_v52, %v615_v50  ;;  %v6504_v21 = vld [vmem:[#allocation5 + $0x128] ss:$16 sps:$4 sm:$0xff]   ;;  %v6512_v25 = vld [vmem:[#allocation5 + $0x16c] ss:$16 sps:$4 sm:$0xff]  }
 0x1ac   : > { %v620_v54 = vmul.f32 %v7749_v51, %v585_v45  ;;  %v586_v60 = vmul.f32 %v6700_v36, %v7715_v40  ;;  %v6510_v26 = vld [vmem:[#allocation5 + $0x168] ss:$16 sps:$4 sm:$0xff]   ;;  %v6518_v33 = vld [vmem:[#allocation5 + $0x1ac] ss:$16 sps:$4 sm:$0xff]  }
 0x1ad   : > { %v622_v56 = vmul.f32 %v7749_v51, %v587_v48  ;;  %v619_v51 = vmul.f32 %v7755_v55, %v584_v59  ;;  %v6513_v31 = vld [vmem:[#allocation5 + $0x188] ss:$16 sps:$4 sm:$0xff]   ;;  %v6524_v42 = vld [vmem:[#allocation5 + $0x1ec] ss:$16 sps:$4 sm:$0xff]  }
 0x1ae   : > { %1091 = vmatpush1.bf16.msra.mxu1 %v6480_v27  ;;  %v621_v0 = vmul.f32 %v7755_v55, %v586_v60  ;;  %v6498_v55 = vld [vmem:[#allocation5 + $0xe8] ss:$16 sps:$4 sm:$0xff]   ;;  %v6515_v27 = vld [vmem:[#allocation5 + $0x18c] ss:$16 sps:$4 sm:$0xff]  }
 0x1af   : > { %1092 = vmatprep.subr.bf16.mxu1 %v6485_v37  ;;  %v7806_v62 = vpack.c.bf16 %v622_v56, %v620_v54  ;;  %v6516_v36 = vld [vmem:[#allocation5 + $0x1a8] ss:$16 sps:$4 sm:$0xff]   ;;  %v6521_v37 = vld [vmem:[#allocation5 + $0x1cc] ss:$16 sps:$4 sm:$0xff]  }
 0x1b0   : > { %v7814_v7 = vpack.c.bf16 %v621_v0, %v619_v51  ;;  %v6525_v45 = vld [vmem:[#allocation7 + $0xc8] ss:$12 sps:$4 sm:$0xff]   ;;  %v6528_v50 = vld [vmem:[#allocation7 + $0x20] ss:$12 sps:$4 sm:$0xff]   ;;  %v6529_v52 = vld [vmem:[#allocation7 + $0xf8] ss:$12 sps:$4 sm:$0xff]  }
 0x1b1   : > { %1058 = vmatmul.mubr.bf16.gmra.mrb[4].mxu1 %v7786_v38  ;;  %1524 = vmatmul.mubr.bf16.gmra.mrb[4].mxu0 %v7786_v38  ;;  %v6526_v48 = vld [vmem:[#allocation7 + $0x8] ss:$12 sps:$4 sm:$0xff]   ;;  %v6531_v54 = vld [vmem:[#allocation7 + $0x110] ss:$12 sps:$4 sm:$0xff]   ;;  %v6535_v60 = vld [vmem:[#allocation7 + $0x140] ss:$12 sps:$4 sm:$0xff]  }
 0x1b2   : > { %1093 = vmatpush1.bf16.msra.mxu1 %v6483_v43  ;;  %1067 = vmatprep.mubr.bf16.mxu1 %v7790_v44  ;;  %v6522_v43 = vld [vmem:[#allocation5 + $0x1e8] ss:$16 sps:$4 sm:$0xff]   ;;  %v6532_v56 = vld [vmem:[#allocation7 + $0x50] ss:$12 sps:$4 sm:$0xff]  }
 0x1b3   : > { %1094 = vmatprep.subr.bf16.mxu1 %v6488_v49  ;;  %1533 = vmatprep.mubr.bf16.mxu0 %v7790_v44  ;;  %v6527_v49 = vld [vmem:[#allocation7 + $0xe0] ss:$12 sps:$4 sm:$0xff]   ;;  %v6534_v59 = vld [vmem:[#allocation7 + $0x68] ss:$12 sps:$4 sm:$0xff]   ;;  %v6538_v51 = vld [vmem:[#allocation7 + $0x98] ss:$12 sps:$4 sm:$0xff]  }
 0x1b4   : > { %v6539_v0 = vld [vmem:[#allocation7 + $0x170] ss:$12 sps:$4 sm:$0xff]  }
 0x1b6   : > { %1095 = vmatpush1.bf16.msra.mxu1 %v6486_v53  ;;  %v6530_v53 = vld [vmem:[#allocation7 + $0x38] ss:$12 sps:$4 sm:$0xff]  }
 0x1b7   : > { %1096 = vmatprep.subr.bf16.mxu1 %v6491_v57  ;;  %v6533_v57 = vld [vmem:[#allocation7 + $0x128] ss:$12 sps:$4 sm:$0xff]  }
 0x1b9   : > { %1068 = vmatmul.mubr.bf16.gmra.mrb[8].mxu1 %v7802_v58  ;;  %1534 = vmatmul.mubr.bf16.gmra.mrb[8].mxu0 %v7802_v58 }
 0x1ba   : > { %1097 = vmatpush1.bf16.msra.mxu1 %v6489_v61  ;;  %1077 = vmatprep.mubr.bf16.mxu1 %v7806_v62  ;;  %v6536_v61 = vld [vmem:[#allocation7 + $0x80] ss:$12 sps:$4 sm:$0xff]  }
 0x1bb   : > { %1098 = vmatprep.subr.bf16.mxu1 %v6494_v63  ;;  %1543 = vmatprep.mubr.bf16.mxu0 %v7806_v62  ;;  %v6537_v63 = vld [vmem:[#allocation7 + $0x158] ss:$12 sps:$4 sm:$0xff]  }
 0x1be   : > { %1099 = vmatpush1.bf16.msra.mxu1 %v6492_v1  ;;  %v6540_v1 = vld [vmem:[#allocation7 + $0xb0] ss:$12 sps:$4 sm:$0xff]  }
 0x1bf   : > { %1100 = vmatprep.subr.bf16.mxu1 %v6497_v2  ;;  %v1619_v2 = vld [vmem:[#allocation8] sm:$0xff] }
 0x1c1   : > { %1078 = vmatmul.mubr.bf16.gmra.mrb[12].mxu1 %v7814_v7  ;;  %1544 = vmatmul.mubr.bf16.gmra.mrb[12].mxu0 %v7814_v7 }
 0x1c2   : > { %1101 = vmatpush1.bf16.msra.mxu1 %v6495_v13  ;;  %1120 = vmatprep.mubr.bf16.mxu1 %v7768_v16  ;;  %v1667_v13 = vld [vmem:[#allocation10] sm:$0xff] }
 0x1c3   : > { %1102 = vmatprep.subr.bf16.mxu1 %v6500_v14  ;;  %v1668_v14 = vld [vmem:[#allocation10 + $0x8] sm:$0xff] }
 0x1c6   : > { %1103 = vmatpush1.bf16.msra.mxu1 %v6498_v55 }
 0x1c7   : > { %1104 = vmatprep.subr.bf16.mxu1 %v6503_v15 }
 0x1ca   : > { %1105 = vmatpush1.bf16.msra.mxu1 %v6501_v17  ;;  %v1622_v17 = vld [vmem:[#allocation8 + $0x18] sm:$0xff] }
 0x1cb   : > { %1106 = vmatprep.subr.bf16.mxu1 %v6506_v20 }
 0x1ce   : > { %1107 = vmatpush1.bf16.msra.mxu1 %v6504_v21 }
 0x1cf   : > { %1108 = vmatprep.subr.bf16.mxu1 %v6509_v23  ;;  %v1623_v23 = vld [vmem:[#allocation8 + $0x20] sm:$0xff] }
 0x1d2   : > { %1109 = vmatpush1.bf16.msra.mxu1 %v6507_v24 }
 0x1d3   : > { %1110 = vmatprep.subr.bf16.mxu1 %v6512_v25 }
 0x1d6   : > { %1111 = vmatpush1.bf16.msra.mxu1 %v6510_v26 }
 0x1d7   : > { %1112 = vmatprep.subr.bf16.mxu1 %v6515_v27 }
 0x1da   : > { %1113 = vmatpush1.bf16.msra.mxu1 %v6513_v31 }
 0x1db   : > { %1114 = vmatprep.subr.bf16.mxu1 %v6518_v33 }
 0x1de   : > { %1115 = vmatpush1.bf16.msra.mxu1 %v6516_v36 }
 0x1df   : > { %1116 = vmatprep.subr.bf16.mxu1 %v6521_v37 }
 0x1e2   : > { %1117 = vmatpush1.bf16.msra.mxu1 %v6519_v39 }
 0x1e3   : > { %1118 = vmatprep.subr.bf16.mxu1 %v6524_v42 }
 0x1e6   : > { %1119 = vmatpush1.bf16.msra.mxu1 %v6522_v43 }
 0x1e7   : > { %6003 = vmatprep.subr.bf16.mxu1 %v6525_v45  ;;  %v1625_v45 = vld [vmem:[#allocation8 + $0x30] sm:$0xff] }
 0x1e9   : > { %1121 = vmatmul.mubr.bf16.vlgmr.msra.gmra.mrb[16].mxu1 %v7770_v18 }
 0x1ea   : > { %1130 = vmatprep.mubr.bf16.mxu1 %v7773_v22  ;;  %6004 = vmatpush3.bf16.msra.mxu1 %v6526_v48  ;;  %v1673_v48 = vld [vmem:[#allocation10 + $0x30] sm:$0xff] }
 0x1eb   : > { %6005 = vmatprep.subr.bf16.mxu1 %v6527_v49 }
 0x1ee   : > { %6006 = vmatpush3.bf16.msra.mxu1 %v6528_v50  ;;  %v1626_v50 = vld [vmem:[#allocation8 + $0x38] sm:$0xff] }
 0x1ef   : > { %6007 = vmatprep.subr.bf16.mxu1 %v6529_v52  ;;  %v1674_v52 = vld [vmem:[#allocation10 + $0x38] sm:$0xff] }
 0x1f1   : > { %1131 = vmatmul.mubr.bf16.gmra.mrb[20].mxu1 %v7786_v38 }
 0x1f2   : > { %1140 = vmatprep.mubr.bf16.mxu1 %v7790_v44  ;;  %6008 = vmatpush3.bf16.msra.mxu1 %v6530_v53 }
 0x1f3   : > { %6009 = vmatprep.subr.bf16.mxu1 %v6531_v54 }
 0x1f6   : > { %6010 = vmatpush3.bf16.msra.mxu1 %v6532_v56  ;;  %v1628_v56 = vld [vmem:[#allocation8 + $0x48] sm:$0xff] }
 0x1f7   : > { %6011 = vmatprep.subr.bf16.mxu1 %v6533_v57  ;;  %v1676_v57 = vld [vmem:[#allocation10 + $0x48] sm:$0xff] }
 0x1f9   : > { %1141 = vmatmul.mubr.bf16.gmra.mrb[24].mxu1 %v7802_v58 }
 0x1fa   : > { %1150 = vmatprep.mubr.bf16.mxu1 %v7806_v62  ;;  %6012 = vmatpush3.bf16.msra.mxu1 %v6534_v59 }
 0x1fb   : > { %6013 = vmatprep.subr.bf16.mxu1 %v6535_v60 }
 0x1fe   : > { %6014 = vmatpush3.bf16.msra.mxu1 %v6536_v61 }
 0x1ff   : > { %6015 = vmatprep.subr.bf16.mxu1 %v6537_v63 }
 0x201   : > { %1151 = vmatmul.mubr.bf16.gmra.mrb[28].mxu1 %v7814_v7 }
 0x202   : > { %6016 = vmatpush3.bf16.msra.mxu1 %v6538_v51  ;;  %1586 = vmatprep.mubr.bf16.mxu1 %v7768_v16  ;;  %v1620_v16 = vld [vmem:[#allocation8 + $0x8] sm:$0xff] }
 0x203   : > { %6017 = vmatprep.subr.bf16.mxu1 %v6539_v0  ;;  %v1629_v0 = vld [vmem:[#allocation8 + $0x50] sm:$0xff] }
 0x206   : > { %6018 = vmatpush3.bf16.msra.mxu1 %v6540_v1  ;;  %v1677_v1 = vld [vmem:[#allocation10 + $0x50] sm:$0xff] }
 0x209   : > { %1587 = vmatmul.mubr.bf16.vlgmr.msra.gmra.mrb[32].mxu1 %v7770_v18  ;;  %v1670_v18 = vld [vmem:[#allocation10 + $0x18] sm:$0xff] }
 0x20a   : > { %1594 = vmatprep.mubr.bf16.mxu1 %v7773_v22 }
 0x211   : > { %1595 = vmatmul.mubr.bf16.gmra.mrb[36].mxu1 %v7786_v38 }
 0x212   : > { %1602 = vmatprep.mubr.bf16.mxu1 %v7790_v44  ;;  %v1671_v44 = vld [vmem:[#allocation10 + $0x20] sm:$0xff] }
 0x219   : > { %1603 = vmatmul.mubr.bf16.gmra.mrb[40].mxu1 %v7802_v58 }
 0x21a   : > { %1610 = vmatprep.mubr.bf16.mxu1 %v7806_v62 }
 0x221   : > { %1611 = vmatmul.mubr.bf16.gmra.mrb[44].mxu1 %v7814_v7 }
 0x27c   : > { %v1049_v55 = vpop.f32.mrb[0].mxu1  ;;  %v1515_v15 = vpop.f32.mrb[0].mxu0 }
 0x27d   : > { %v1643_v20 = vmul.f32 %v1619_v2, %v1049_v55  ;;  %v1691_v22 = vmul.f32 %v1667_v13, %v1515_v15  ;;  %v1051_v21 = vpop.f32.mrb[1].mxu1  ;;  %v1517_v38 = vpop.f32.mrb[1].mxu0 }
 0x27e   : > { %v1644_v24 = vmul.f32 %v1620_v16, %v1051_v21  ;;  %v1692_v58 = vmul.f32 %v1668_v14, %v1517_v38  ;;  %v1053_v25 = vpop.f32.mrb[2].mxu1  ;;  %v1519_v62 = vpop.f32.mrb[2].mxu0 }
 0x27f   : > { %v1715_v26 = vadd.f32 %v1691_v22, %v1643_v20  ;;  %v1646_v7 = vmul.f32 %v1622_v17, %v1053_v25  ;;  %v1694_v27 = vmul.f32 %v1670_v18, %v1519_v62  ;;  %v1055_v31 = vpop.f32.mrb[3].mxu1  ;;  %v1521_v33 = vpop.f32.mrb[3].mxu0  ;;  %v1632_v25 = vld [vmem:[#allocation8 + $0x68] sm:$0xff] }
 0x280   : > { %v1716_v36 = vadd.f32 %v1692_v58, %v1644_v24  ;;  %v1647_v37 = vmul.f32 %v1623_v23, %v1055_v31  ;;  %v1695_v39 = vmul.f32 %v1671_v44, %v1521_v33  ;;  %v1631_v24 = vld [vmem:[#allocation8 + $0x60] sm:$0xff]  ;;  %v1680_v62 = vld [vmem:[#allocation10 + $0x68] sm:$0xff]  ;;  %v1634_v31 = vld [vmem:[#allocation8 + $0x78] sm:$0xff] }
 0x281   : > { %v1718_v42 = vadd.f32 %v1694_v27, %v1646_v7  ;;  %v1679_v58 = vld [vmem:[#allocation10 + $0x60] sm:$0xff]  ;;  %v1682_v33 = vld [vmem:[#allocation10 + $0x78] sm:$0xff] }
 0x282   : > { %v1719_v43 = vadd.f32 %v1695_v39, %v1647_v37 }
 0x283   : > { %v7834_v49 = vpack.c.bf16 %v1718_v42, %v1715_v26 }
 0x284   : > { %v1059_v53 = vpop.f32.mrb[4].mxu1  ;;  %v1525_v54 = vpop.f32.mrb[4].mxu0  ;;  %v7836_v59 = vpack.c.bf16 %v1719_v43, %v1716_v36 }
 0x285   : > { %6099 = vmatprep.mubr.msk.bf16.mxu1 %vm1994_vm0, %v7834_v49  ;;  %v1649_v60 = vmul.f32 %v1625_v45, %v1059_v53  ;;  %v1697_v61 = vmul.f32 %v1673_v48, %v1525_v54  ;;  %v1061_v63 = vpop.f32.mrb[5].mxu1  ;;  %v1527_v51 = vpop.f32.mrb[5].mxu0  ;;  %v1635_v45 = vld [vmem:[#allocation8 + $0x80] sm:$0xff] }
 0x286   : > { %v1650_v2 = vmul.f32 %v1626_v50, %v1061_v63  ;;  %v1698_v13 = vmul.f32 %v1674_v52, %v1527_v51  ;;  %v1063_v16 = vpop.f32.mrb[6].mxu1  ;;  %v1529_v14 = vpop.f32.mrb[6].mxu0  ;;  %v1683_v48 = vld [vmem:[#allocation10 + $0x80] sm:$0xff] }
 0x287   : > { %v1721_v55 = vadd.f32 %v1697_v61, %v1649_v60  ;;  %v1652_v15 = vmul.f32 %v1628_v56, %v1063_v16  ;;  %v1700_v17 = vmul.f32 %v1676_v57, %v1529_v14  ;;  %v1065_v18 = vpop.f32.mrb[7].mxu1  ;;  %v1531_v20 = vpop.f32.mrb[7].mxu0  ;;  %v1637_v16 = vld [vmem:[#allocation8 + $0x90] sm:$0xff] }
 0x288   : > { %v1722_v22 = vadd.f32 %v1698_v13, %v1650_v2  ;;  %v1653_v21 = vmul.f32 %v1629_v0, %v1065_v18  ;;  %v1701_v38 = vmul.f32 %v1677_v1, %v1531_v20  ;;  %v1685_v14 = vld [vmem:[#allocation10 + $0x90] sm:$0xff] }
 0x289   : > { %v1724_v23 = vadd.f32 %v1700_v17, %v1652_v15  ;;  %v1686_v15 = vld [vmem:[#allocation10 + $0x98] sm:$0xff] }
 0x28a   : > { %v1725_v44 = vadd.f32 %v1701_v38, %v1653_v21  ;;  %v1688_v21 = vld [vmem:[#allocation10 + $0xa8] sm:$0xff] }
 0x28b   : > { %v7840_v26 = vpack.c.bf16 %v1724_v23, %v1721_v55  ;;  %v1638_v55 = vld [vmem:[#allocation8 + $0x98] sm:$0xff] }
 0x28c   : > { %v1069_v7 = vpop.f32.mrb[8].mxu1  ;;  %v1535_v27 = vpop.f32.mrb[8].mxu0  ;;  %v7842_v36 = vpack.c.bf16 %v1725_v44, %v1722_v22  ;;  %v1640_v22 = vld [vmem:[#allocation8 + $0xa8] sm:$0xff] }
 0x28d   : > { %v1655_v37 = vmul.f32 %v1631_v24, %v1069_v7  ;;  %v1703_v39 = vmul.f32 %v1679_v58, %v1535_v27  ;;  %v1071_v42 = vpop.f32.mrb[9].mxu1  ;;  %v1537_v43 = vpop.f32.mrb[9].mxu0 }
 0x28e   : > { %v1656_v50 = vmul.f32 %v1632_v25, %v1071_v42  ;;  %v1704_v52 = vmul.f32 %v1680_v62, %v1537_v43  ;;  %v1073_v53 = vpop.f32.mrb[10].mxu1  ;;  %v1539_v54 = vpop.f32.mrb[10].mxu0  ;;  %v1641_v25 = vld [vmem:[#allocation8 + $0xb0] sm:$0xff] }
 0x28f   : > { %v1727_v56 = vadd.f32 %v1703_v39, %v1655_v37  ;;  %v1658_v57 = vmul.f32 %v1634_v31, %v1073_v53  ;;  %v1706_v60 = vmul.f32 %v1682_v33, %v1539_v54  ;;  %v1075_v61 = vpop.f32.mrb[11].mxu1  ;;  %v1541_v63 = vpop.f32.mrb[11].mxu0  ;;  %v1689_v62 = vld [vmem:[#allocation10 + $0xb0] sm:$0xff] }
 0x290   : > { %v1728_v51 = vadd.f32 %v1704_v52, %v1656_v50  ;;  %v1659_v0 = vmul.f32 %v1635_v45, %v1075_v61  ;;  %v1707_v1 = vmul.f32 %v1683_v48, %v1541_v63 }
 0x291   : > { %v1730_v2 = vadd.f32 %v1706_v60, %v1658_v57 }
 0x292   : > { %v1731_v13 = vadd.f32 %v1707_v1, %v1659_v0 }
 0x293   : > { %v7844_v17 = vpack.c.bf16 %v1730_v2, %v1727_v56 }
 0x294   : > { %v1079_v18 = vpop.f32.mrb[12].mxu1  ;;  %v1545_v20 = vpop.f32.mrb[12].mxu0  ;;  %v7846_v38 = vpack.c.bf16 %v1731_v13, %v1728_v51 }
 0x295   : > { %v1661_v23 = vmul.f32 %v1637_v16, %v1079_v18  ;;  %v1709_v44 = vmul.f32 %v1685_v14, %v1545_v20  ;;  %v1081_v24 = vpop.f32.mrb[13].mxu1  ;;  %v1547_v58 = vpop.f32.mrb[13].mxu0 }
 0x296   : > { %v1662_v7 = vmul.f32 %v1638_v55, %v1081_v24  ;;  %v1710_v27 = vmul.f32 %v1686_v15, %v1547_v58  ;;  %v1083_v31 = vpop.f32.mrb[14].mxu1  ;;  %v1549_v33 = vpop.f32.mrb[14].mxu0 }
 0x297   : > { %v1733_v37 = vadd.f32 %v1709_v44, %v1661_v23  ;;  %v1664_v39 = vmul.f32 %v1640_v22, %v1083_v31  ;;  %v1712_v42 = vmul.f32 %v1688_v21, %v1549_v33  ;;  %v1085_v43 = vpop.f32.mrb[15].mxu1  ;;  %v1551_v45 = vpop.f32.mrb[15].mxu0 }
 0x298   : > { %v1734_v48 = vadd.f32 %v1710_v27, %v1662_v7  ;;  %v1665_v50 = vmul.f32 %v1641_v25, %v1085_v43  ;;  %v1713_v52 = vmul.f32 %v1689_v62, %v1551_v45  ;;  %v1621_v62 = vld [vmem:[#allocation8 + $0x10] sm:$0xff] }
 0x299   : > { %v1736_v53 = vadd.f32 %v1712_v42, %v1664_v39  ;;  %v1669_v27 = vld [vmem:[#allocation10 + $0x10] sm:$0xff]  ;;  %v1672_v42 = vld [vmem:[#allocation10 + $0x28] sm:$0xff] }
 0x29a   : > { %v1737_v54 = vadd.f32 %v1713_v52, %v1665_v50 }
 0x29b   : > { %v7848_v56 = vpack.c.bf16 %v1736_v53, %v1733_v37  ;;  %v1624_v37 = vld [vmem:[#allocation8 + $0x28] sm:$0xff] }
 0x29c   : > { %v7850_v57 = vpack.c.bf16 %v1737_v54, %v1734_v48 }
 0x2bc   : > { %v1122_v60 = vpop.f32.mrb[16].mxu1 }
 0x2bd   : > { %v1124_v61 = vpop.f32.mrb[17].mxu1  ;;  %v1645_v43 = vmul.f32 %v1621_v62, %v1122_v60 }
 0x2be   : > { %v1126_v63 = vpop.f32.mrb[18].mxu1 }
 0x2bf   : > { %v1128_v51 = vpop.f32.mrb[19].mxu1  ;;  %v1648_v50 = vmul.f32 %v1624_v37, %v1126_v63  ;;  %v1633_v37 = vld [vmem:[#allocation8 + $0x70] sm:$0xff] }
 0x2c0   : > { %v7852_v0 = vpack.c.bf16 %v1128_v51, %v1124_v61  ;;  %v1627_v51 = vld [vmem:[#allocation8 + $0x40] sm:$0xff] }
 0x2c2   : > { %6115 = vmatprep.subr.bf16.mxu0 %v7852_v0 }
 0x2c3   : > { %6116 = vmatpush3.bf16.msra.mxu0 %v7852_v0 }
 0x2c4   : > { %v1132_v1 = vpop.f32.mrb[20].mxu1 }
 0x2c5   : > { %v1134_v2 = vpop.f32.mrb[21].mxu1  ;;  %v1651_v28 = vmul.f32 %v1627_v51, %v1132_v1 }
 0x2c6   : > { %v1136_v13 = vpop.f32.mrb[22].mxu1 }
 0x2c7   : > { %v1138_v16 = vpop.f32.mrb[23].mxu1 }
 0x2c8   : > { %v7856_v14 = vpack.c.bf16 %v1138_v16, %v1134_v2  ;;  %v1675_v16 = vld [vmem:[#allocation10 + $0x40] sm:$0xff] }
 0x2ca   : > { %6117 = vmatprep.subr.bf16.mxu0 %v7856_v14 }
 0x2cb   : > { %6118 = vmatpush3.bf16.msra.mxu0 %v7856_v14 }
 0x2cc   : > { %v1142_v55 = vpop.f32.mrb[24].mxu1 }
 0x2cd   : > { %v1144_v15 = vpop.f32.mrb[25].mxu1 }
 0x2ce   : > { %v7860_v18 = vpop.f32.mrb[26].mxu1 }
 0x2cf   : > { %v1148_v20 = vpop.f32.mrb[27].mxu1 }
 0x2d0   : > { %v7862_v22 = vpack.c.bf16 %v1148_v20, %v1144_v15 }
 0x2d2   : > { %6119 = vmatprep.subr.bf16.mxu0 %v7862_v22 }
 0x2d3   : > { %6120 = vmatpush3.bf16.msra.mxu0 %v7862_v22 }
 0x2d4   : > { %v7866_v21 = vpop.f32.mrb[28].mxu1 }
 0x2d5   : > { %v1154_v23 = vpop.f32.mrb[29].mxu1 }
 0x2d6   : > { %v7868_v44 = vpop.f32.mrb[30].mxu1 }
 0x2d7   : > { %v1158_v24 = vpop.f32.mrb[31].mxu1 }
 0x2d8   : > { %v7870_v58 = vpack.c.bf16 %v1158_v24, %v1154_v23  ;;  %v1630_v24 = vld [vmem:[#allocation8 + $0x58] sm:$0xff] }
 0x2d9   : > { %v1654_v63 = vmul.f32 %v1630_v24, %v1136_v13 }
 0x2da   : > { %6121 = vmatprep.subr.bf16.mxu0 %v7870_v58 }
 0x2db   : > { %6122 = vmatpush3.bf16.msra.mxu0 %v7870_v58 }
 0x2dc   : > { %v6019_v25 = vpop.f32.mrb[32].mxu1 }
 0x2dd   : > { %v6020_v7 = vpop.f32.mrb[33].mxu1 }
 0x2de   : > { %v6021_v31 = vadd.f32 %v6020_v7, %v6019_v25  ;;  %v6022_v33 = vpop.f32.mrb[34].mxu1  ;;  %v1678_v7 = vld [vmem:[#allocation10 + $0x58] sm:$0xff] }
 0x2df   : > { %v6023_v39 = vpop.f32.mrb[35].mxu1 }
 0x2e0   : > { %v1693_v45 = vmul.f32 %v6021_v31, %v1669_v27  ;;  %v6024_v48 = vadd.f32 %v6023_v39, %v6022_v33 }
 0x2e2   : > { %v1717_v52 = vadd.f32 %v1693_v45, %v1645_v43  ;;  %v1696_v53 = vmul.f32 %v6024_v48, %v1672_v42  ;;  %v1681_v42 = vld [vmem:[#allocation10 + $0x70] sm:$0xff]  ;;  %v1636_v48 = vld [vmem:[#allocation8 + $0x88] sm:$0xff] }
 0x2e4   : > { %v1720_v54 = vadd.f32 %v1696_v53, %v1648_v50  ;;  %v6025_v61 = vpop.f32.mrb[36].mxu1  ;;  %v1657_v53 = vmul.f32 %v1633_v37, %v1142_v55 }
 0x2e5   : > { %v6026_v2 = vpop.f32.mrb[37].mxu1 }
 0x2e6   : > { %v6027_v15 = vadd.f32 %v6026_v2, %v6025_v61  ;;  %v6028_v20 = vpop.f32.mrb[38].mxu1  ;;  %v1741_v23 = vpack.c.bf16 %v1720_v54, %v1717_v52  ;;  %v1684_v52 = vld [vmem:[#allocation10 + $0x88] sm:$0xff] }
 0x2e7   : > { %v6029_v25 = vpop.f32.mrb[39].mxu1 }
 0x2e8   : > { %v1699_v8 = vmul.f32 %v6027_v15, %v1675_v16  ;;  %v6030_v32 = vadd.f32 %v6029_v25, %v6028_v20  ;;  %2521 = vrot.lane.b32.xlu0 %v1741_v23, %s7301_s26  ;;  %6203 = vmatprep.subr.msk.bf16.mxu1 %vm1994_vm0, %v1741_v23  ;;  %v2020_v60 = vsel %vm1994_vm0, %v1741_v23, 0  ;;  %v1639_v16 = vld [vmem:[#allocation8 + $0xa0] sm:$0xff]  ;;  %v1642_v25 = vld [vmem:[#allocation8 + $0xb8] sm:$0xff] }
 0x2e9   : > { %6092 = vmatpush3.bf16.xpose.msra.mxu1 %v2020_v60  ;;  %v1687_v15 = vld [vmem:[#allocation10 + $0xa0] sm:$0xff]  ;;  %v1690_v60 = vld [vmem:[#allocation10 + $0xb8] sm:$0xff] }
 0x2ea   : > { %v1723_v62 = vadd.f32 %v1699_v8, %v1651_v28  ;;  %v1702_v27 = vmul.f32 %v6030_v32, %v1678_v7  ;;  %v1660_v28 = vmul.f32 %v1636_v48, %v7860_v18 }
 0x2ec   : > { %v1726_v31 = vadd.f32 %v1702_v27, %v1654_v63  ;;  %v6031_v33 = vpop.f32.mrb[40].mxu1  ;;  %v1663_v63 = vmul.f32 %v1639_v16, %v7866_v21  ;;  %v1666_v27 = vmul.f32 %v1642_v25, %v7868_v44 }
 0x2ed   : > { %v6032_v39 = vpop.f32.mrb[41].mxu1 }
 0x2ee   : > { %v6033_v43 = vadd.f32 %v6032_v39, %v6031_v33  ;;  %v6034_v1 = vpop.f32.mrb[42].mxu1  ;;  %v1744_v45 = vpack.c.bf16 %v1726_v31, %v1723_v62 }
 0x2ef   : > { %v6035_v50 = vpop.f32.mrb[43].mxu1 }
 0x2f0   : > { %v1705_v54 = vmul.f32 %v6033_v43, %v1681_v42  ;;  %v6036_v61 = vadd.f32 %v6035_v50, %v6034_v1  ;;  %2523 = vrot.lane.b32.xlu1 %v1744_v45, %s7301_s26  ;;  %6204 = vmatprep.subr.msk.bf16.mxu1 %vm1994_vm0, %v1744_v45  ;;  %v2023_v8 = vsel %vm1994_vm0, %v1744_v45, 0 }
 0x2f1   : > { %6094 = vmatpush3.bf16.xpose.msra.mxu1 %v2023_v8 }
 0x2f2   : > { %v1729_v32 = vadd.f32 %v1705_v54, %v1657_v53  ;;  %v1708_v13 = vmul.f32 %v6036_v61, %v1684_v52 }
 0x2f4   : > { %v1732_v51 = vadd.f32 %v1708_v13, %v1660_v28  ;;  %v6037_v2 = vpop.f32.mrb[44].mxu1  ;;  %1986 = vrot.lane.b32.xlu1 %v7834_v49, %s7301_s26 }
 0x2f5   : > { %v6038_v55 = vpop.f32.mrb[45].mxu1 }
 0x2f6   : > { %v6039_v20 = vadd.f32 %v6038_v55, %v6037_v2  ;;  %v6040_v23 = vpop.f32.mrb[46].mxu1  ;;  %v1747_v24 = vpack.c.bf16 %v1732_v51, %v1729_v32  ;;  %v9090_v32 = vlaneseq  ;;  %v1776_v51 = vand.u32 63, %v7736_v19 }
 0x2f7   : > { %v6041_v7 = vpop.f32.mrb[47].mxu1 }
 0x2f8   : > { %v1711_v62 = vmul.f32 %v6039_v20, %v1687_v15  ;;  %v6042_v18 = vadd.f32 %v6041_v7, %v6040_v23  ;;  %1988 = vrot.lane.b32.xlu1 %v7840_v26, %s7301_s26  ;;  %2525 = vrot.lane.b32.xlu0 %v1747_v24, %s7301_s26  ;;  %v2026_v49 = vsel %vm1994_vm0, %v1747_v24, 0  ;;  %v7938_v13 = vand.u32 127, %v9090_v32 }
 0x2f9   : > { %6205 = vmatprep.subr.msk.bf16.mxu1 %vm1994_vm0, %v1747_v24 }
 0x2fa   : > { %v1735_v31 = vadd.f32 %v1711_v62, %v1663_v63  ;;  %v1714_v33 = vmul.f32 %v6042_v18, %v1690_v60  ;;  %6096 = vmatpush3.bf16.xpose.msra.mxu1 %v2026_v49  ;;  %vm7948_vm2 = vcmp.le.s32.totalorder %v7938_v13, %v1776_v51  ;;  %v1763_v60 = vadd.s32 56, %v7736_v19 }
 0x2fb   : > { %v1762_v63 = vadd.s32 48, %v7736_v19 }
 0x2fc   : > { %v1738_v37 = vadd.f32 %v1714_v33, %v1666_v27  ;;  %1990 = vrot.lane.b32.xlu1 %v7844_v17, %s7301_s26  ;;  %1992 = vrot.lane.b32.xlu0 %v7848_v56, %s7301_s26  ;;  %v1761_v33 = vadd.s32 40, %v7736_v19 }
 0x2fe   : > { %v1750_v21 = vpack.c.bf16 %v1738_v37, %v1735_v31 }
 0x300   : > { %2527 = vrot.lane.b32.xlu1 %v1750_v21, %s7301_s26  ;;  %2509 = vrot.lane.b32.xlu0 %v7836_v59, %s7301_s26  ;;  %v2029_v39 = vsel %vm1994_vm0, %v1750_v21, 0 }
 0x301   : > { %6206 = vmatprep.subr.msk.bf16.mxu1 %vm1994_vm0, %v1750_v21 }
 0x302   : > { %6098 = vmatpush3.bf16.xpose.msra.mxu1 %v2029_v39 }
 0x304   : > { %2511 = vrot.lane.b32.xlu1 %v7842_v36, %s7301_s26  ;;  %2513 = vrot.lane.b32.xlu0 %v7846_v38, %s7301_s26 }
 0x308   : > { %2515 = vrot.lane.b32.xlu1 %v7850_v57, %s7301_s26 }
 0x309   : > { %6100 = vmatmul.mubr.msk.bf16.vlgmr.msra.gmra.mrb[48].mxu1 %vm1994_vm0, %v7840_v26 }
 0x30a   : > { %6103 = vmatprep.mubr.msk.bf16.mxu1 %vm1994_vm0, %v7844_v17 }
 0x311   : > { %6104 = vmatmul.mubr.msk.bf16.gmra.mrb[52].mxu1 %vm1994_vm0, %v7848_v56 }
 0x35a   : > { %v2522_v44 = vpop.permute.xlu0 %2521 }
 0x35b   : > { %v2554_v42 = vsel %vm1994_vm0, %v2522_v44, 0  ;;  %6207 = vmatprep.subr.msk.bf16.mxu1 %vm1994_vm0, %v2522_v44 }
 0x35c   : > { %6140 = vmatpush3.bf16.xpose.msra.mxu1 %v2554_v42  ;;  %v1825_v42 = vand.u32 63, %v1763_v60 }
 0x35e   : > { %vm7989_vm5 = vcmp.le.s32.totalorder %v7938_v13, %v1825_v42 }
 0x362   : > { %v2524_v43 = vpop.permute.xlu1 %2523 }
 0x363   : > { %v2557_v1 = vsel %vm1994_vm0, %v2524_v43, 0  ;;  %6208 = vmatprep.subr.msk.bf16.mxu1 %vm1994_vm0, %v2524_v43  ;;  %v1818_v43 = vand.u32 63, %v1762_v63  ;;  %v1766_v63 = vadd.s32 80, %v7736_v19 }
 0x364   : > { %6142 = vmatpush3.bf16.xpose.msra.mxu1 %v2557_v1  ;;  %v1760_v1 = vadd.s32 32, %v7736_v19 }
 0x365   : > { %vm7994_vm6 = vcmp.le.s32.totalorder %v7938_v13, %v1818_v43 }
 0x366   : > { %v1987_v45 = vpop.permute.xlu1 %1986 }
 0x367   : > { %6107 = vmatprep.mubr.msk.bf16.mxu1 %vm1994_vm0, %v1987_v45 }
 0x36a   : > { %v1989_v26 = vpop.permute.xlu1 %1988  ;;  %v2526_v17 = vpop.permute.xlu0 %2525 }
 0x36b   : > { %v2560_v48 = vsel %vm1994_vm0, %v2526_v17, 0  ;;  %6108 = vmatmul.mubr.msk.bf16.gmra.mrb[56].mxu1 %vm1994_vm0, %v1989_v26  ;;  %6209 = vmatprep.subr.msk.bf16.mxu1 %vm1994_vm0, %v2526_v17 }
 0x36c   : > { %6144 = vmatpush3.bf16.xpose.msra.mxu1 %v2560_v48  ;;  %v1811_v48 = vand.u32 63, %v1761_v33  ;;  %v1846_v33 = vand.u32 63, %v1766_v63  ;;  %v1769_v63 = vadd.s32 104, %v7736_v19 }
 0x36e   : > { %v1991_v56 = vpop.permute.xlu1 %1990  ;;  %v1993_v50 = vpop.permute.xlu0 %1992  ;;  %vm8001_vm7 = vcmp.le.s32.totalorder %v7938_v13, %v1811_v48  ;;  %vm8039_vm9 = vcmp.le.s32.totalorder %v7938_v13, %v1846_v33 }
 0x36f   : > { %6111 = vmatprep.mubr.msk.bf16.mxu1 %vm1994_vm0, %v1991_v56 }
 0x372   : > { %v2528_v52 = vpop.permute.xlu1 %2527  ;;  %v2510_v54 = vpop.permute.xlu0 %2509 }
 0x373   : > { %v2563_v53 = vsel %vm1994_vm0, %v2528_v52, 0  ;;  %6112 = vmatmul.mubr.msk.bf16.gmra.mrb[60].mxu1 %vm1994_vm0, %v1993_v50  ;;  %6210 = vmatprep.subr.msk.bf16.mxu1 %vm1994_vm0, %v2528_v52 }
 0x374   : > { %6146 = vmatpush3.bf16.xpose.msra.mxu1 %v2563_v53  ;;  %6147 = vmatprep.mubr.msk.bf16.mxu1 %vm1994_vm0, %v7836_v59  ;;  %v1758_v59 = vadd.s32 16, %v7736_v19 }
 0x376   : > { %v2512_v61 = vpop.permute.xlu1 %2511  ;;  %v2514_v8 = vpop.permute.xlu0 %2513 }
 0x37a   : > { %v2516_v28 = vpop.permute.xlu1 %2515 }
 0x37b   : > { %6148 = vmatmul.mubr.msk.bf16.vlgmr.msra.gmra.mrb[64].mxu1 %vm1994_vm0, %v7842_v36  ;;  %v1757_v36 = vadd.s32 8, %v7736_v19 }
 0x37c   : > { %6151 = vmatprep.mubr.msk.bf16.mxu1 %vm1994_vm0, %v7846_v38  ;;  %v1790_v38 = vand.u32 63, %v1758_v59 }
 0x37d   : > { %v1783_v2 = vand.u32 63, %v1757_v36 }
 0x37e   : > { %vm7943_vm1 = vcmp.le.s32.totalorder %v7938_v13, %v1790_v38 }
 0x37f   : > { %vm7959_vm3 = vcmp.le.s32.totalorder %v7938_v13, %v1783_v2 }
 0x383   : > { %6152 = vmatmul.mubr.msk.bf16.gmra.mrb[68].mxu1 %vm1994_vm0, %v7850_v57  ;;  %v1759_v57 = vadd.s32 24, %v7736_v19 }
 0x384   : > { %6155 = vmatprep.mubr.msk.bf16.mxu1 %vm1994_vm0, %v2510_v54 }
 0x385   : > { %v1797_v23 = vand.u32 63, %v1759_v57 }
 0x387   : > { %vm7971_vm4 = vcmp.le.s32.totalorder %v7938_v13, %v1797_v23 }
 0x38b   : > { %6156 = vmatmul.mubr.msk.bf16.gmra.mrb[72].mxu1 %vm1994_vm0, %v2512_v61 }
 0x38c   : > { %6159 = vmatprep.mubr.msk.bf16.mxu1 %vm1994_vm0, %v2514_v8  ;;  %v1804_v8 = vand.u32 63, %v1760_v1 }
 0x38e   : > { %vm8016_vm8 = vcmp.le.s32.totalorder %v7938_v13, %v1804_v8 }
 0x393   : > { %6160 = vmatmul.mubr.msk.bf16.gmra.mrb[76].mxu1 %vm1994_vm0, %v2516_v28 }
 0x3dc   : > { %v6101_v16 = vpop.f32.mrb[48].mxu1 }
 0x3dd   : > { %v2130_v15 = vmul.f32 0.125, %v6101_v16  ;;  %v2065_v20 = vpop.f32.mrb[49].mxu1 }
 0x3de   : > { %v2128_v24 = vmul.f32 0.125, %v2065_v20  ;;  %v6102_v25 = vpop.f32.mrb[50].mxu1 }
 0x3df   : > { %v2068_v62 = vpop.f32.mrb[51].mxu1  ;;  %v7956_v18 = vsel %vm7943_vm1, %v2130_v15, -inf  ;;  %v2131_v37 = vmul.f32 0.125, %v6102_v25 }
 0x3e0   : > { %v2129_v27 = vmul.f32 0.125, %v2068_v62  ;;  %v2166_v31 = vsel %vm1994_vm0, %v7956_v18, -inf  ;;  %v7968_v21 = vsel %vm7948_vm2, %v2128_v24, -inf  ;;  %v1764_v62 = vadd.s32 64, %v7736_v19 }
 0x3e1   : > { %2167 = vmax.xlane.f32.xlu0 %v2166_v31  ;;  %v2160_v17 = vsel %vm1994_vm0, %v7968_v21, -inf  ;;  %v7986_v52 = vsel %vm7971_vm4, %v2131_v37, -inf  ;;  %v1765_v31 = vadd.s32 72, %v7736_v19 }
 0x3e2   : > { %v7977_v44 = vsel %vm7959_vm3, %v2129_v27, -inf  ;;  %v2169_v38 = vsel %vm1994_vm0, %v7986_v52, -inf  ;;  %v1767_v27 = vadd.s32 88, %v7736_v19  ;;  %v1832_v37 = vand.u32 63, %v1764_v62 }
 0x3e3   : > { %v2163_v45 = vsel %vm1994_vm0, %v7977_v44, -inf  ;;  %v1839_v43 = vand.u32 63, %v1765_v31 }
 0x3e4   : > { %2164 = vmax.xlane.f32.xlu1 %v2163_v45  ;;  %v6105_v26 = vpop.f32.mrb[52].mxu1  ;;  %v1853_v42 = vand.u32 63, %v1767_v27  ;;  %vm8045_vm10 = vcmp.le.s32.totalorder %v7938_v13, %v1832_v37 }
 0x3e5   : > { %v2134_v56 = vmul.f32 0.125, %v6105_v26  ;;  %2161 = vmax.xlane.f32.xlu0 %v2160_v17  ;;  %v2081_v50 = vpop.f32.mrb[53].mxu1  ;;  %v1770_v26 = vadd.s32 112, %v7736_v19  ;;  %vm8061_vm12 = vcmp.le.s32.totalorder %v7938_v13, %v1839_v43 }
 0x3e6   : > { %v6106_v53 = vpop.f32.mrb[54].mxu1  ;;  %v2132_v57 = vmul.f32 0.125, %v2081_v50  ;;  %vm8050_vm11 = vcmp.le.s32.totalorder %v7938_v13, %v1853_v42 }
 0x3e7   : > { %v2135_v28 = vmul.f32 0.125, %v6106_v53  ;;  %v2084_v59 = vpop.f32.mrb[55].mxu1  ;;  %v8011_v2 = vsel %vm7994_vm6, %v2134_v56, -inf }
 0x3e8   : > { %v2133_v36 = vmul.f32 0.125, %v2084_v59  ;;  %v2178_v23 = vsel %vm1994_vm0, %v8011_v2, -inf  ;;  %v8028_v24 = vsel %vm8016_vm8, %v2132_v57, -inf  ;;  %v1768_v59 = vadd.s32 96, %v7736_v19 }
 0x3e9   : > { %2170 = vmax.xlane.f32.xlu0 %v2169_v38  ;;  %v8007_v51 = vsel %vm7989_vm5, %v2135_v28, -inf  ;;  %v2172_v60 = vsel %vm1994_vm0, %v8028_v24, -inf  ;;  %v1771_v28 = vadd.s32 120, %v7736_v19 }
 0x3ea   : > { %v2181_v16 = vsel %vm1994_vm0, %v8007_v51, -inf  ;;  %v8022_v20 = vsel %vm8001_vm7, %v2133_v36, -inf  ;;  %v1860_v37 = vand.u32 63, %v1768_v59 }
 0x3eb   : > { %2182 = vmax.xlane.f32.xlu1 %v2181_v16  ;;  %v2175_v25 = vsel %vm1994_vm0, %v8022_v20, -inf  ;;  %v9113_v16 = vmov 0  ;;  %v1881_v33 = vand.u32 63, %v1771_v28 }
 0x3ec   : > { %v9114_v16 = vsel %vm8061_vm12, 4294967295, %v9113_v16  ;;  %vm8097_vm15 = vcmp.le.s32.totalorder %v7938_v13, %v1860_v37 }
 0x3ed   : > { %2179 = vmax.xlane.f32.xlu0 %v2178_v23  ;;  %vm8092_vm14 = vcmp.le.s32.totalorder %v7938_v13, %v1881_v33 }
 0x3ef   : > { %2176 = vmax.xlane.f32.xlu1 %v2175_v25 }
 0x3f1   : > { %2173 = vmax.xlane.f32.xlu0 %v2172_v60  ;;  %v1874_v60 = vand.u32 63, %v1770_v26 }
 0x3f3   : > { %vm8085_vm13 = vcmp.le.s32.totalorder %v7938_v13, %v1874_v60 }
 0x43e   : > { %v6109_v1 = vpop.f32.mrb[56].mxu1 }
 0x43f   : > { %v2138_v17 = vmul.f32 0.125, %v6109_v1  ;;  %v2097_v48 = vpop.f32.mrb[57].mxu1 }
 0x440   : > { %v2136_v50 = vmul.f32 0.125, %v2097_v48  ;;  %v6110_v53 = vpop.f32.mrb[58].mxu1 }
 0x441   : > { %v2139_v36 = vmul.f32 0.125, %v6110_v53  ;;  %v2100_v38 = vpop.f32.mrb[59].mxu1  ;;  %v8058_v57 = vsel %vm8039_vm9, %v2138_v17, -inf  ;;  %v1867_v17 = vand.u32 63, %v1769_v63 }
 0x442   : > { %v2137_v23 = vmul.f32 0.125, %v2100_v38  ;;  %v2190_v25 = vsel %vm1994_vm0, %v8058_v57, -inf  ;;  %v8074_v27 = vsel %vm8045_vm10, %v2136_v50, -inf }
 0x443   : > { %2191 = vmax.xlane.f32.xlu0 %v2190_v25  ;;  %v8070_v62 = vsel %vm8050_vm11, %v2139_v36, -inf  ;;  %v2184_v1 = vsel %vm1994_vm0, %v8074_v27, -inf }
 0x444   : > { %v2193_v31 = vsel %vm1994_vm0, %v8070_v62, -inf  ;;  %v8080_v42 = vsel %vm8061_vm12, %v2137_v23, -inf  ;;  %vm8108_vm12 = vcmp.le.s32.totalorder %v7938_v13, %v1867_v17 }
 0x445   : > { %2194 = vmax.xlane.f32.xlu1 %v2193_v31  ;;  %v2187_v59 = vsel %vm1994_vm0, %v8080_v42, -inf }
 0x446   : > { %v6113_v43 = vpop.f32.mrb[60].mxu1 }
 0x447   : > { %v2142_v48 = vmul.f32 0.125, %v6113_v43  ;;  %2185 = vmax.xlane.f32.xlu0 %v2184_v1  ;;  %v2113_v50 = vpop.f32.mrb[61].mxu1 }
 0x448   : > { %v2140_v53 = vmul.f32 0.125, %v2113_v50  ;;  %v6114_v28 = vpop.f32.mrb[62].mxu1 }
 0x449   : > { %v2143_v23 = vmul.f32 0.125, %v6114_v28  ;;  %2188 = vmax.xlane.f32.xlu1 %v2187_v59  ;;  %v2116_v25 = vpop.f32.mrb[63].mxu1  ;;  %v8103_v60 = vsel %vm8085_vm13, %v2142_v48, -inf }
 0x44a   : > { %v2141_v63 = vmul.f32 0.125, %v2116_v25  ;;  %v2202_v31 = vsel %vm1994_vm0, %v8103_v60, -inf  ;;  %v8118_v43 = vsel %vm8097_vm15, %v2140_v53, -inf }
 0x44b   : > { %2203 = vmax.xlane.f32.xlu0 %v2202_v31  ;;  %v8114_v37 = vsel %vm8092_vm14, %v2143_v23, -inf  ;;  %v2196_v17 = vsel %vm1994_vm0, %v8118_v43, -inf }
 0x44c   : > { %v2205_v1 = vsel %vm1994_vm0, %v8114_v37, -inf  ;;  %v8124_v48 = vsel %vm8108_vm12, %v2141_v63, -inf }
 0x44d   : > { %2206 = vmax.xlane.f32.xlu1 %v2205_v1  ;;  %v2199_v53 = vsel %vm1994_vm0, %v8124_v48, -inf }
 0x44e   : > { %v6149_v13 = vpop.f32.mrb[64].mxu1 }
 0x44f   : > { %v2664_v50 = vmul.f32 0.125, %v6149_v13  ;;  %2197 = vmax.xlane.f32.xlu0 %v2196_v17  ;;  %v2599_v28 = vpop.f32.mrb[65].mxu1 }
 0x450   : > { %v2662_v59 = vmul.f32 0.125, %v2599_v28  ;;  %v6150_v23 = vpop.f32.mrb[66].mxu1 }
 0x451   : > { %v2665_v25 = vmul.f32 0.125, %v6150_v23  ;;  %v2602_v31 = vpop.f32.mrb[67].mxu1  ;;  %2200 = vmax.xlane.f32.xlu1 %v2199_v53  ;;  %v8132_v1 = vsel %vm7943_vm1, %v2664_v50, -inf  ;;  %vm9123_vm1 = vnez %v9114_v16 }
 0x452   : > { %v2663_v63 = vmul.f32 0.125, %v2602_v31  ;;  %v2700_v19 = vsel %vm1994_vm0, %v8132_v1, -inf  ;;  %v8142_v17 = vsel %vm7948_vm2, %v2662_v59, -inf }
 0x453   : > { %2701 = vmax.xlane.f32.xlu0 %v2700_v19  ;;  %v8138_v13 = vsel %vm7971_vm4, %v2665_v25, -inf  ;;  %v2694_v19 = vsel %vm1994_vm0, %v8142_v17, -inf }
 0x454   : > { %v2703_v28 = vsel %vm1994_vm0, %v8138_v13, -inf  ;;  %v8148_v55 = vsel %vm7959_vm3, %v2663_v63, -inf }
 0x455   : > { %2704 = vmax.xlane.f32.xlu1 %v2703_v28  ;;  %v2697_v7 = vsel %vm1994_vm0, %v8148_v55, -inf }
 0x456   : > { %v6153_v50 = vpop.f32.mrb[68].mxu1 }
 0x457   : > { %v2668_v23 = vmul.f32 0.125, %v6153_v50  ;;  %2695 = vmax.xlane.f32.xlu0 %v2694_v19  ;;  %v2615_v39 = vpop.f32.mrb[69].mxu1 }
 0x458   : > { %v2666_v53 = vmul.f32 0.125, %v2615_v39  ;;  %v6154_v25 = vpop.f32.mrb[70].mxu1 }
 0x459   : > { %v2669_v59 = vmul.f32 0.125, %v6154_v25  ;;  %v2618_v31 = vpop.f32.mrb[71].mxu1  ;;  %2698 = vmax.xlane.f32.xlu1 %v2697_v7  ;;  %v8156_v49 = vsel %vm7994_vm6, %v2668_v23, -inf }
 0x45a   : > { %v2667_v63 = vmul.f32 0.125, %v2618_v31  ;;  %v2712_v28 = vsel %vm1994_vm0, %v8156_v49, -inf  ;;  %v8166_v19 = vsel %vm8016_vm8, %v2666_v53, -inf }
 0x45b   : > { %2713 = vmax.xlane.f32.xlu0 %v2712_v28  ;;  %v8162_v50 = vsel %vm7989_vm5, %v2669_v59, -inf  ;;  %v2706_v25 = vsel %vm1994_vm0, %v8166_v19, -inf }
 0x45c   : > { %v2715_v39 = vsel %vm1994_vm0, %v8162_v50, -inf  ;;  %v8172_v61 = vsel %vm8001_vm7, %v2667_v63, -inf }
 0x45d   : > { %2716 = vmax.xlane.f32.xlu1 %v2715_v39  ;;  %v2709_v15 = vsel %vm1994_vm0, %v8172_v61, -inf }
 0x45e   : > { %v6157_v23 = vpop.f32.mrb[72].mxu1 }
 0x45f   : > { %v2672_v7 = vmul.f32 0.125, %v6157_v23  ;;  %2707 = vmax.xlane.f32.xlu0 %v2706_v25  ;;  %v2631_v54 = vpop.f32.mrb[73].mxu1 }
 0x460   : > { %v2670_v59 = vmul.f32 0.125, %v2631_v54  ;;  %v6158_v31 = vpop.f32.mrb[74].mxu1 }
 0x461   : > { %v2673_v53 = vmul.f32 0.125, %v6158_v31  ;;  %v2634_v28 = vpop.f32.mrb[75].mxu1  ;;  %2710 = vmax.xlane.f32.xlu1 %v2709_v15  ;;  %v8180_v32 = vsel %vm8039_vm9, %v2672_v7, -inf }
 0x462   : > { %v2671_v63 = vmul.f32 0.125, %v2634_v28  ;;  %v2724_v39 = vsel %vm1994_vm0, %v8180_v32, -inf  ;;  %v8190_v25 = vsel %vm8045_vm10, %v2670_v59, -inf }
 0x463   : > { %2725 = vmax.xlane.f32.xlu0 %v2724_v39  ;;  %v8186_v23 = vsel %vm8050_vm11, %v2673_v53, -inf  ;;  %v2718_v31 = vsel %vm1994_vm0, %v8190_v25, -inf }
 0x464   : > { %v2727_v54 = vsel %vm1994_vm0, %v8186_v23, -inf  ;;  %v8196_v45 = vsel %vm9123_vm1, %v2671_v63, -inf }
 0x465   : > { %2728 = vmax.xlane.f32.xlu1 %v2727_v54  ;;  %v2721_v56 = vsel %vm1994_vm0, %v8196_v45, -inf }
 0x466   : > { %v6161_v7 = vpop.f32.mrb[76].mxu1 }
 0x467   : > { %v2676_v15 = vmul.f32 0.125, %v6161_v7  ;;  %2719 = vmax.xlane.f32.xlu0 %v2718_v31  ;;  %v2647_v8 = vpop.f32.mrb[77].mxu1 }
 0x468   : > { %v2674_v53 = vmul.f32 0.125, %v2647_v8  ;;  %v6162_v28 = vpop.f32.mrb[78].mxu1 }
 0x469   : > { %v2677_v59 = vmul.f32 0.125, %v6162_v28  ;;  %v2650_v39 = vpop.f32.mrb[79].mxu1  ;;  %2722 = vmax.xlane.f32.xlu1 %v2721_v56  ;;  %v8204_v16 = vsel %vm8085_vm13, %v2676_v15, -inf }
 0x46a   : > { %v2675_v63 = vmul.f32 0.125, %v2650_v39  ;;  %v8208_v54 = vsel %vm8097_vm15, %v2674_v53, -inf }
 0x46b   : > { %v8212_v7 = vsel %vm8092_vm14, %v2677_v59, -inf }
 0x46c   : > { %v2739_v31 = vsel %vm1994_vm0, %v8212_v7, -inf  ;;  %v8218_v8 = vsel %vm8108_vm12, %v2675_v63, -inf }
 0x46d   : > { %2740 = vmax.xlane.f32.xlu1 %v2739_v31  ;;  %v2733_v15 = vsel %vm1994_vm0, %v8218_v8, -inf }
 0x46e   : > { %v2168_v26 = vpop.xlane.xlu0 %2167 }
 0x471   : > { %2734 = vmax.xlane.f32.xlu1 %v2733_v15  ;;  %v2165_v38 = vpop.xlane.xlu1 %2164 }
 0x472   : > { %v2162_v53 = vpop.xlane.xlu0 %2161  ;;  %v2209_v28 = vsub.f32 %v7977_v44, %v2165_v38 }
 0x474   : > { %v2226_v39 = vmul.f32 1.442695, %v2209_v28 }
 0x476   : > { %v2171_v36 = vpop.xlane.xlu0 %2170 }
 0x477   : > { %v2211_v56 = vsub.f32 %v7986_v52, %v2171_v36 }
 0x478   : > { %v2183_v59 = vpop.xlane.xlu1 %2182 }
 0x479   : > { %v2230_v41 = vmul.f32 1.442695, %v2211_v56  ;;  %v2215_v31 = vsub.f32 %v8007_v51, %v2183_v59  ;;  %v2208_v56 = vsub.f32 %v7968_v21, %v2162_v53  ;;  %v2730_v21 = vsel %vm1994_vm0, %v8208_v54, -inf }
 0x47a   : > { %v2180_v28 = vpop.xlane.xlu0 %2179 }
 0x47b   : > { %6701 = vpow2.f32 %v2230_v41  ;;  %v2238_v63 = vmul.f32 1.442695, %v2215_v31  ;;  %v2214_v31 = vsub.f32 %v8011_v2, %v2180_v28 }
 0x47c   : > { %v2177_v33 = vpop.xlane.xlu1 %2176  ;;  %6703 = vpow2.f32 %v2226_v39  ;;  %v2224_v39 = vmul.f32 1.442695, %v2208_v56 }
 0x47d   : > { %v2213_v40 = vsub.f32 %v8022_v20, %v2177_v33  ;;  %2882 = vrot.lane.b32.xlu0 %v7852_v0, %s7301_s26  ;;  %6705 = vpow2.f32 %v2238_v63  ;;  %v2210_v20 = vsub.f32 %v7956_v18, %v2168_v26  ;;  %v2236_v18 = vmul.f32 1.442695, %v2214_v31 }
 0x47e   : > { %v2174_v33 = vpop.xlane.xlu0 %2173  ;;  %v2736_v63 = vsel %vm1994_vm0, %v8204_v16, -inf }
 0x47f   : > { %v2234_v15 = vmul.f32 1.442695, %v2213_v40  ;;  %v2228_v36 = vmul.f32 1.442695, %v2210_v20  ;;  %v2212_v26 = vsub.f32 %v8028_v24, %v2174_v33 }
 0x481   : > { %6707 = vpow2.f32 %v2234_v15  ;;  %v2232_v15 = vmul.f32 1.442695, %v2212_v26 }
 0x482   : > { %6709 = vpow2.f32 %v2228_v36 }
 0x483   : > { %6711 = vpow2.f32 %v2224_v39 }
 0x484   : > { %6713 = vpow2.f32 %v2236_v18 }
 0x485   : > { %v8228_v44 = vpop.eup %6701  ;;  %6715 = vpow2.f32 %v2232_v15 }
 0x486   : > { %v2265_v52 = vsel %vm1994_vm0, %v8228_v44, 0.0  ;;  %v8232_v38 = vpop.eup %6703 }
 0x487   : > { %2266 = vadd.xlane.f32.xlu1 %v2265_v52  ;;  %v2259_v41 = vsel %vm1994_vm0, %v8232_v38, 0.0  ;;  %v8236_v51 = vpop.eup %6705 }
 0x488   : > { %v2277_v40 = vsel %vm1994_vm0, %v8236_v51, 0.0 }
 0x48b   : > { %2260 = vadd.xlane.f32.xlu1 %v2259_v41  ;;  %v8241_v0 = vpop.eup %6707 }
 0x48c   : > { %v2271_v59 = vsel %vm1994_vm0, %v8241_v0, 0.0  ;;  %v8252_v53 = vpop.eup %6709 }
 0x48d   : > { %v2262_v2 = vsel %vm1994_vm0, %v8252_v53, 0.0  ;;  %v8256_v52 = vpop.eup %6711 }
 0x48e   : > { %v2256_v24 = vsel %vm1994_vm0, %v8256_v52, 0.0  ;;  %v8260_v41 = vpop.eup %6713 }
 0x48f   : > { %2278 = vadd.xlane.f32.xlu1 %v2277_v40  ;;  %v2274_v20 = vsel %vm1994_vm0, %v8260_v41, 0.0  ;;  %v8264_v40 = vpop.eup %6715 }
 0x490   : > { %v2268_v28 = vsel %vm1994_vm0, %v8264_v40, 0.0 }
 0x493   : > { %2272 = vadd.xlane.f32.xlu1 %v2271_v59 }
 0x49c   : > { %2737 = vmax.xlane.f32.xlu0 %v2736_v63 }
 0x4a0   : > { %2731 = vmax.xlane.f32.xlu0 %v2730_v21 }
 0x4a4   : > { %2263 = vadd.xlane.f32.xlu0 %v2262_v2 }
 0x4a8   : > { %2257 = vadd.xlane.f32.xlu0 %v2256_v24 }
 0x4ac   : > { %2275 = vadd.xlane.f32.xlu0 %v2274_v20 }
 0x4b0   : > { %2269 = vadd.xlane.f32.xlu0 %v2268_v28 }
 0x4d0   : > { %v2192_v36 = vpop.xlane.xlu0 %2191 }
 0x4d1   : > { %v2218_v56 = vsub.f32 %v8058_v57, %v2192_v36 }
 0x4d2   : > { %v2195_v59 = vpop.xlane.xlu1 %2194 }
 0x4d3   : > { %v2244_v39 = vmul.f32 1.442695, %v2218_v56  ;;  %v2219_v31 = vsub.f32 %v8070_v62, %v2195_v59 }
 0x4d4   : > { %v2186_v33 = vpop.xlane.xlu0 %2185 }
 0x4d5   : > { %6717 = vpow2.f32 %v2244_v39  ;;  %v2246_v18 = vmul.f32 1.442695, %v2219_v31  ;;  %v2216_v26 = vsub.f32 %v8074_v27, %v2186_v33 }
 0x4d6   : > { %v2189_v63 = vpop.xlane.xlu1 %2188 }
 0x4d7   : > { %6719 = vpow2.f32 %v2246_v18  ;;  %v2240_v15 = vmul.f32 1.442695, %v2216_v26  ;;  %v2217_v21 = vsub.f32 %v8080_v42, %v2189_v63 }
 0x4d8   : > { %v2204_v2 = vpop.xlane.xlu0 %2203 }
 0x4d9   : > { %6721 = vpow2.f32 %v2240_v15  ;;  %v2242_v24 = vmul.f32 1.442695, %v2217_v21  ;;  %v2222_v20 = vsub.f32 %v8103_v60, %v2204_v2 }
 0x4da   : > { %v2207_v57 = vpop.xlane.xlu1 %2206 }
 0x4db   : > { %6723 = vpow2.f32 %v2242_v24  ;;  %v2252_v28 = vmul.f32 1.442695, %v2222_v20  ;;  %v2223_v62 = vsub.f32 %v8114_v37, %v2207_v57 }
 0x4dc   : > { %v2198_v36 = vpop.xlane.xlu0 %2197 }
 0x4dd   : > { %6725 = vpow2.f32 %v2252_v28  ;;  %v2254_v56 = vmul.f32 1.442695, %v2223_v62  ;;  %v2220_v27 = vsub.f32 %v8118_v43, %v2198_v36 }
 0x4de   : > { %v2201_v59 = vpop.xlane.xlu1 %2200 }
 0x4df   : > { %v8275_v39 = vpop.eup %6717  ;;  %6727 = vpow2.f32 %v2254_v56  ;;  %v2248_v42 = vmul.f32 1.442695, %v2220_v27  ;;  %v2221_v31 = vsub.f32 %v8124_v48, %v2201_v59 }
 0x4e0   : > { %v2702_v33 = vpop.xlane.xlu0 %2701  ;;  %v2286_v60 = vsel %vm1994_vm0, %v8275_v39, 0.0 }
 0x4e1   : > { %v8280_v18 = vpop.eup %6719  ;;  %6729 = vpow2.f32 %v2248_v42  ;;  %v2250_v37 = vmul.f32 1.442695, %v2221_v31  ;;  %v2744_v26 = vsub.f32 %v8132_v1, %v2702_v33  ;;  %2287 = vadd.xlane.f32.xlu0 %v2286_v60 }
 0x4e2   : > { %v2705_v63 = vpop.xlane.xlu1 %2704  ;;  %v2289_v43 = vsel %vm1994_vm0, %v8280_v18, 0.0 }
 0x4e3   : > { %v8285_v15 = vpop.eup %6721  ;;  %6731 = vpow2.f32 %v2250_v37  ;;  %v2762_v21 = vmul.f32 1.442695, %v2744_v26  ;;  %v2745_v48 = vsub.f32 %v8138_v13, %v2705_v63  ;;  %2290 = vadd.xlane.f32.xlu1 %v2289_v43 }
 0x4e4   : > { %v2696_v2 = vpop.xlane.xlu0 %2695  ;;  %v2280_v24 = vsel %vm1994_vm0, %v8285_v15, 0.0 }
 0x4e5   : > { %v8290_v20 = vpop.eup %6723  ;;  %6733 = vpow2.f32 %v2762_v21  ;;  %v2764_v1 = vmul.f32 1.442695, %v2745_v48  ;;  %v2742_v57 = vsub.f32 %v8142_v17, %v2696_v2  ;;  %2281 = vadd.xlane.f32.xlu0 %v2280_v24 }
 0x4e6   : > { %v2699_v28 = vpop.xlane.xlu1 %2698  ;;  %v2283_v62 = vsel %vm1994_vm0, %v8290_v20, 0.0 }
 0x4e7   : > { %v8295_v36 = vpop.eup %6725  ;;  %6735 = vpow2.f32 %v2764_v1  ;;  %v2758_v13 = vmul.f32 1.442695, %v2742_v57  ;;  %v2743_v56 = vsub.f32 %v8148_v55, %v2699_v28  ;;  %2284 = vadd.xlane.f32.xlu1 %v2283_v62 }
 0x4e8   : > { %v2714_v27 = vpop.xlane.xlu0 %2713  ;;  %v2298_v59 = vsel %vm1994_vm0, %v8295_v36, 0.0 }
 0x4e9   : > { %v8300_v42 = vpop.eup %6727  ;;  %6737 = vpow2.f32 %v2758_v13  ;;  %v2760_v17 = vmul.f32 1.442695, %v2743_v56  ;;  %v2748_v31 = vsub.f32 %v8156_v49, %v2714_v27  ;;  %2299 = vadd.xlane.f32.xlu0 %v2298_v59 }
 0x4ea   : > { %v2717_v33 = vpop.xlane.xlu1 %2716  ;;  %v2301_v60 = vsel %vm1994_vm0, %v8300_v42, 0.0 }
 0x4eb   : > { %v8305_v37 = vpop.eup %6729  ;;  %6739 = vpow2.f32 %v2760_v17  ;;  %v2770_v55 = vmul.f32 1.442695, %v2748_v31  ;;  %v2749_v26 = vsub.f32 %v8162_v50, %v2717_v33  ;;  %2302 = vadd.xlane.f32.xlu1 %v2301_v60 }
 0x4ec   : > { %v2708_v63 = vpop.xlane.xlu0 %2707  ;;  %v2292_v43 = vsel %vm1994_vm0, %v8305_v37, 0.0 }
 0x4ed   : > { %v8310_v21 = vpop.eup %6731  ;;  %6741 = vpow2.f32 %v2770_v55  ;;  %v2772_v49 = vmul.f32 1.442695, %v2749_v26  ;;  %v2746_v48 = vsub.f32 %v8166_v19, %v2708_v63  ;;  %2293 = vadd.xlane.f32.xlu0 %v2292_v43 }
 0x4ee   : > { %v2711_v2 = vpop.xlane.xlu1 %2710  ;;  %v2295_v24 = vsel %vm1994_vm0, %v8310_v21, 0.0 }
 0x4ef   : > { %v8315_v1 = vpop.eup %6733  ;;  %6743 = vpow2.f32 %v2772_v49  ;;  %v2766_v50 = vmul.f32 1.442695, %v2746_v48  ;;  %v2747_v57 = vsub.f32 %v8172_v61, %v2711_v2  ;;  %2296 = vadd.xlane.f32.xlu1 %v2295_v24 }
 0x4f0   : > { %v2726_v28 = vpop.xlane.xlu0 %2725  ;;  %v2796_v62 = vsel %vm1994_vm0, %v8315_v1, 0.0 }
 0x4f1   : > { %v8320_v13 = vpop.eup %6735  ;;  %6745 = vpow2.f32 %v2766_v50  ;;  %v2768_v19 = vmul.f32 1.442695, %v2747_v57  ;;  %v2752_v56 = vsub.f32 %v8180_v32, %v2726_v28  ;;  %2797 = vadd.xlane.f32.xlu0 %v2796_v62 }
 0x4f2   : > { %v2729_v27 = vpop.xlane.xlu1 %2728  ;;  %v2799_v59 = vsel %vm1994_vm0, %v8320_v13, 0.0 }
 0x4f3   : > { %v8325_v17 = vpop.eup %6737  ;;  %6747 = vpow2.f32 %v2768_v19  ;;  %v2778_v61 = vmul.f32 1.442695, %v2752_v56  ;;  %2800 = vadd.xlane.f32.xlu1 %v2799_v59  ;;  %v2753_v55 = vsub.f32 %v8186_v23, %v2729_v27 }
 0x4f4   : > { %v2720_v31 = vpop.xlane.xlu0 %2719  ;;  %v2790_v33 = vsel %vm1994_vm0, %v8325_v17, 0.0 }
 0x4f5   : > { %v8329_v60 = vpop.eup %6739  ;;  %6749 = vpow2.f32 %v2778_v61  ;;  %v2750_v32 = vsub.f32 %v8190_v25, %v2720_v31  ;;  %2791 = vadd.xlane.f32.xlu0 %v2790_v33  ;;  %v2780_v50 = vmul.f32 1.442695, %v2753_v55 }
 0x4f6   : > { %v2723_v26 = vpop.xlane.xlu1 %2722  ;;  %v2793_v63 = vsel %vm1994_vm0, %v8329_v60, 0.0 }
 0x4f7   : > { %v8335_v43 = vpop.eup %6741  ;;  %v2774_v49 = vmul.f32 1.442695, %v2750_v32  ;;  %2794 = vadd.xlane.f32.xlu1 %v2793_v63  ;;  %v2751_v23 = vsub.f32 %v8196_v45, %v2723_v26 }
 0x4f8   : > { %v8337_v48 = vpop.permute.xlu0 %2882  ;;  %v2808_v2 = vsel %vm1994_vm0, %v8335_v43, 0.0 }
 0x4f9   : > { %v8341_v24 = vpop.eup %6743  ;;  %6751 = vpow2.f32 %v2774_v49  ;;  %6163 = vmatprep.subr.bf16.mxu0 %v8337_v48  ;;  %2809 = vadd.xlane.f32.xlu0 %v2808_v2  ;;  %v2776_v19 = vmul.f32 1.442695, %v2751_v23 }
 0x4fa   : > { %v2811_v25 = vsel %vm1994_vm0, %v8341_v24, 0.0  ;;  %6753 = vpow2.f32 %v2780_v50  ;;  %v2741_v26 = vpop.xlane.xlu1 %2740 }
 0x4fb   : > { %v8347_v57 = vpop.eup %6745  ;;  %2812 = vadd.xlane.f32.xlu1 %v2811_v25  ;;  %6755 = vpow2.f32 %v2776_v19 }
 0x4fc   : > { %v2802_v28 = vsel %vm1994_vm0, %v8347_v57, 0.0 }
 0x4fd   : > { %v8351_v62 = vpop.eup %6747  ;;  %2803 = vadd.xlane.f32.xlu0 %v2802_v28 }
 0x4fe   : > { %v2805_v45 = vsel %vm1994_vm0, %v8351_v62, 0.0  ;;  %v2735_v63 = vpop.xlane.xlu1 %2734 }
 0x4ff   : > { %v8355_v56 = vpop.eup %6749  ;;  %2806 = vadd.xlane.f32.xlu1 %v2805_v45  ;;  %v2755_v2 = vsub.f32 %v8218_v8, %v2735_v63 }
 0x500   : > { %v2820_v27 = vsel %vm1994_vm0, %v8355_v56, 0.0 }
 0x501   : > { %v2784_v23 = vmul.f32 1.442695, %v2755_v2 }
 0x503   : > { %v8359_v59 = vpop.eup %6751  ;;  %2821 = vadd.xlane.f32.xlu1 %v2820_v27  ;;  %6757 = vpow2.f32 %v2784_v23 }
 0x504   : > { %v2814_v61 = vsel %vm1994_vm0, %v8359_v59, 0.0  ;;  %v8363_v31 = vpop.eup %6753 }
 0x505   : > { %v2823_v33 = vsel %vm1994_vm0, %v8363_v31, 0.0  ;;  %v8367_v55 = vpop.eup %6755 }
 0x506   : > { %v2817_v32 = vsel %vm1994_vm0, %v8367_v55, 0.0 }
 0x507   : > { %2815 = vadd.xlane.f32.xlu1 %v2814_v61 }
 0x50b   : > { %2824 = vadd.xlane.f32.xlu1 %v2823_v33 }
 0x50d   : > { %v8381_v63 = vpop.eup %6757 }
 0x50f   : > { %2818 = vadd.xlane.f32.xlu1 %v2817_v32 }
 0x513   : > { %2886 = vrot.lane.b32.xlu0 %v7862_v22, %s7301_s26  ;;  %v2757_v22 = vsub.f32 %v8212_v7, %v2741_v26 }
 0x514   : > { %v2267_v49 = vpop.xlane.xlu1 %2266 }
 0x515   : > { %v2788_v33 = vmul.f32 1.442695, %v2757_v22 }
 0x517   : > { %2888 = vrot.lane.b32.xlu0 %v7870_v58, %s7301_s26 }
 0x518   : > { %v2261_v28 = vpop.xlane.xlu1 %2260 }
 0x519   : > { %6759 = vrcp.f32 %v2261_v28 }
 0x520   : > { %2884 = vrot.lane.b32.xlu1 %v7856_v14, %s7301_s26  ;;  %v2279_v14 = vpop.xlane.xlu1 %2278 }
 0x529   : > { %v2738_v50 = vpop.xlane.xlu0 %2737 }
 0x52a   : > { %v2756_v25 = vsub.f32 %v8204_v16, %v2738_v50  ;;  %v2273_v16 = vpop.xlane.xlu1 %2272 }
 0x52c   : > { %v2786_v58 = vmul.f32 1.442695, %v2756_v25 }
 0x52d   : > { %v2732_v19 = vpop.xlane.xlu0 %2731 }
 0x52e   : > { %v2754_v45 = vsub.f32 %v8208_v54, %v2732_v19  ;;  %v6760_v54 = vpop.eup %6759 }
 0x52f   : > { %v2307_v22 = vmul.f32 %v6760_v54, %v8232_v38 }
 0x530   : > { %v2782_v27 = vmul.f32 1.442695, %v2754_v45 }
 0x531   : > { %v2264_v61 = vpop.xlane.xlu0 %2263 }
 0x532   : > { %6761 = vpow2.f32 %v2782_v27 }
 0x533   : > { %6763 = vrcp.f32 %v2264_v61  ;;  %v2829_v61 = vsel %vm1994_vm0, %v8381_v63, 0.0 }
 0x534   : > { %6765 = vpow2.f32 %v2786_v58 }
 0x535   : > { %6767 = vrcp.f32 %v2267_v49  ;;  %v2258_v8 = vpop.xlane.xlu0 %2257 }
 0x536   : > { %6769 = vrcp.f32 %v2258_v8 }
 0x537   : > { %6771 = vpow2.f32 %v2788_v33 }
 0x539   : > { %v2276_v32 = vpop.xlane.xlu0 %2275 }
 0x53a   : > { %6773 = vrcp.f32 %v2276_v32 }
 0x53b   : > { %6775 = vrcp.f32 %v2273_v16 }
 0x53c   : > { %v8383_v7 = vpop.eup %6761  ;;  %6777 = vrcp.f32 %v2279_v14 }
 0x53d   : > { %v6764_v26 = vpop.eup %6763  ;;  %v2270_v2 = vpop.xlane.xlu0 %2269  ;;  %v2826_v50 = vsel %vm1994_vm0, %v8383_v7, 0.0 }
 0x53e   : > { %v8387_v23 = vpop.eup %6765  ;;  %6779 = vrcp.f32 %v2270_v2  ;;  %2827 = vadd.xlane.f32.xlu0 %v2826_v50  ;;  %v2309_v28 = vmul.f32 %v6764_v26, %v8252_v53 }
 0x53f   : > { %v6768_v49 = vpop.eup %6767  ;;  %v2832_v19 = vsel %vm1994_vm0, %v8387_v23, 0.0 }
 0x540   : > { %v6770_v25 = vpop.eup %6769  ;;  %v2311_v27 = vmul.f32 %v6768_v49, %v8228_v44 }
 0x541   : > { %v2305_v45 = vmul.f32 %v6770_v25, %v8256_v52  ;;  %v8394_v58 = vpop.eup %6771 }
 0x542   : > { %2833 = vadd.xlane.f32.xlu0 %v2832_v19  ;;  %v2337_v33 = vpack.c.bf16 %v2311_v27, %v2309_v28  ;;  %v2835_v53 = vsel %vm1994_vm0, %v8394_v58, 0.0 }
 0x543   : > { %v2336_v14 = vpack.c.bf16 %v2307_v22, %v2305_v45 }
 0x544   : > { %2830 = vadd.xlane.f32.xlu1 %v2829_v61  ;;  %v6774_v8 = vpop.eup %6773 }
 0x545   : > { %6123 = vmatprep.mubr.msk.bf16.mxu0 %vm1994_vm0, %v2336_v14  ;;  %v6776_v52 = vpop.eup %6775  ;;  %v2317_v16 = vmul.f32 %v6774_v8, %v8260_v41 }
 0x546   : > { %2836 = vadd.xlane.f32.xlu0 %v2835_v53  ;;  %6124 = vmatmul.mubr.msk.bf16.vlgmr.msra.gmra.mrb[16].mxu0 %vm1994_vm0, %v2337_v33  ;;  %v6778_v38 = vpop.eup %6777  ;;  %v2315_v54 = vmul.f32 %v6776_v52, %v8241_v0 }
 0x547   : > { %6164 = vmatpush3.bf16.msra.mxu0 %v8337_v48  ;;  %v2319_v26 = vmul.f32 %v6778_v38, %v8236_v51 }
 0x548   : > { %v6780_v44 = vpop.eup %6779 }
 0x549   : > { %v2313_v32 = vmul.f32 %v6780_v44, %v8264_v40  ;;  %v2339_v50 = vpack.c.bf16 %v2319_v26, %v2317_v16 }
 0x54b   : > { %v2338_v2 = vpack.c.bf16 %v2315_v54, %v2313_v32 }
 0x54d   : > { %6127 = vmatprep.mubr.msk.bf16.mxu0 %vm1994_vm0, %v2338_v2 }
 0x54e   : > { %6128 = vmatmul.mubr.msk.bf16.gmra.mrb[20].mxu0 %vm1994_vm0, %v2339_v50 }
 0x56e   : > { %v2288_v49 = vpop.xlane.xlu0 %2287 }
 0x570   : > { %v2291_v25 = vpop.xlane.xlu1 %2290 }
 0x571   : > { %6781 = vrcp.f32 %v2291_v25 }
 0x572   : > { %v2282_v28 = vpop.xlane.xlu0 %2281 }
 0x573   : > { %6783 = vrcp.f32 %v2282_v28 }
 0x574   : > { %6785 = vrcp.f32 %v2288_v49  ;;  %v2285_v48 = vpop.xlane.xlu1 %2284 }
 0x575   : > { %6787 = vrcp.f32 %v2285_v48 }
 0x576   : > { %v2300_v41 = vpop.xlane.xlu0 %2299 }
 0x578   : > { %v2303_v40 = vpop.xlane.xlu1 %2302 }
 0x579   : > { %6789 = vrcp.f32 %v2303_v40 }
 0x57a   : > { %v2294_v0 = vpop.xlane.xlu0 %2293 }
 0x57b   : > { %6791 = vrcp.f32 %v2294_v0  ;;  %v6782_v51 = vpop.eup %6781 }
 0x57c   : > { %6793 = vrcp.f32 %v2300_v41  ;;  %v2297_v19 = vpop.xlane.xlu1 %2296  ;;  %v2327_v14 = vmul.f32 %v6782_v51, %v8280_v18 }
 0x57d   : > { %v6784_v45 = vpop.eup %6783  ;;  %6795 = vrcp.f32 %v2297_v19 }
 0x57e   : > { %v6786_v22 = vpop.eup %6785  ;;  %v2798_v27 = vpop.xlane.xlu0 %2797  ;;  %v2321_v8 = vmul.f32 %v6784_v45, %v8285_v15 }
 0x57f   : > { %v6788_v61 = vpop.eup %6787  ;;  %v2325_v52 = vmul.f32 %v6786_v22, %v8275_v39 }
 0x580   : > { %v2801_v33 = vpop.xlane.xlu1 %2800  ;;  %v2323_v53 = vmul.f32 %v6788_v61, %v8290_v20 }
 0x581   : > { %v2341_v16 = vpack.c.bf16 %v2327_v14, %v2325_v52 }
 0x582   : > { %v2792_v38 = vpop.xlane.xlu0 %2791  ;;  %v2340_v44 = vpack.c.bf16 %v2323_v53, %v2321_v8 }
 0x583   : > { %6797 = vrcp.f32 %v2792_v38  ;;  %v6790_v32 = vpop.eup %6789 }
 0x584   : > { %6131 = vmatprep.mubr.msk.bf16.mxu0 %vm1994_vm0, %v2340_v44  ;;  %v2795_v54 = vpop.xlane.xlu1 %2794  ;;  %v2335_v15 = vmul.f32 %v6790_v32, %v8300_v42 }
 0x585   : > { %v6792_v26 = vpop.eup %6791  ;;  %6799 = vrcp.f32 %v2795_v54  ;;  %6132 = vmatmul.mubr.msk.bf16.gmra.mrb[24].mxu0 %vm1994_vm0, %v2341_v16 }
 0x586   : > { %v6794_v18 = vpop.eup %6793  ;;  %v2329_v20 = vmul.f32 %v6792_v26, %v8305_v37  ;;  %v2810_v37 = vpop.xlane.xlu0 %2809  ;;  %6801 = vrcp.f32 %v2801_v33 }
 0x587   : > { %v6796_v2 = vpop.eup %6795  ;;  %v2333_v49 = vmul.f32 %v6794_v18, %v8295_v36 }
 0x588   : > { %v2813_v50 = vpop.xlane.xlu1 %2812  ;;  %v2331_v39 = vmul.f32 %v6796_v2, %v8310_v21 }
 0x589   : > { %v2343_v28 = vpack.c.bf16 %v2335_v15, %v2333_v49 }
 0x58a   : > { %v2342_v25 = vpack.c.bf16 %v2331_v39, %v2329_v20  ;;  %v2804_v45 = vpop.xlane.xlu0 %2803 }
 0x58c   : > { %6135 = vmatprep.mubr.msk.bf16.mxu0 %vm1994_vm0, %v2342_v25  ;;  %v2807_v48 = vpop.xlane.xlu1 %2806 }
 0x58d   : > { %v6798_v41 = vpop.eup %6797  ;;  %6136 = vmatmul.mubr.msk.bf16.gmra.mrb[28].mxu0 %vm1994_vm0, %v2343_v28  ;;  %6803 = vrcp.f32 %v2807_v48 }
 0x58e   : > { %v2839_v51 = vmul.f32 %v6798_v41, %v8325_v17  ;;  %6805 = vrcp.f32 %v2798_v27  ;;  %v2887_v61 = vpop.permute.xlu0 %2886 }
 0x58f   : > { %v6800_v40 = vpop.eup %6799  ;;  %6807 = vrcp.f32 %v2804_v45 }
 0x590   : > { %v2822_v0 = vpop.xlane.xlu1 %2821  ;;  %v2841_v42 = vmul.f32 %v6800_v40, %v8329_v60  ;;  %6809 = vrcp.f32 %v2813_v50  ;;  %v6802_v17 = vpop.eup %6801 }
 0x591   : > { %v2845_v52 = vmul.f32 %v6802_v17, %v8320_v13  ;;  %v6546_v17 = vld [vmem:[#allocation11 + $0x14] ss:$8 sps:$4 sm:$0xff]  }
 0x592   : > { %v2870_v19 = vpack.c.bf16 %v2841_v42, %v2839_v51  ;;  %v2889_v53 = vpop.permute.xlu0 %2888 }
 0x594   : > { %6171 = vmatprep.mubr.msk.bf16.mxu0 %vm1994_vm0, %v2870_v19  ;;  %v2816_v21 = vpop.xlane.xlu1 %2815 }
 0x597   : > { %v6804_v60 = vpop.eup %6803 }
 0x598   : > { %v2825_v36 = vpop.xlane.xlu1 %2824  ;;  %v6806_v8 = vpop.eup %6805  ;;  %v2849_v27 = vmul.f32 %v6804_v60, %v8351_v62  ;;  %v6544_v60 = vld [vmem:[#allocation11 + $0x10] ss:$8 sps:$4 sm:$0xff]  }
 0x599   : > { %v6808_v33 = vpop.eup %6807  ;;  %v2843_v38 = vmul.f32 %v6806_v8, %v8315_v1  ;;  %v6549_v8 = vld [vmem:[#allocation11 + $0x24] ss:$8 sps:$4 sm:$0xff]  }
 0x59a   : > { %v2847_v44 = vmul.f32 %v6808_v33, %v8347_v57  ;;  %v6810_v32 = vpop.eup %6809  ;;  %v6552_v33 = vld [vmem:[#allocation11 + $0x34] ss:$8 sps:$4 sm:$0xff]  }
 0x59b   : > { %v2871_v16 = vpack.c.bf16 %v2845_v52, %v2843_v38  ;;  %v2853_v2 = vmul.f32 %v6810_v32, %v8341_v24  ;;  %v6550_v38 = vld [vmem:[#allocation11 + $0x30] ss:$8 sps:$4 sm:$0xff]  }
 0x59c   : > { %v2819_v22 = vpop.xlane.xlu1 %2818  ;;  %v2872_v54 = vpack.c.bf16 %v2849_v27, %v2847_v44 }
 0x59d   : > { %6811 = vrcp.f32 %v2819_v22 }
 0x59e   : > { %6813 = vrcp.f32 %v2810_v37 }
 0x59f   : > { %6815 = vrcp.f32 %v2816_v21 }
 0x5a0   : > { %v2885_v14 = vpop.permute.xlu1 %2884  ;;  %6817 = vrcp.f32 %v2825_v36 }
 0x5a1   : > { %6165 = vmatprep.subr.bf16.mxu0 %v2885_v14  ;;  %6819 = vrcp.f32 %v2822_v0 }
 0x5a2   : > { %6166 = vmatpush3.bf16.msra.mxu0 %v2885_v14  ;;  %v6543_v14 = vld [vmem:[#allocation11 + $0x4] ss:$8 sps:$4 sm:$0xff]  }
 0x5a3   : > { %6167 = vmatprep.subr.bf16.mxu0 %v2887_v61  ;;  %3255 = vmatprep.subr.bf16.mxu1 %v6543_v14  ;;  %v6585_v14 = vld [vmem:[#allocation11 + $0xe4] ss:$8 sps:$4 sm:$0xff]  }
 0x5a6   : > { %6168 = vmatpush3.bf16.msra.mxu0 %v2887_v61  ;;  %v6541_v61 = vld [vmem:[#allocation11] ss:$8 sps:$4 sm:$0xff]  }
 0x5a7   : > { %6169 = vmatprep.subr.bf16.mxu0 %v2889_v53  ;;  %v6812_v26 = vpop.eup %6811  ;;  %3256 = vmatpush1.bf16.msra.mxu1 %v6541_v61 }
 0x5a8   : > { %v6814_v18 = vpop.eup %6813  ;;  %v2857_v62 = vmul.f32 %v6812_v26, %v8367_v55  ;;  %3257 = vmatprep.subr.bf16.mxu1 %v6546_v17 }
 0x5a9   : > { %v6816_v13 = vpop.eup %6815  ;;  %v2851_v1 = vmul.f32 %v6814_v18, %v8335_v43  ;;  %v6553_v18 = vld [vmem:[#allocation11 + $0x40] ss:$8 sps:$4 sm:$0xff]  }
 0x5aa   : > { %6170 = vmatpush3.bf16.msra.mxu0 %v2889_v53  ;;  %v2855_v15 = vmul.f32 %v6816_v13, %v8359_v59  ;;  %v6818_v50 = vpop.eup %6817  ;;  %v6547_v53 = vld [vmem:[#allocation11 + $0x20] ss:$8 sps:$4 sm:$0xff]   ;;  %v6558_v13 = vld [vmem:[#allocation11 + $0x54] ss:$8 sps:$4 sm:$0xff]  }
 0x5ab   : > { %v2873_v57 = vpack.c.bf16 %v2853_v2, %v2851_v1  ;;  %v6820_v39 = vpop.eup %6819  ;;  %v2861_v49 = vmul.f32 %v6818_v50, %v8363_v31  ;;  %3258 = vmatpush1.bf16.msra.mxu1 %v6544_v60  ;;  %v6556_v1 = vld [vmem:[#allocation11 + $0x50] ss:$8 sps:$4 sm:$0xff]   ;;  %v6583_v60 = vld [vmem:[#allocation11 + $0xe0] ss:$8 sps:$4 sm:$0xff]  }
 0x5ac   : > { %v2874_v20 = vpack.c.bf16 %v2857_v62, %v2855_v15  ;;  %v2859_v25 = vmul.f32 %v6820_v39, %v8355_v56  ;;  %3259 = vmatprep.subr.bf16.mxu1 %v6549_v8 }
 0x5ad   : > { %6172 = vmatmul.mubr.msk.bf16.vlgmr.msra.gmra.mrb[32].mxu0 %vm1994_vm0, %v2871_v16  ;;  %v6555_v16 = vld [vmem:[#allocation11 + $0x44] ss:$8 sps:$4 sm:$0xff]  }
 0x5ae   : > { %6175 = vmatprep.mubr.msk.bf16.mxu0 %vm1994_vm0, %v2872_v54  ;;  %v2875_v28 = vpack.c.bf16 %v2861_v49, %v2859_v25  ;;  %v6559_v49 = vld [vmem:[#allocation11 + $0x60] ss:$8 sps:$4 sm:$0xff]   ;;  %v6564_v25 = vld [vmem:[#allocation11 + $0x74] ss:$8 sps:$4 sm:$0xff]  }
 0x5af   : > { %3260 = vmatpush1.bf16.msra.mxu1 %v6547_v53 }
 0x5b0   : > { %3261 = vmatprep.subr.bf16.mxu1 %v6552_v33  ;;  %v6586_v33 = vld [vmem:[#allocation11 + $0xf0] ss:$8 sps:$4 sm:$0xff]  }
 0x5b3   : > { %3262 = vmatpush1.bf16.msra.mxu1 %v6550_v38 }
 0x5b4   : > { %3263 = vmatprep.subr.bf16.mxu1 %v6555_v16 }
 0x5b5   : > { %6176 = vmatmul.mubr.msk.bf16.gmra.mrb[36].mxu0 %vm1994_vm0, %v2873_v57  ;;  %v6561_v57 = vld [vmem:[#allocation11 + $0x64] ss:$8 sps:$4 sm:$0xff]  }
 0x5b6   : > { %6179 = vmatprep.mubr.msk.bf16.mxu0 %vm1994_vm0, %v2874_v20 }
 0x5b7   : > { %3264 = vmatpush1.bf16.msra.mxu1 %v6553_v18 }
 0x5b8   : > { %3265 = vmatprep.subr.bf16.mxu1 %v6558_v13 }
 0x5bb   : > { %3266 = vmatpush1.bf16.msra.mxu1 %v6556_v1 }
 0x5bc   : > { %3267 = vmatprep.subr.bf16.mxu1 %v6561_v57 }
 0x5bd   : > { %6180 = vmatmul.mubr.msk.bf16.gmra.mrb[40].mxu0 %vm1994_vm0, %v2875_v28  ;;  %v6562_v28 = vld [vmem:[#allocation11 + $0x70] ss:$8 sps:$4 sm:$0xff]  }
 0x5bf   : > { %3268 = vmatpush1.bf16.msra.mxu1 %v6559_v49 }
 0x5c0   : > { %3269 = vmatprep.subr.bf16.mxu1 %v6564_v25 }
 0x5c3   : > { %3270 = vmatpush1.bf16.msra.mxu1 %v6562_v28 }
 0x5cb   : > { %v2828_v24 = vpop.xlane.xlu0 %2827 }
 0x5cc   : > { %6821 = vrcp.f32 %v2828_v24  ;;  %v6567_v24 = vld [vmem:[#allocation11 + $0x84] ss:$8 sps:$4 sm:$0xff]  }
 0x5cd   : > { %3271 = vmatprep.subr.bf16.mxu1 %v6567_v24 }
 0x5cf   : > { %v2834_v55 = vpop.xlane.xlu0 %2833 }
 0x5d0   : > { %6823 = vrcp.f32 %v2834_v55  ;;  %v6565_v55 = vld [vmem:[#allocation11 + $0x80] ss:$8 sps:$4 sm:$0xff]  }
 0x5d1   : > { %v2831_v43 = vpop.xlane.xlu1 %2830  ;;  %3272 = vmatpush1.bf16.msra.mxu1 %v6565_v55 }
 0x5d2   : > { %6825 = vrcp.f32 %v2831_v43  ;;  %v6570_v43 = vld [vmem:[#allocation11 + $0x94] ss:$8 sps:$4 sm:$0xff]  }
 0x5d3   : > { %v2837_v59 = vpop.xlane.xlu0 %2836  ;;  %3273 = vmatprep.subr.bf16.mxu1 %v6570_v43 }
 0x5d4   : > { %6827 = vrcp.f32 %v2837_v59  ;;  %v6568_v59 = vld [vmem:[#allocation11 + $0x90] ss:$8 sps:$4 sm:$0xff]  }
 0x5d5   : > { %3274 = vmatpush1.bf16.msra.mxu1 %v6568_v59 }
 0x5d6   : > { %v6822_v48 = vpop.eup %6821 }
 0x5d7   : > { %v2863_v0 = vmul.f32 %v6822_v48, %v8383_v7  ;;  %v6573_v48 = vld [vmem:[#allocation11 + $0xa4] ss:$8 sps:$4 sm:$0xff]  }
 0x5d8   : > { %3275 = vmatprep.subr.bf16.mxu1 %v6573_v48 }
 0x5da   : > { %v6824_v41 = vpop.eup %6823 }
 0x5db   : > { %v2867_v42 = vmul.f32 %v6824_v41, %v8387_v23  ;;  %v6571_v41 = vld [vmem:[#allocation11 + $0xa0] ss:$8 sps:$4 sm:$0xff]  }
 0x5dc   : > { %v6826_v40 = vpop.eup %6825  ;;  %3276 = vmatpush1.bf16.msra.mxu1 %v6571_v41 }
 0x5dd   : > { %v2865_v31 = vmul.f32 %v6826_v40, %v8381_v63  ;;  %v6576_v40 = vld [vmem:[#allocation11 + $0xb4] ss:$8 sps:$4 sm:$0xff]  }
 0x5de   : > { %v6828_v51 = vpop.eup %6827  ;;  %3277 = vmatprep.subr.bf16.mxu1 %v6576_v40 }
 0x5df   : > { %v2876_v56 = vpack.c.bf16 %v2865_v31, %v2863_v0  ;;  %v2869_v19 = vmul.f32 %v6828_v51, %v8394_v58  ;;  %v6574_v0 = vld [vmem:[#allocation11 + $0xb0] ss:$8 sps:$4 sm:$0xff]   ;;  %v6579_v31 = vld [vmem:[#allocation11 + $0xc4] ss:$8 sps:$4 sm:$0xff]   ;;  %v6577_v51 = vld [vmem:[#allocation11 + $0xc0] ss:$8 sps:$4 sm:$0xff]  }
 0x5e0   : > { %3278 = vmatpush1.bf16.msra.mxu1 %v6574_v0 }
 0x5e1   : > { %6183 = vmatprep.mubr.msk.bf16.mxu0 %vm1994_vm0, %v2876_v56  ;;  %v2877_v37 = vpack.c.bf16 %v2869_v19, %v2867_v42  ;;  %3279 = vmatprep.subr.bf16.mxu1 %v6579_v31  ;;  %v6582_v56 = vld [vmem:[#allocation11 + $0xd4] ss:$8 sps:$4 sm:$0xff]  }
 0x5e3   : > { %6184 = vmatmul.mubr.msk.bf16.gmra.mrb[44].mxu0 %vm1994_vm0, %v2877_v37  ;;  %v6580_v37 = vld [vmem:[#allocation11 + $0xd0] ss:$8 sps:$4 sm:$0xff]  }
 0x5e4   : > { %3280 = vmatpush1.bf16.msra.mxu1 %v6577_v51 }
 0x5e5   : > { %3281 = vmatprep.subr.bf16.mxu1 %v6582_v56 }
 0x5e8   : > { %3282 = vmatpush1.bf16.msra.mxu1 %v6580_v37 }
 0x5e9   : > { %3283 = vmatprep.subr.bf16.mxu1 %v6585_v14 }
 0x5ec   : > { %3284 = vmatpush1.bf16.msra.mxu1 %v6583_v60 }
 0x619   : > { %v8446_v21 = vpop.f32.mrb[16].mxu0 }
 0x61a   : > { %v8448_v36 = vpop.f32.mrb[17].mxu0 }
 0x61b   : > { %v8450_v45 = vpop.f32.mrb[18].mxu0 }
 0x61c   : > { %v8452_v7 = vpop.f32.mrb[19].mxu0 }
 0x621   : > { %v8454_v63 = vpop.f32.mrb[20].mxu0 }
 0x622   : > { %v8456_v22 = vpop.f32.mrb[21].mxu0 }
 0x623   : > { %v8458_v23 = vpop.f32.mrb[22].mxu0 }
 0x624   : > { %v8460_v58 = vpop.f32.mrb[23].mxu0 }
 0x658   : > { %v8462_v52 = vpop.f32.mrb[24].mxu0 }
 0x659   : > { %v2434_v27 = vpop.f32.mrb[25].mxu0 }
 0x65a   : > { %v8464_v44 = vpop.f32.mrb[26].mxu0 }
 0x65b   : > { %v6356_v32 = vpack.i.bf16 %v8464_v44, %v8462_v52  ;;  %v2437_v54 = vpop.f32.mrb[27].mxu0 }
 0x65c   : > { %v6346_v26 = vpack.i.bf16 %v2437_v54, %v2434_v27  ;;  %v6588_v27 = vld [vmem:[#allocation11 + $0xf4] ss:$8 sps:$4 sm:$0xff]  }
 0x65d   : > { %3285 = vmatprep.subr.bf16.mxu1 %v6588_v27 }
 0x65e   : > { %6347 = vrot.lane.b32.xlu1 %v6346_v26, %s7301_s26  ;;  %3286 = vmatpush1.bf16.msra.mxu1 %v6586_v33 }
 0x660   : > { %v8469_v2 = vpop.f32.mrb[28].mxu0 }
 0x661   : > { %v8471_v62 = vpop.f32.mrb[29].mxu0 }
 0x662   : > { %v8473_v15 = vpop.f32.mrb[30].mxu0 }
 0x663   : > { %v6376_v50 = vpack.i.bf16 %v8473_v15, %v8469_v2  ;;  %v2453_v20 = vpop.f32.mrb[31].mxu0 }
 0x664   : > { %v6366_v39 = vpack.i.bf16 %v2453_v20, %v8471_v62 }
 0x680   : > { %v6173_v42 = vpop.f32.mrb[32].mxu0 }
 0x681   : > { %v2952_v19 = vpop.f32.mrb[33].mxu0 }
 0x682   : > { %v6174_v61 = vpop.f32.mrb[34].mxu0 }
 0x683   : > { %v2955_v17 = vpop.f32.mrb[35].mxu0 }
 0x688   : > { %v8478_v8 = vpop.f32.mrb[36].mxu0 }
 0x689   : > { %v8480_v53 = vpop.f32.mrb[37].mxu0 }
 0x68a   : > { %v8482_v38 = vpop.f32.mrb[38].mxu0 }
 0x68b   : > { %v8484_v16 = vpop.f32.mrb[39].mxu0 }
 0x690   : > { %v6181_v54 = vpop.f32.mrb[40].mxu0 }
 0x691   : > { %v2984_v26 = vpop.f32.mrb[41].mxu0 }
 0x692   : > { %v6182_v18 = vpop.f32.mrb[42].mxu0 }
 0x693   : > { %v6351_v13 = vpack.i.bf16 %v6182_v18, %v6181_v54  ;;  %v2987_v2 = vpop.f32.mrb[43].mxu0 }
 0x694   : > { %v6341_v62 = vpack.i.bf16 %v2987_v2, %v2984_v26 }
 0x695   : > { %6352 = vrot.lane.b32.xlu1 %v6351_v13, %s7301_s26 }
 0x696   : > { %6342 = vrot.lane.b32.xlu0 %v6341_v62, %s7301_s26 }
 0x699   : > { %6357 = vrot.lane.b32.xlu1 %v6356_v32, %s7301_s26 }
 0x69d   : > { %6367 = vrot.lane.b32.xlu1 %v6366_v39, %s7301_s26 }
 0x6a1   : > { %6377 = vrot.lane.b32.xlu1 %v6376_v50, %s7301_s26 }
 0x6b6   : > { %v6185_v1 = vpop.f32.mrb[44].mxu0 }
 0x6b7   : > { %v3000_v15 = vpop.f32.mrb[45].mxu0 }
 0x6b8   : > { %v6186_v57 = vpop.f32.mrb[46].mxu0 }
 0x6b9   : > { %v6371_v20 = vpack.i.bf16 %v6186_v57, %v6185_v1  ;;  %v3003_v49 = vpop.f32.mrb[47].mxu0 }
 0x6ba   : > { %v6361_v25 = vpack.i.bf16 %v3003_v49, %v3000_v15 }
 0x6bc   : > { %6362 = vrot.lane.b32.xlu0 %v6361_v25, %s7301_s26 }
 0x6c0   : > { %6372 = vrot.lane.b32.xlu0 %v6371_v20, %s7301_s26  ;;  %s7205_s26 = scalar_lea.vmem %s7204_s20, 2048 }
 0x6c1   : > { %p7207_p8 = scmp.lt.s32.totalorder %s7205_s26, %s7199_s23 }
 0x6c3   : > { %p7208_p6 = por %p7207_p8, %p7206_p13 }
 0x6c5   : > { %p7209_p9 = pnand %p7208_p6, %p7202_p12 }
 0x6d0   : > { %v6348_v28 = vpop.permute.xlu1 %6347 }
 0x6d1   : > { %v6350_v24 = vunpack.i.h.bf16 %v6348_v28  ;;  %v6349_v55 = vunpack.i.l.bf16 %v6348_v28 }
 0x6d3   : > { %v2498_v52 = vsel %vm1994_vm0, %v8452_v7, %v6350_v24  ;;  %v2497_v44 = vsel %vm1994_vm0, %v8448_v36, %v6349_v55  ;;  %v3469_v55 = vld [vmem:[#allocation13] sm:$0xff] }
 0x6d4   : > { %v3055_v32 = vpack.c.bf16 %v2498_v52, %v2497_v44  ;;  %v3470_v52 = vld [vmem:[#allocation13 + $0x8] sm:$0xff] }
 0x707   : > { %v6353_v50 = vpop.permute.xlu1 %6352 }
 0x708   : > { %v6355_v39 = vunpack.i.h.bf16 %v6353_v50  ;;  %v6354_v43 = vunpack.i.l.bf16 %v6353_v50  ;;  %v6343_v59 = vpop.permute.xlu0 %6342  ;;  %v3477_v50 = vld [vmem:[#allocation13 + $0x40] sm:$0xff] }
 0x709   : > { %v6345_v48 = vunpack.i.h.bf16 %v6343_v59  ;;  %v6344_v41 = vunpack.i.l.bf16 %v6343_v59 }
 0x70a   : > { %v3049_v40 = vsel %vm1994_vm0, %v6173_v42, %v6354_v43  ;;  %v3050_v0 = vsel %vm1994_vm0, %v6174_v61, %v6355_v39  ;;  %v3481_v39 = vld [vmem:[#allocation13 + $0x60] sm:$0xff] }
 0x70b   : > { %v6358_v31 = vpop.permute.xlu1 %6357  ;;  %v3047_v51 = vsel %vm1994_vm0, %v2952_v19, %v6344_v41  ;;  %v3048_v56 = vsel %vm1994_vm0, %v2955_v17, %v6345_v48  ;;  %v3058_v7 = vpack.c.bf16 %v3050_v0, %v3049_v40  ;;  %v5765_v48 = vcombine.high %v3477_v50, %v3481_v39  ;;  %v3478_v41 = vld [vmem:[#allocation13 + $0x48] sm:$0xff] }
 0x70c   : > { %v6360_v37 = vunpack.i.h.bf16 %v6358_v31  ;;  %v6359_v14 = vunpack.i.l.bf16 %v6358_v31  ;;  %v3056_v36 = vpack.c.bf16 %v3048_v56, %v3047_v51  ;;  %v3482_v40 = vld [vmem:[#allocation13 + $0x68] sm:$0xff]  ;;  %v5764_v56 = vcombine.low %v3477_v50, %v3481_v39 }
 0x70d   : > { %v5767_v0 = vcombine.high %v3478_v41, %v3482_v40  ;;  %v3486_v31 = vld [vmem:[#allocation13 + $0x88] sm:$0xff] }
 0x70e   : > { %3287 = vmatprep.mubr.bf16.mxu1 %v3056_v36  ;;  %v2499_v60 = vsel %vm1994_vm0, %v8446_v21, %v6359_v14  ;;  %v2500_v33 = vsel %vm1994_vm0, %v8450_v45, %v6360_v37  ;;  %v3490_v51 = vld [vmem:[#allocation13 + $0xa8] sm:$0xff]  ;;  %v3493_v36 = vld [vmem:[#allocation13 + $0xc0] sm:$0xff] }
 0x70f   : > { %v6368_v27 = vpop.permute.xlu1 %6367  ;;  %3288 = vmatmul.mubr.bf16.vlgmr.msra.gmra.mrb[80].mxu1 %v3055_v32  ;;  %v3057_v42 = vpack.c.bf16 %v2500_v33, %v2499_v60  ;;  %v3474_v32 = vld [vmem:[#allocation13 + $0x28] sm:$0xff]  ;;  %v5775_v14 = vcombine.high %v3486_v31, %v3490_v51  ;;  %v3497_v60 = vld [vmem:[#allocation13 + $0xe0] sm:$0xff] }
 0x710   : > { %v6370_v61 = vunpack.i.h.bf16 %v6368_v27  ;;  %v6369_v54 = vunpack.i.l.bf16 %v6368_v27  ;;  %3297 = vmatprep.mubr.bf16.mxu1 %v3058_v7  ;;  %v5758_v43 = vcombine.low %v3470_v52, %v3474_v32  ;;  %v5759_v59 = vcombine.high %v3470_v52, %v3474_v32  ;;  %v3494_v33 = vld [vmem:[#allocation13 + $0xc8] sm:$0xff]  ;;  %v3529_v32 = vld [vmem:[#allocation13 + $0x1e0] sm:$0xff] }
 0x711   : > { %v5766_v7 = vcombine.low %v3478_v41, %v3482_v40  ;;  %v3498_v27 = vld [vmem:[#allocation13 + $0xe8] sm:$0xff]  ;;  %v3533_v40 = vld [vmem:[#allocation13 + $0x200] sm:$0xff] }
 0x712   : > { %v2501_v19 = vsel %vm1994_vm0, %v8456_v22, %v6369_v54  ;;  %v2502_v17 = vsel %vm1994_vm0, %v8460_v58, %v6370_v61  ;;  %4310 = vmatprep.subr.bf16.mxu1 %v5759_v59  ;;  %v5774_v61 = vcombine.low %v3486_v31, %v3490_v51  ;;  %v5781_v54 = vcombine.high %v3493_v36, %v3497_v60  ;;  %v3526_v50 = vld [vmem:[#allocation13 + $0x1c8] sm:$0xff] }
 0x713   : > { %v6378_v26 = vpop.permute.xlu1 %6377  ;;  %v3059_v18 = vpack.c.bf16 %v2502_v17, %v2501_v19  ;;  %4311 = vmatpush1.bf16.msra.mxu1 %v5758_v43  ;;  %v5783_v19 = vcombine.high %v3494_v33, %v3498_v27  ;;  %v3501_v17 = vld [vmem:[#allocation13 + $0x100] sm:$0xff]  ;;  %v3530_v39 = vld [vmem:[#allocation13 + $0x1e8] sm:$0xff] }
 0x714   : > { %v6380_v13 = vunpack.i.h.bf16 %v6378_v26  ;;  %v6379_v2 = vunpack.i.l.bf16 %v6378_v26  ;;  %4312 = vmatprep.subr.bf16.mxu1 %v5767_v0  ;;  %v3505_v26 = vld [vmem:[#allocation13 + $0x120] sm:$0xff]  ;;  %v5815_v41 = vcombine.high %v3526_v50, %v3530_v39  ;;  %v3534_v0 = vld [vmem:[#allocation13 + $0x208] sm:$0xff]  ;;  %v5814_v51 = vcombine.low %v3526_v50, %v3530_v39 }
 0x716   : > { %v2503_v21 = vsel %vm1994_vm0, %v8454_v63, %v6379_v2  ;;  %v2504_v45 = vsel %vm1994_vm0, %v8458_v23, %v6380_v13  ;;  %v3506_v13 = vld [vmem:[#allocation13 + $0x128] sm:$0xff]  ;;  %v5780_v2 = vcombine.low %v3493_v36, %v3497_v60 }
 0x717   : > { %3298 = vmatmul.mubr.bf16.gmra.mrb[84].mxu1 %v3057_v42  ;;  %v3061_v62 = vpack.c.bf16 %v2504_v45, %v2503_v21  ;;  %v5782_v21 = vcombine.low %v3494_v33, %v3498_v27  ;;  %v5789_v45 = vcombine.high %v3501_v17, %v3505_v26  ;;  %v3542_v36 = vld [vmem:[#allocation13 + $0x248] sm:$0xff] }
 0x718   : > { %4313 = vmatpush1.bf16.msra.mxu1 %v5766_v7  ;;  %v3546_v60 = vld [vmem:[#allocation13 + $0x268] sm:$0xff] }
 0x719   : > { %4314 = vmatprep.subr.bf16.mxu1 %v5775_v14  ;;  %v3545_v14 = vld [vmem:[#allocation13 + $0x260] sm:$0xff] }
 0x71c   : > { %4315 = vmatpush1.bf16.msra.mxu1 %v5774_v61  ;;  %v5831_v61 = vcombine.high %v3542_v36, %v3546_v60 }
 0x71d   : > { %4316 = vmatprep.subr.bf16.mxu1 %v5783_v19  ;;  %v3553_v19 = vld [vmem:[#allocation13 + $0x2a0] sm:$0xff] }
 0x720   : > { %4317 = vmatpush1.bf16.msra.mxu1 %v5782_v21 }
 0x72e   : > { %v6363_v1 = vpop.permute.xlu0 %6362 }
 0x72f   : > { %v6365_v15 = vunpack.i.h.bf16 %v6363_v1  ;;  %v6364_v57 = vunpack.i.l.bf16 %v6363_v1  ;;  %v3509_v1 = vld [vmem:[#allocation13 + $0x140] sm:$0xff] }
 0x731   : > { %v3051_v22 = vsel %vm1994_vm0, %v8480_v53, %v6364_v57  ;;  %v3052_v58 = vsel %vm1994_vm0, %v8484_v16, %v6365_v15  ;;  %v3473_v53 = vld [vmem:[#allocation13 + $0x20] sm:$0xff]  ;;  %v3510_v57 = vld [vmem:[#allocation13 + $0x148] sm:$0xff] }
 0x732   : > { %v6373_v20 = vpop.permute.xlu0 %6372  ;;  %v3060_v49 = vpack.c.bf16 %v3052_v58, %v3051_v22  ;;  %v5756_v44 = vcombine.low %v3469_v55, %v3473_v53  ;;  %v5757_v16 = vcombine.high %v3469_v55, %v3473_v53  ;;  %v3513_v15 = vld [vmem:[#allocation13 + $0x160] sm:$0xff]  ;;  %v3514_v22 = vld [vmem:[#allocation13 + $0x168] sm:$0xff]  ;;  %v5788_v58 = vcombine.low %v3501_v17, %v3505_v26 }
 0x733   : > { %v6375_v25 = vunpack.i.h.bf16 %v6373_v20  ;;  %v6374_v28 = vunpack.i.l.bf16 %v6373_v20  ;;  %v5796_v55 = vcombine.low %v3509_v1, %v3513_v15  ;;  %v5798_v53 = vcombine.low %v3510_v57, %v3514_v22  ;;  %v3550_v17 = vld [vmem:[#allocation13 + $0x288] sm:$0xff] }
 0x734   : > { %3307 = vmatprep.mubr.bf16.mxu1 %v3060_v49  ;;  %4237 = vmatprep.subr.bf16.mxu0 %v5757_v16  ;;  %v5797_v49 = vcombine.high %v3509_v1, %v3513_v15  ;;  %v3525_v16 = vld [vmem:[#allocation13 + $0x1c0] sm:$0xff]  ;;  %v3554_v26 = vld [vmem:[#allocation13 + $0x2a8] sm:$0xff] }
 0x735   : > { %3308 = vmatmul.mubr.bf16.gmra.mrb[88].mxu1 %v3059_v18  ;;  %v3053_v63 = vsel %vm1994_vm0, %v8478_v8, %v6374_v28  ;;  %v3054_v23 = vsel %vm1994_vm0, %v8482_v38, %v6375_v25  ;;  %v3485_v8 = vld [vmem:[#allocation13 + $0x80] sm:$0xff]  ;;  %4238 = vmatpush1.bf16.msra.mxu0 %v5756_v44  ;;  %v3502_v18 = vld [vmem:[#allocation13 + $0x108] sm:$0xff]  ;;  %v5799_v25 = vcombine.high %v3510_v57, %v3514_v22 }
 0x736   : > { %v3062_v24 = vpack.c.bf16 %v3054_v23, %v3053_v63  ;;  %v3489_v38 = vld [vmem:[#allocation13 + $0xa0] sm:$0xff]  ;;  %4239 = vmatprep.subr.bf16.mxu0 %v5765_v48  ;;  %v5790_v20 = vcombine.low %v3502_v18, %v3506_v13  ;;  %v3518_v23 = vld [vmem:[#allocation13 + $0x188] sm:$0xff]  ;;  %v5813_v48 = vcombine.high %v3525_v16, %v3529_v32  ;;  %v5812_v31 = vcombine.low %v3525_v16, %v3529_v32 }
 0x737   : > { %v5773_v37 = vcombine.high %v3485_v8, %v3489_v38  ;;  %v5772_v42 = vcombine.low %v3485_v8, %v3489_v38  ;;  %v3517_v28 = vld [vmem:[#allocation13 + $0x180] sm:$0xff]  ;;  %v3538_v38 = vld [vmem:[#allocation13 + $0x228] sm:$0xff]  ;;  %v5839_v21 = vcombine.high %v3550_v17, %v3554_v26 }
 0x738   : > { %3317 = vmatprep.mubr.bf16.mxu1 %v3062_v24  ;;  %v3521_v63 = vld [vmem:[#allocation13 + $0x1a0] sm:$0xff]  ;;  %v3522_v24 = vld [vmem:[#allocation13 + $0x1a8] sm:$0xff]  ;;  %v5823_v7 = vcombine.high %v3534_v0, %v3538_v38  ;;  %v5822_v27 = vcombine.low %v3534_v0, %v3538_v38 }
 0x739   : > { %4240 = vmatpush1.bf16.msra.mxu0 %v5764_v56  ;;  %v5805_v52 = vcombine.high %v3517_v28, %v3521_v63  ;;  %v5807_v44 = vcombine.high %v3518_v23, %v3522_v24  ;;  %v5804_v43 = vcombine.low %v3517_v28, %v3521_v63  ;;  %v5806_v59 = vcombine.low %v3518_v23, %v3522_v24  ;;  %v3537_v8 = vld [vmem:[#allocation13 + $0x220] sm:$0xff] }
 0x73a   : > { %4241 = vmatprep.subr.bf16.mxu0 %v5773_v37  ;;  %v5821_v56 = vcombine.high %v3533_v40, %v3537_v8  ;;  %v3541_v37 = vld [vmem:[#allocation13 + $0x240] sm:$0xff]  ;;  %v5820_v33 = vcombine.low %v3533_v40, %v3537_v8  ;;  %v3562_v8 = vld [vmem:[#allocation13 + $0x2e8] sm:$0xff] }
 0x73d   : > { %3318 = vmatmul.mubr.bf16.gmra.mrb[92].mxu1 %v3061_v62  ;;  %4242 = vmatpush1.bf16.msra.mxu0 %v5772_v42  ;;  %v5791_v62 = vcombine.high %v3502_v18, %v3506_v13  ;;  %v5829_v42 = vcombine.high %v3541_v37, %v3545_v14  ;;  %v5828_v18 = vcombine.low %v3541_v37, %v3545_v14  ;;  %v3570_v37 = vld [vmem:[#allocation13 + $0x328] sm:$0xff] }
 0x73e   : > { %4243 = vmatprep.subr.bf16.mxu0 %v5781_v54  ;;  %v3549_v54 = vld [vmem:[#allocation13 + $0x280] sm:$0xff]  ;;  %v5830_v13 = vcombine.low %v3542_v36, %v3546_v60 }
 0x73f   : > { %4318 = vmatprep.subr.bf16.mxu1 %v5791_v62  ;;  %v5838_v62 = vcombine.low %v3550_v17, %v3554_v26 }
 0x740   : > { %4319 = vmatpush1.bf16.msra.mxu1 %v5790_v20 }
 0x741   : > { %4244 = vmatpush1.bf16.msra.mxu0 %v5780_v2  ;;  %4320 = vmatprep.subr.bf16.mxu1 %v5799_v25  ;;  %v5837_v2 = vcombine.high %v3549_v54, %v3553_v19 }
 0x742   : > { %4245 = vmatprep.subr.bf16.mxu0 %v5789_v45  ;;  %v5836_v45 = vcombine.low %v3549_v54, %v3553_v19  ;;  %v3578_v54 = vld [vmem:[#allocation13 + $0x368] sm:$0xff] }
 0x744   : > { %4321 = vmatpush1.bf16.msra.mxu1 %v5798_v53 }
 0x745   : > { %4246 = vmatpush1.bf16.msra.mxu0 %v5788_v58  ;;  %4322 = vmatprep.subr.bf16.mxu1 %v5807_v44 }
 0x746   : > { %4247 = vmatprep.subr.bf16.mxu0 %v5797_v49 }
 0x748   : > { %4323 = vmatpush1.bf16.msra.mxu1 %v5806_v59  ;;  %v3557_v59 = vld [vmem:[#allocation13 + $0x2c0] sm:$0xff] }
 0x749   : > { %4248 = vmatpush1.bf16.msra.mxu0 %v5796_v55  ;;  %4324 = vmatprep.subr.bf16.mxu1 %v5815_v41  ;;  %v3558_v41 = vld [vmem:[#allocation13 + $0x2c8] sm:$0xff] }
 0x74a   : > { %4249 = vmatprep.subr.bf16.mxu0 %v5805_v52  ;;  %v5846_v0 = vcombine.low %v3558_v41, %v3562_v8  ;;  %v5847_v38 = vcombine.high %v3558_v41, %v3562_v8 }
 0x74c   : > { %4325 = vmatpush1.bf16.msra.mxu1 %v5814_v51  ;;  %v3569_v51 = vld [vmem:[#allocation13 + $0x320] sm:$0xff] }
 0x74d   : > { %4250 = vmatpush1.bf16.msra.mxu0 %v5804_v43  ;;  %4326 = vmatprep.subr.bf16.mxu1 %v5823_v7 }
 0x74e   : > { %4251 = vmatprep.subr.bf16.mxu0 %v5813_v48  ;;  %v3561_v48 = vld [vmem:[#allocation13 + $0x2e0] sm:$0xff] }
 0x74f   : > { %v5845_v40 = vcombine.high %v3557_v59, %v3561_v48 }
 0x750   : > { %4327 = vmatpush1.bf16.msra.mxu1 %v5822_v27  ;;  %v3577_v27 = vld [vmem:[#allocation13 + $0x360] sm:$0xff] }
 0x751   : > { %4252 = vmatpush1.bf16.msra.mxu0 %v5812_v31  ;;  %4328 = vmatprep.subr.bf16.mxu1 %v5831_v61  ;;  %v3565_v31 = vld [vmem:[#allocation13 + $0x300] sm:$0xff] }
 0x752   : > { %4253 = vmatprep.subr.bf16.mxu0 %v5821_v56  ;;  %v3566_v56 = vld [vmem:[#allocation13 + $0x308] sm:$0xff]  ;;  %v5853_v7 = vcombine.high %v3565_v31, %v3569_v51  ;;  %v5852_v14 = vcombine.low %v3565_v31, %v3569_v51 }
 0x753   : > { %v5854_v36 = vcombine.low %v3566_v56, %v3570_v37  ;;  %v5855_v60 = vcombine.high %v3566_v56, %v3570_v37 }
 0x754   : > { %4329 = vmatpush1.bf16.msra.mxu1 %v5830_v13  ;;  %v3585_v13 = vld [vmem:[#allocation13 + $0x3a0] sm:$0xff] }
 0x755   : > { %4254 = vmatpush1.bf16.msra.mxu0 %v5820_v33  ;;  %4330 = vmatprep.subr.bf16.mxu1 %v5839_v21  ;;  %v3573_v33 = vld [vmem:[#allocation13 + $0x340] sm:$0xff] }
 0x756   : > { %4255 = vmatprep.subr.bf16.mxu0 %v5829_v42  ;;  %v3574_v42 = vld [vmem:[#allocation13 + $0x348] sm:$0xff]  ;;  %v5861_v61 = vcombine.high %v3573_v33, %v3577_v27  ;;  %v5860_v19 = vcombine.low %v3573_v33, %v3577_v27 }
 0x757   : > { %v5862_v17 = vcombine.low %v3574_v42, %v3578_v54  ;;  %v5863_v26 = vcombine.high %v3574_v42, %v3578_v54  ;;  %v9139_v42 = vld [vmem:[#allocation24_spill] sm:$0xff] }
 0x758   : > { %4331 = vmatpush1.bf16.msra.mxu1 %v5838_v62 }
 0x759   : > { %4256 = vmatpush1.bf16.msra.mxu0 %v5828_v18  ;;  %4332 = vmatprep.subr.bf16.mxu1 %v5847_v38  ;;  %v3581_v18 = vld [vmem:[#allocation13 + $0x380] sm:$0xff] }
 0x75a   : > { %4257 = vmatprep.subr.bf16.mxu0 %v5837_v2  ;;  %v3582_v2 = vld [vmem:[#allocation13 + $0x388] sm:$0xff]  ;;  %v5869_v21 = vcombine.high %v3581_v18, %v3585_v13  ;;  %v5868_v62 = vcombine.low %v3581_v18, %v3585_v13 }
 0x75c   : > { %4333 = vmatpush1.bf16.msra.mxu1 %v5846_v0 }
 0x75d   : > { %4258 = vmatpush1.bf16.msra.mxu0 %v5836_v45  ;;  %4334 = vmatprep.subr.bf16.mxu1 %v5855_v60  ;;  %v3586_v45 = vld [vmem:[#allocation13 + $0x3a8] sm:$0xff] }
 0x75e   : > { %4259 = vmatprep.subr.bf16.mxu0 %v5845_v40  ;;  %v8592_v40 = vld [vmem:[#allocation13 + $0x38] sm:$0xff] }
 0x760   : > { %4335 = vmatpush1.bf16.msra.mxu1 %v5854_v36  ;;  %v9137_v36 = vld [vmem:[#allocation23_spill] sm:$0xff] }
 0x761   : > { %4336 = vmatprep.subr.bf16.mxu1 %v5863_v26 }
 0x764   : > { %4337 = vmatpush1.bf16.msra.mxu1 %v5862_v17 }
 0x7e2   : > { %v3289_v1 = vpop.f32.mrb[80].mxu1 }
 0x7e3   : > { %v8525_v15 = vadd.f32 %v3289_v1, %v7671_v3  ;;  %v3291_v57 = vpop.f32.mrb[81].mxu1  ;;  %v5870_v1 = vcombine.low %v3582_v2, %v3586_v45 }
 0x7e4   : > { %v8528_v22 = vadd.f32 %v3291_v57, %v7673_v4  ;;  %v3293_v58 = vpop.f32.mrb[82].mxu1  ;;  %v5871_v57 = vcombine.high %v3582_v2, %v3586_v45  ;;  %v3344_v45 = vld [vmem:[%s9141_s27] sm:$0x3] }
 0x7e5   : > { %v8531_v20 = vadd.f32 %v3293_v58, %v7675_v5  ;;  %v3295_v49 = vpop.f32.mrb[83].mxu1  ;;  %v3346_v25 = vmul.f32 %v8525_v15, %v8525_v15 }
 0x7e6   : > { %9124 = vst [vmem:[#allocation27_spill] sm:$0xff] %v8528_v22  ;;  %v8536_v28 = vadd.f32 %v3295_v49, %v7677_v6  ;;  %v3347_v63 = vmul.f32 %v8528_v22, %v8528_v22  ;;  %4338 = vmatprep.subr.bf16.mxu1 %v5871_v57 }
 0x7e7   : > { %9125 = vst [vmem:[#allocation28_spill] sm:$0xff] %v8531_v20  ;;  %v3348_v3 = vmul.f32 %v8531_v20, %v8531_v20  ;;  %4339 = vmatpush1.bf16.msra.mxu1 %v5870_v1  ;;  %v3345_v1 = vunpack.c.l.bf16 %v3344_v45 }
 0x7e8   : > { %9126 = vst [vmem:[#allocation29_spill] sm:$0xff] %v8536_v28  ;;  %v3349_v4 = vmul.f32 %v8536_v28, %v8536_v28  ;;  %v3362_v23 = vadd.f32 %v3347_v63, %v3346_v25  ;;  %v3589_v63 = vld [vmem:[#allocation13 + $0x3c0] sm:$0xff] }
 0x7ea   : > { %3363 = vadd.xlane.f32.xlu0 %v3362_v23  ;;  %v3299_v5 = vpop.f32.mrb[84].mxu1  ;;  %v3365_v24 = vadd.f32 %v3349_v4, %v3348_v3  ;;  %v3593_v3 = vld [vmem:[#allocation13 + $0x3e0] sm:$0xff]  ;;  %v3590_v4 = vld [vmem:[#allocation13 + $0x3c8] sm:$0xff] }
 0x7eb   : > { %v8545_v55 = vadd.f32 %v3299_v5, %v7679_v9  ;;  %v3301_v53 = vpop.f32.mrb[85].mxu1 }
 0x7ec   : > { %v8548_v6 = vadd.f32 %v3301_v53, %v7681_v10  ;;  %3366 = vadd.xlane.f32.xlu1 %v3365_v24  ;;  %v3303_v52 = vpop.f32.mrb[86].mxu1  ;;  %v5876_v24 = vcombine.low %v3589_v63, %v3593_v3  ;;  %v5877_v53 = vcombine.high %v3589_v63, %v3593_v3  ;;  %v9142_v63 = vld [vmem:[#allocation26_spill] sm:$0xff] }
 0x7ed   : > { %9127 = vst [vmem:[#allocation30_spill] sm:$0xff] %v8545_v55  ;;  %v8551_v44 = vadd.f32 %v3303_v52, %v7683_v11  ;;  %v3305_v16 = vpop.f32.mrb[87].mxu1  ;;  %v3350_v32 = vmul.f32 %v8545_v55, %v8545_v55  ;;  %v3594_v52 = vld [vmem:[#allocation13 + $0x3e8] sm:$0xff]  ;;  %v3430_v3 = vrot.slane %v3345_v1, %v9142_v63 }
 0x7ee   : > { %9128 = vst [vmem:[#allocation31_spill] sm:$0xff] %v8548_v6  ;;  %v8556_v50 = vadd.f32 %v3305_v16, %v7685_v12  ;;  %v3351_v9 = vmul.f32 %v8548_v6, %v8548_v6  ;;  %v5844_v12 = vcombine.low %v3557_v59, %v3561_v48  ;;  %v8584_v59 = vld [vmem:[#allocation13 + $0x30] sm:$0xff] }
 0x7ef   : > { %9129 = vst [vmem:[#allocation32_spill] sm:$0xff] %v8551_v44  ;;  %v3352_v39 = vmul.f32 %v8551_v44, %v8551_v44 }
 0x7f0   : > { %9130 = vst [vmem:[#allocation33_spill] sm:$0xff] %v8556_v50  ;;  %v3353_v10 = vmul.f32 %v8556_v50, %v8556_v50  ;;  %v3368_v43 = vadd.f32 %v3351_v9, %v3350_v32  ;;  %4260 = vmatpush1.bf16.msra.mxu0 %v5844_v12  ;;  %v5878_v9 = vcombine.low %v3590_v4, %v3594_v52 }
 0x7f1   : > { %4261 = vmatprep.subr.bf16.mxu0 %v5853_v7 }
 0x7f2   : > { %3369 = vadd.xlane.f32.xlu0 %v3368_v43  ;;  %v3371_v11 = vadd.f32 %v3353_v10, %v3352_v39  ;;  %v5879_v39 = vcombine.high %v3590_v4, %v3594_v52  ;;  %v9143_v4 = vld [vmem:[#allocation25_spill] sm:$0xff] }
 0x7f4   : > { %4262 = vmatpush1.bf16.msra.mxu0 %v5852_v14  ;;  %4340 = vmatprep.subr.bf16.mxu1 %v5879_v39 }
 0x7f5   : > { %4263 = vmatprep.subr.bf16.mxu0 %v5861_v61  ;;  %4341 = vmatpush1.bf16.msra.mxu1 %v5878_v9 }
 0x7f6   : > { %3372 = vadd.xlane.f32.xlu0 %v3371_v11  ;;  %v8582_v11 = vld [vmem:[#allocation13 + $0x10] sm:$0xff] }
 0x7f7   : > { %v5760_v8 = vcombine.low %v8582_v11, %v8584_v59 }
 0x7f8   : > { %4264 = vmatpush1.bf16.msra.mxu0 %v5860_v19 }
 0x7f9   : > { %4265 = vmatprep.subr.bf16.mxu0 %v5869_v21 }
 0x7fc   : > { %4266 = vmatpush1.bf16.msra.mxu0 %v5868_v62 }
 0x7fd   : > { %4267 = vmatprep.subr.bf16.mxu0 %v5877_v53 }
 0x800   : > { %4268 = vmatpush1.bf16.msra.mxu0 %v5876_v24 }
 0x808   : > { %v3309_v58 = vpop.f32.mrb[88].mxu1 }
 0x809   : > { %v8565_v49 = vadd.f32 %v3309_v58, %v7707_v34  ;;  %v3311_v25 = vpop.f32.mrb[89].mxu1 }
 0x80a   : > { %v8568_v23 = vadd.f32 %v3311_v25, %v7709_v35  ;;  %v3313_v5 = vpop.f32.mrb[90].mxu1 }
 0x80b   : > { %9131 = vst [vmem:[#allocation34_spill] sm:$0xff] %v8565_v49  ;;  %v3354_v16 = vmul.f32 %v8565_v49, %v8565_v49  ;;  %v8573_v34 = vadd.f32 %v3313_v5, %v7703_v29  ;;  %v3315_v32 = vpop.f32.mrb[91].mxu1  ;;  %v8586_v29 = vld [vmem:[#allocation13 + $0x18] sm:$0xff]  ;;  %v9144_v5 = vsub.s32 2, %v9143_v4 }
 0x80c   : > { %9132 = vst [vmem:[#allocation35_spill] sm:$0xff] %v8568_v23  ;;  %v3355_v10 = vmul.f32 %v8568_v23, %v8568_v23  ;;  %v8578_v35 = vadd.f32 %v3315_v32, %v7705_v30  ;;  %v5761_v30 = vcombine.high %v8582_v11, %v8584_v59  ;;  %v5762_v12 = vcombine.low %v8586_v29, %v8592_v40  ;;  %v3500_v4 = vld [vmem:[#allocation13 + $0xf8] sm:$0xff] }
 0x80d   : > { %9133 = vst [vmem:[#allocation36_spill] sm:$0xff] %v8573_v34  ;;  %v3356_v43 = vmul.f32 %v8573_v34, %v8573_v34  ;;  %v5763_v0 = vcombine.high %v8586_v29, %v8592_v40  ;;  %v3434_v24 = vrot.slane %v3345_v1, %v9144_v5  ;;  %v3503_v5 = vld [vmem:[#allocation13 + $0x110] sm:$0xff] }
 0x80e   : > { %9134 = vst [vmem:[#allocation37_spill] sm:$0xff] %v8578_v35  ;;  %v3357_v48 = vmul.f32 %v8578_v35, %v8578_v35  ;;  %v3374_v41 = vadd.f32 %v3355_v10, %v3354_v16  ;;  %4383 = vmatprep.subr.bf16.mxu0 %v5761_v30  ;;  %v8632_v10 = vrot.slane %v3430_v3, %v9142_v63  ;;  %v3479_v30 = vld [vmem:[#allocation13 + $0x50] sm:$0xff]  ;;  %v3496_v3 = vld [vmem:[#allocation13 + $0xd8] sm:$0xff] }
 0x80f   : > { %4456 = vmatprep.subr.bf16.mxu1 %v5763_v0  ;;  %v8629_v39 = vrot.slane %v3434_v24, %v9142_v63  ;;  %v3499_v63 = vld [vmem:[#allocation13 + $0xf0] sm:$0xff] }
 0x810   : > { %3375 = vadd.xlane.f32.xlu0 %v3374_v41  ;;  %v3319_v38 = vpop.f32.mrb[92].mxu1  ;;  %v3377_v31 = vadd.f32 %v3357_v48, %v3356_v43 }
 0x811   : > { %v8601_v51 = vadd.f32 %v3319_v38, %v7723_v46  ;;  %v3321_v56 = vpop.f32.mrb[93].mxu1 }
 0x812   : > { %v8604_v7 = vadd.f32 %v3321_v56, %v7725_v47  ;;  %3378 = vadd.xlane.f32.xlu1 %v3377_v31  ;;  %v3323_v37 = vpop.f32.mrb[94].mxu1 }
 0x813   : > { %9135 = vst [vmem:[#allocation38_spill] sm:$0xff] %v8601_v51  ;;  %v3358_v14 = vmul.f32 %v8601_v51, %v8601_v51  ;;  %v8609_v60 = vadd.f32 %v3323_v37, %v9137_v36  ;;  %v3325_v33 = vpop.f32.mrb[95].mxu1  ;;  %v3483_v37 = vld [vmem:[#allocation13 + $0x70] sm:$0xff]  ;;  %v3484_v36 = vld [vmem:[#allocation13 + $0x78] sm:$0xff] }
 0x814   : > { %9136 = vst [vmem:[#allocation39_spill] sm:$0xff] %v8604_v7  ;;  %v3359_v27 = vmul.f32 %v8604_v7, %v8604_v7  ;;  %v8614_v46 = vadd.f32 %v3325_v33, %v9139_v42 }
 0x815   : > { %9138 = vst [vmem:[#allocation23_spill] sm:$0xff] %v8609_v60  ;;  %v3360_v61 = vmul.f32 %v8609_v60, %v8609_v60 }
 0x816   : > { %9140 = vst [vmem:[#allocation24_spill] sm:$0xff] %v8614_v46  ;;  %v3361_v47 = vmul.f32 %v8614_v46, %v8614_v46  ;;  %v3380_v54 = vadd.f32 %v3359_v27, %v3358_v14  ;;  %v3480_v14 = vld [vmem:[#allocation13 + $0x58] sm:$0xff] }
 0x818   : > { %3381 = vadd.xlane.f32.xlu0 %v3380_v54  ;;  %v3383_v19 = vadd.f32 %v3361_v47, %v3360_v61  ;;  %v5769_v61 = vcombine.high %v3479_v30, %v3483_v37  ;;  %v5771_v47 = vcombine.high %v3480_v14, %v3484_v36  ;;  %v3487_v54 = vld [vmem:[#allocation13 + $0x90] sm:$0xff] }
 0x81a   : > { %3384 = vadd.xlane.f32.xlu1 %v3383_v19  ;;  %v3491_v19 = vld [vmem:[#allocation13 + $0xb0] sm:$0xff] }
 0x877   : > { %v3364_v17 = vpop.xlane.xlu0 %3363 }
 0x878   : > { %v3386_v26 = vmul.f32 0.00390625, %v3364_v17  ;;  %v3488_v17 = vld [vmem:[#allocation13 + $0x98] sm:$0xff] }
 0x879   : > { %v3367_v18 = vpop.xlane.xlu1 %3366 }
 0x87a   : > { %v3394_v13 = vadd.f32 1e-05, %v3386_v26  ;;  %v3387_v2 = vmul.f32 0.00390625, %v3367_v18  ;;  %v3492_v26 = vld [vmem:[#allocation13 + $0xb8] sm:$0xff] }
 0x87b   : > { %v5779_v1 = vcombine.high %v3488_v17, %v3492_v26  ;;  %v5778_v11 = vcombine.low %v3488_v17, %v3492_v26  ;;  %v3523_v26 = vld [vmem:[#allocation13 + $0x1b0] sm:$0xff] }
 0x87c   : > { %6829 = vrsqrt.f32 %v3394_v13  ;;  %v3395_v21 = vadd.f32 1e-05, %v3387_v2  ;;  %v5768_v13 = vcombine.low %v3479_v30, %v3483_v37  ;;  %v5770_v2 = vcombine.low %v3480_v14, %v3484_v36  ;;  %v3516_v37 = vld [vmem:[#allocation13 + $0x178] sm:$0xff] }
 0x87e   : > { %6831 = vrsqrt.f32 %v3395_v21 }
 0x87f   : > { %v3370_v62 = vpop.xlane.xlu0 %3369 }
 0x880   : > { %v3388_v57 = vmul.f32 0.00390625, %v3370_v62  ;;  %v5777_v62 = vcombine.high %v3487_v54, %v3491_v19 }
 0x882   : > { %v3396_v58 = vadd.f32 1e-05, %v3388_v57 }
 0x883   : > { %v3373_v25 = vpop.xlane.xlu0 %3372 }
 0x884   : > { %6833 = vrsqrt.f32 %v3396_v58  ;;  %v3389_v53 = vmul.f32 0.00390625, %v3373_v25  ;;  %v5776_v25 = vcombine.low %v3487_v54, %v3491_v19  ;;  %v3519_v19 = vld [vmem:[#allocation13 + $0x190] sm:$0xff] }
 0x886   : > { %v6830_v52 = vpop.eup %6829  ;;  %v3397_v16 = vadd.f32 1e-05, %v3389_v53 }
 0x887   : > { %v3410_v32 = vmul.f32 %v6830_v52, %v8525_v15  ;;  %v3411_v9 = vmul.f32 %v6830_v52, %v8528_v22  ;;  %v3507_v52 = vld [vmem:[#allocation13 + $0x130] sm:$0xff] }
 0x888   : > { %v6832_v43 = vpop.eup %6831  ;;  %6835 = vrsqrt.f32 %v3397_v16  ;;  %v3504_v16 = vld [vmem:[#allocation13 + $0x118] sm:$0xff]  ;;  %v5793_v30 = vcombine.high %v3503_v5, %v3507_v52  ;;  %v5792_v36 = vcombine.low %v3503_v5, %v3507_v52  ;;  %v3535_v5 = vld [vmem:[#allocation13 + $0x210] sm:$0xff] }
 0x889   : > { %v3412_v48 = vmul.f32 %v6832_v43, %v8531_v20  ;;  %v3413_v41 = vmul.f32 %v6832_v43, %v8536_v28  ;;  %v3446_v0 = vmul.f32 %v8629_v39, %v3411_v9  ;;  %v3445_v31 = vmul.f32 %v8632_v10, %v3410_v32  ;;  %v3508_v32 = vld [vmem:[#allocation13 + $0x138] sm:$0xff] }
 0x88a   : > { %v5787_v43 = vcombine.high %v3496_v3, %v3500_v4 }
 0x88b   : > { %v3448_v38 = vmul.f32 %v8629_v39, %v3413_v41  ;;  %v3447_v56 = vmul.f32 %v8632_v10, %v3412_v48  ;;  %v5786_v41 = vcombine.low %v3496_v3, %v3500_v4 }
 0x88d   : > { %v8640_v33 = vpack.c.bf16 %v3448_v38, %v3446_v0  ;;  %v8642_v27 = vpack.c.bf16 %v3447_v56, %v3445_v31  ;;  %v5795_v0 = vcombine.high %v3504_v16, %v3508_v32  ;;  %v3511_v38 = vld [vmem:[#allocation13 + $0x150] sm:$0xff]  ;;  %v3512_v56 = vld [vmem:[#allocation13 + $0x158] sm:$0xff] }
 0x88e   : > { %v6834_v42 = vpop.eup %6833  ;;  %v3515_v31 = vld [vmem:[#allocation13 + $0x170] sm:$0xff]  ;;  %v5803_v54 = vcombine.high %v3512_v56, %v3516_v37 }
 0x88f   : > { %4269 = vmatprep.mubr.bf16.mxu0 %v8640_v33  ;;  %4342 = vmatprep.mubr.bf16.mxu1 %v8640_v33  ;;  %v3415_v18 = vmul.f32 %v6834_v42, %v8548_v6  ;;  %v3414_v21 = vmul.f32 %v6834_v42, %v8545_v55  ;;  %v5794_v42 = vcombine.low %v3504_v16, %v3508_v32  ;;  %v3539_v16 = vld [vmem:[#allocation13 + $0x230] sm:$0xff]  ;;  %v3536_v32 = vld [vmem:[#allocation13 + $0x218] sm:$0xff] }
 0x890   : > { %4270 = vmatmul.mubr.bf16.vlgmr.msra.gmra.mrb[48].mxu0 %v8642_v27  ;;  %4343 = vmatmul.mubr.bf16.vlgmr.msra.gmra.mrb[96].mxu1 %v8642_v27 }
 0x891   : > { %4384 = vmatpush1.bf16.msra.mxu0 %v5760_v8  ;;  %4457 = vmatpush1.bf16.msra.mxu1 %v5762_v12  ;;  %v3450_v59 = vmul.f32 %v8629_v39, %v3415_v18  ;;  %v3495_v8 = vld [vmem:[#allocation13 + $0xd0] sm:$0xff]  ;;  %v3449_v40 = vmul.f32 %v8632_v10, %v3414_v21  ;;  %v3520_v18 = vld [vmem:[#allocation13 + $0x198] sm:$0xff] }
 0x892   : > { %v6836_v45 = vpop.eup %6835  ;;  %4385 = vmatprep.subr.bf16.mxu0 %v5769_v61  ;;  %4458 = vmatprep.subr.bf16.mxu1 %v5771_v47  ;;  %v5785_v9 = vcombine.high %v3495_v8, %v3499_v63  ;;  %v5784_v48 = vcombine.low %v3495_v8, %v3499_v63  ;;  %v5801_v47 = vcombine.high %v3511_v38, %v3515_v31  ;;  %v3532_v8 = vld [vmem:[#allocation13 + $0x1f8] sm:$0xff] }
 0x893   : > { %v3417_v57 = vmul.f32 %v6836_v45, %v8556_v50  ;;  %v3416_v58 = vmul.f32 %v6836_v45, %v8551_v44  ;;  %v5800_v45 = vcombine.low %v3511_v38, %v3515_v31  ;;  %v5825_v38 = vcombine.high %v3535_v5, %v3539_v16 }
 0x895   : > { %4386 = vmatpush1.bf16.msra.mxu0 %v5768_v13  ;;  %4459 = vmatpush1.bf16.msra.mxu1 %v5770_v2  ;;  %v3452_v29 = vmul.f32 %v8629_v39, %v3417_v57  ;;  %v3451_v12 = vmul.f32 %v8632_v10, %v3416_v58  ;;  %v3524_v13 = vld [vmem:[#allocation13 + $0x1b8] sm:$0xff]  ;;  %v5809_v57 = vcombine.high %v3519_v19, %v3523_v26 }
 0x896   : > { %4387 = vmatprep.subr.bf16.mxu0 %v5777_v62  ;;  %4460 = vmatprep.subr.bf16.mxu1 %v5779_v1  ;;  %v5802_v62 = vcombine.low %v3512_v56, %v3516_v37  ;;  %v5811_v58 = vcombine.high %v3520_v18, %v3524_v13  ;;  %v3543_v56 = vld [vmem:[#allocation13 + $0x250] sm:$0xff] }
 0x897   : > { %v8662_v24 = vpack.c.bf16 %v3452_v29, %v3450_v59  ;;  %v8664_v53 = vpack.c.bf16 %v3451_v12, %v3449_v40  ;;  %v3528_v59 = vld [vmem:[#allocation13 + $0x1d8] sm:$0xff]  ;;  %v5808_v40 = vcombine.low %v3519_v19, %v3523_v26  ;;  %v5810_v12 = vcombine.low %v3520_v18, %v3524_v13  ;;  %v3547_v37 = vld [vmem:[#allocation13 + $0x270] sm:$0xff] }
 0x898   : > { %v5819_v4 = vcombine.high %v3528_v59, %v3532_v8  ;;  %v5833_v26 = vcombine.high %v3543_v56, %v3547_v37 }
 0x899   : > { %4388 = vmatpush1.bf16.msra.mxu0 %v5776_v25  ;;  %4461 = vmatpush1.bf16.msra.mxu1 %v5778_v11  ;;  %v3527_v25 = vld [vmem:[#allocation13 + $0x1d0] sm:$0xff] }
 0x89a   : > { %4279 = vmatprep.mubr.bf16.mxu0 %v8662_v24  ;;  %4352 = vmatprep.mubr.bf16.mxu1 %v8662_v24  ;;  %v3531_v11 = vld [vmem:[#allocation13 + $0x1f0] sm:$0xff] }
 0x89b   : > { %4280 = vmatmul.mubr.bf16.gmra.mrb[52].mxu0 %v8664_v53  ;;  %4353 = vmatmul.mubr.bf16.gmra.mrb[100].mxu1 %v8664_v53  ;;  %v5817_v3 = vcombine.high %v3527_v25, %v3531_v11 }
 0x89c   : > { %4389 = vmatprep.subr.bf16.mxu0 %v5785_v9  ;;  %4462 = vmatprep.subr.bf16.mxu1 %v5787_v43  ;;  %v3540_v9 = vld [vmem:[#allocation13 + $0x238] sm:$0xff] }
 0x89d   : > { %4390 = vmatpush1.bf16.msra.mxu0 %v5784_v48  ;;  %4463 = vmatpush1.bf16.msra.mxu1 %v5786_v41  ;;  %v3376_v14 = vpop.xlane.xlu0 %3375  ;;  %v5816_v41 = vcombine.low %v3527_v25, %v3531_v11  ;;  %v5827_v31 = vcombine.high %v3536_v32, %v3540_v9  ;;  %v3555_v11 = vld [vmem:[#allocation13 + $0x2b0] sm:$0xff] }
 0x89e   : > { %v3390_v61 = vmul.f32 0.00390625, %v3376_v14  ;;  %4391 = vmatprep.subr.bf16.mxu0 %v5793_v30  ;;  %4464 = vmatprep.subr.bf16.mxu1 %v5795_v0  ;;  %v5818_v30 = vcombine.low %v3528_v59, %v3532_v8  ;;  %v3544_v14 = vld [vmem:[#allocation13 + $0x258] sm:$0xff] }
 0x89f   : > { %v3379_v17 = vpop.xlane.xlu1 %3378  ;;  %v3552_v59 = vld [vmem:[#allocation13 + $0x298] sm:$0xff] }
 0x8a0   : > { %v3398_v2 = vadd.f32 1e-05, %v3390_v61  ;;  %v3391_v21 = vmul.f32 0.00390625, %v3379_v17  ;;  %v5824_v61 = vcombine.low %v3535_v5, %v3539_v16  ;;  %v3556_v8 = vld [vmem:[#allocation13 + $0x2b8] sm:$0xff] }
 0x8a1   : > { %4392 = vmatpush1.bf16.msra.mxu0 %v5792_v36  ;;  %4465 = vmatpush1.bf16.msra.mxu1 %v5794_v42  ;;  %v3548_v36 = vld [vmem:[#allocation13 + $0x278] sm:$0xff] }
 0x8a2   : > { %6837 = vrsqrt.f32 %v3398_v2  ;;  %v3399_v1 = vadd.f32 1e-05, %v3391_v21  ;;  %4393 = vmatprep.subr.bf16.mxu0 %v5801_v47  ;;  %4466 = vmatprep.subr.bf16.mxu1 %v5803_v54  ;;  %v5826_v47 = vcombine.low %v3536_v32, %v3540_v9  ;;  %v5835_v18 = vcombine.high %v3544_v14, %v3548_v36 }
 0x8a3   : > { %v5832_v21 = vcombine.low %v3543_v56, %v3547_v37  ;;  %v5843_v32 = vcombine.high %v3552_v59, %v3556_v8  ;;  %v5842_v9 = vcombine.low %v3552_v59, %v3556_v8  ;;  %v3584_v59 = vld [vmem:[#allocation13 + $0x398] sm:$0xff] }
 0x8a4   : > { %6839 = vrsqrt.f32 %v3399_v1  ;;  %v3551_v1 = vld [vmem:[#allocation13 + $0x290] sm:$0xff]  ;;  %v3588_v8 = vld [vmem:[#allocation13 + $0x3b8] sm:$0xff] }
 0x8a5   : > { %4394 = vmatpush1.bf16.msra.mxu0 %v5800_v45  ;;  %4467 = vmatpush1.bf16.msra.mxu1 %v5802_v62  ;;  %v3382_v29 = vpop.xlane.xlu0 %3381  ;;  %v5834_v45 = vcombine.low %v3544_v14, %v3548_v36  ;;  %v5841_v16 = vcombine.high %v3551_v1, %v3555_v11 }
 0x8a6   : > { %v3392_v63 = vmul.f32 0.00390625, %v3382_v29  ;;  %4395 = vmatprep.subr.bf16.mxu0 %v5809_v57  ;;  %4468 = vmatprep.subr.bf16.mxu1 %v5811_v58  ;;  %v3559_v29 = vld [vmem:[#allocation13 + $0x2d0] sm:$0xff] }
 0x8a7   : > { %v3385_v52 = vpop.xlane.xlu1 %3384 }
 0x8a8   : > { %v3400_v43 = vadd.f32 1e-05, %v3392_v63  ;;  %v3393_v48 = vmul.f32 0.00390625, %v3385_v52  ;;  %v3563_v63 = vld [vmem:[#allocation13 + $0x2f0] sm:$0xff]  ;;  %v5840_v52 = vcombine.low %v3551_v1, %v3555_v11 }
 0x8a9   : > { %4396 = vmatpush1.bf16.msra.mxu0 %v5808_v40  ;;  %4469 = vmatpush1.bf16.msra.mxu1 %v5810_v12  ;;  %v5848_v56 = vcombine.low %v3559_v29, %v3563_v63  ;;  %v3587_v11 = vld [vmem:[#allocation13 + $0x3b0] sm:$0xff] }
 0x8aa   : > { %6841 = vrsqrt.f32 %v3400_v43  ;;  %v3401_v0 = vadd.f32 1e-05, %v3393_v48  ;;  %4397 = vmatprep.subr.bf16.mxu0 %v5817_v3  ;;  %4470 = vmatprep.subr.bf16.mxu1 %v5819_v4  ;;  %v3560_v3 = vld [vmem:[#allocation13 + $0x2d8] sm:$0xff] }
 0x8ab   : > { %v3564_v4 = vld [vmem:[#allocation13 + $0x2f8] sm:$0xff] }
 0x8ac   : > { %v6838_v42 = vpop.eup %6837  ;;  %6843 = vrsqrt.f32 %v3401_v0  ;;  %v5851_v0 = vcombine.high %v3560_v3, %v3564_v4  ;;  %v5850_v37 = vcombine.low %v3560_v3, %v3564_v4  ;;  %v5875_v4 = vcombine.high %v3584_v59, %v3588_v8 }
 0x8ad   : > { %4398 = vmatpush1.bf16.msra.mxu0 %v5816_v41  ;;  %4471 = vmatpush1.bf16.msra.mxu1 %v5818_v30  ;;  %v3419_v54 = vmul.f32 %v6838_v42, %v8568_v23  ;;  %v3418_v19 = vmul.f32 %v6838_v42, %v8565_v49  ;;  %v5849_v30 = vcombine.high %v3559_v29, %v3563_v63 }
 0x8ae   : > { %v6840_v17 = vpop.eup %6839  ;;  %4399 = vmatprep.subr.bf16.mxu0 %v5825_v38  ;;  %4472 = vmatprep.subr.bf16.mxu1 %v5827_v31 }
 0x8af   : > { %v3421_v13 = vmul.f32 %v6840_v17, %v8578_v35  ;;  %v3420_v2 = vmul.f32 %v6840_v17, %v8573_v34  ;;  %v3454_v62 = vmul.f32 %v8629_v39, %v3419_v54  ;;  %v3453_v58 = vmul.f32 %v8632_v10, %v3418_v19  ;;  %v3571_v54 = vld [vmem:[#allocation13 + $0x330] sm:$0xff]  ;;  %v3568_v19 = vld [vmem:[#allocation13 + $0x318] sm:$0xff] }
 0x8b0   : > { %v3572_v17 = vld [vmem:[#allocation13 + $0x338] sm:$0xff] }
 0x8b1   : > { %4400 = vmatpush1.bf16.msra.mxu0 %v5824_v61  ;;  %4473 = vmatpush1.bf16.msra.mxu1 %v5826_v47  ;;  %v3456_v57 = vmul.f32 %v8629_v39, %v3421_v13  ;;  %v3455_v25 = vmul.f32 %v8632_v10, %v3420_v2  ;;  %v3567_v47 = vld [vmem:[#allocation13 + $0x310] sm:$0xff]  ;;  %v5858_v1 = vcombine.low %v3568_v19, %v3572_v17 }
 0x8b2   : > { %4401 = vmatprep.subr.bf16.mxu0 %v5833_v26  ;;  %4474 = vmatprep.subr.bf16.mxu1 %v5835_v18  ;;  %v3575_v13 = vld [vmem:[#allocation13 + $0x350] sm:$0xff]  ;;  %v5857_v2 = vcombine.high %v3567_v47, %v3571_v54 }
 0x8b3   : > { %v8678_v40 = vpack.c.bf16 %v3456_v57, %v3454_v62  ;;  %v8680_v12 = vpack.c.bf16 %v3455_v25, %v3453_v58  ;;  %v3580_v62 = vld [vmem:[#allocation13 + $0x378] sm:$0xff]  ;;  %v3583_v25 = vld [vmem:[#allocation13 + $0x390] sm:$0xff] }
 0x8b4   : > { %v6842_v5 = vpop.eup %6841  ;;  %v5873_v3 = vcombine.high %v3583_v25, %v3587_v11 }
 0x8b5   : > { %4402 = vmatpush1.bf16.msra.mxu0 %v5832_v21  ;;  %4475 = vmatpush1.bf16.msra.mxu1 %v5834_v45  ;;  %v3423_v43 = vmul.f32 %v6842_v5, %v8604_v7  ;;  %v3422_v48 = vmul.f32 %v6842_v5, %v8601_v51  ;;  %v3579_v21 = vld [vmem:[#allocation13 + $0x370] sm:$0xff]  ;;  %v3576_v45 = vld [vmem:[#allocation13 + $0x358] sm:$0xff] }
 0x8b6   : > { %v6844_v41 = vpop.eup %6843  ;;  %4289 = vmatprep.mubr.bf16.mxu0 %v8678_v40  ;;  %4362 = vmatprep.mubr.bf16.mxu1 %v8678_v40  ;;  %v5865_v57 = vcombine.high %v3575_v13, %v3579_v21  ;;  %v5867_v58 = vcombine.high %v3576_v45, %v3580_v62  ;;  %v5864_v29 = vcombine.low %v3575_v13, %v3579_v21  ;;  %v3591_v5 = vld [vmem:[#allocation13 + $0x3d0] sm:$0xff]  ;;  %v6621_v13 = vld [vmem:[#allocation14 + $0xa4] ss:$8 sps:$4 sm:$0xff]  }
 0x8b7   : > { %4290 = vmatmul.mubr.bf16.gmra.mrb[56].mxu0 %v8680_v12  ;;  %4363 = vmatmul.mubr.bf16.gmra.mrb[104].mxu1 %v8680_v12  ;;  %v3425_v38 = vmul.f32 %v6844_v41, %v8614_v46  ;;  %v3424_v31 = vmul.f32 %v6844_v41, %v8609_v60  ;;  %v3458_v14 = vmul.f32 %v8629_v39, %v3423_v43  ;;  %v6624_v21 = vld [vmem:[#allocation14 + $0xb4] ss:$8 sps:$4 sm:$0xff]  }
 0x8b8   : > { %4403 = vmatprep.subr.bf16.mxu0 %v5841_v16  ;;  %4476 = vmatprep.subr.bf16.mxu1 %v5843_v32  ;;  %v3457_v42 = vmul.f32 %v8632_v10, %v3422_v48  ;;  %v5866_v63 = vcombine.low %v3576_v45, %v3580_v62  ;;  %v3592_v16 = vld [vmem:[#allocation13 + $0x3d8] sm:$0xff]  ;;  %v5874_v43 = vcombine.low %v3584_v59, %v3588_v8  ;;  %v6627_v62 = vld [vmem:[#allocation14 + $0xc4] ss:$8 sps:$4 sm:$0xff]  }
 0x8b9   : > { %4404 = vmatpush1.bf16.msra.mxu0 %v5840_v52  ;;  %4477 = vmatpush1.bf16.msra.mxu1 %v5842_v9  ;;  %v3460_v36 = vmul.f32 %v8629_v39, %v3425_v38  ;;  %v3459_v61 = vmul.f32 %v8632_v10, %v3424_v31  ;;  %v5859_v39 = vcombine.high %v3568_v19, %v3572_v17  ;;  %v3595_v52 = vld [vmem:[#allocation13 + $0x3f0] sm:$0xff]  ;;  %v3596_v32 = vld [vmem:[#allocation13 + $0x3f8] sm:$0xff]  ;;  %v6595_v38 = vld [vmem:[#allocation14 + $0x20] ss:$8 sps:$4 sm:$0xff]  }
 0x8ba   : > { %4405 = vmatprep.subr.bf16.mxu0 %v5849_v30  ;;  %4478 = vmatprep.subr.bf16.mxu1 %v5851_v0  ;;  %v5856_v10 = vcombine.low %v3567_v47, %v3571_v54  ;;  %v5872_v9 = vcombine.low %v3583_v25, %v3587_v11  ;;  %v5881_v48 = vcombine.high %v3591_v5, %v3595_v52  ;;  %v6592_v0 = vld [vmem:[#allocation14 + $0x10] ss:$8 sps:$4 sm:$0xff]   ;;  %v6612_v47 = vld [vmem:[#allocation14 + $0x74] ss:$8 sps:$4 sm:$0xff]   ;;  %v6615_v19 = vld [vmem:[#allocation14 + $0x84] ss:$8 sps:$4 sm:$0xff]  }
 0x8bb   : > { %v8694_v26 = vpack.c.bf16 %v3460_v36, %v3458_v14  ;;  %v8696_v18 = vpack.c.bf16 %v3459_v61, %v3457_v42  ;;  %v5880_v41 = vcombine.low %v3591_v5, %v3595_v52  ;;  %v5882_v30 = vcombine.low %v3592_v16, %v3596_v32  ;;  %v6598_v31 = vld [vmem:[#allocation14 + $0x30] ss:$8 sps:$4 sm:$0xff]   ;;  %v6606_v14 = vld [vmem:[#allocation14 + $0x54] ss:$8 sps:$4 sm:$0xff]   ;;  %v6609_v42 = vld [vmem:[#allocation14 + $0x64] ss:$8 sps:$4 sm:$0xff]  }
 0x8bc   : > { %v6604_v36 = vld [vmem:[#allocation14 + $0x50] ss:$8 sps:$4 sm:$0xff]   ;;  %v6607_v61 = vld [vmem:[#allocation14 + $0x60] ss:$8 sps:$4 sm:$0xff]   ;;  %v6636_v25 = vld [vmem:[#allocation14 + $0xf4] ss:$8 sps:$4 sm:$0xff]  }
 0x8bd   : > { %4406 = vmatpush1.bf16.msra.mxu0 %v5848_v56  ;;  %4479 = vmatpush1.bf16.msra.mxu1 %v5850_v37  ;;  %v6603_v56 = vld [vmem:[#allocation14 + $0x44] ss:$8 sps:$4 sm:$0xff]   ;;  %v6601_v37 = vld [vmem:[#allocation14 + $0x40] ss:$8 sps:$4 sm:$0xff]   ;;  %v6610_v54 = vld [vmem:[#allocation14 + $0x70] ss:$8 sps:$4 sm:$0xff]  }
 0x8be   : > { %4299 = vmatprep.mubr.bf16.mxu0 %v8694_v26  ;;  %4372 = vmatprep.mubr.bf16.mxu1 %v8694_v26  ;;  %v6613_v17 = vld [vmem:[#allocation14 + $0x80] ss:$8 sps:$4 sm:$0xff]   ;;  %v6622_v45 = vld [vmem:[#allocation14 + $0xb0] ss:$8 sps:$4 sm:$0xff]   ;;  %v6639_v59 = vld [vmem:[#allocation14 + $0x104] ss:$8 sps:$4 sm:$0xff]  }
 0x8bf   : > { %4300 = vmatmul.mubr.bf16.gmra.mrb[60].mxu0 %v8696_v18  ;;  %4373 = vmatmul.mubr.bf16.gmra.mrb[108].mxu1 %v8696_v18  ;;  %v6634_v11 = vld [vmem:[#allocation14 + $0xf0] ss:$8 sps:$4 sm:$0xff]  }
 0x8c0   : > { %4407 = vmatprep.subr.bf16.mxu0 %v5857_v2  ;;  %4415 = vmatprep.mubr.bf16.mxu0 %v8640_v33  ;;  %v6619_v2 = vld [vmem:[#allocation14 + $0xa0] ss:$8 sps:$4 sm:$0xff]  }
 0x8c1   : > { %4480 = vmatprep.subr.bf16.mxu1 %v5859_v39  ;;  %4488 = vmatprep.mubr.bf16.mxu1 %v8640_v33  ;;  %v5883_v33 = vcombine.high %v3592_v16, %v3596_v32  ;;  %v6625_v39 = vld [vmem:[#allocation14 + $0xc0] ss:$8 sps:$4 sm:$0xff]  }
 0x8c2   : > { %4408 = vmatpush1.bf16.msra.mxu0 %v5856_v10  ;;  %4481 = vmatpush1.bf16.msra.mxu1 %v5858_v1  ;;  %v6630_v10 = vld [vmem:[#allocation14 + $0xd4] ss:$8 sps:$4 sm:$0xff]   ;;  %v6628_v1 = vld [vmem:[#allocation14 + $0xd0] ss:$8 sps:$4 sm:$0xff]  }
 0x8c3   : > { %4409 = vmatprep.subr.bf16.mxu0 %v5865_v57  ;;  %4482 = vmatprep.subr.bf16.mxu1 %v5867_v58  ;;  %v6633_v57 = vld [vmem:[#allocation14 + $0xe4] ss:$8 sps:$4 sm:$0xff]   ;;  %v6631_v58 = vld [vmem:[#allocation14 + $0xe0] ss:$8 sps:$4 sm:$0xff]  }
 0x8c6   : > { %4410 = vmatpush1.bf16.msra.mxu0 %v5864_v29  ;;  %4483 = vmatpush1.bf16.msra.mxu1 %v5866_v63 }
 0x8c7   : > { %4411 = vmatprep.subr.bf16.mxu0 %v5873_v3  ;;  %4484 = vmatprep.subr.bf16.mxu1 %v5875_v4 }
 0x8ca   : > { %4412 = vmatpush1.bf16.msra.mxu0 %v5872_v9  ;;  %4485 = vmatpush1.bf16.msra.mxu1 %v5874_v43 }
 0x8cb   : > { %4413 = vmatprep.subr.bf16.mxu0 %v5881_v48  ;;  %4486 = vmatprep.subr.bf16.mxu1 %v5883_v33 }
 0x8ce   : > { %4414 = vmatpush1.bf16.msra.mxu0 %v5880_v41  ;;  %4487 = vmatpush1.bf16.msra.mxu1 %v5882_v30 }
 0x8d1   : > { %4416 = vmatmul.mubr.bf16.vlgmr.msra.gmra.mrb[64].mxu0 %v8642_v27  ;;  %4489 = vmatmul.mubr.bf16.vlgmr.msra.gmra.mrb[112].mxu1 %v8642_v27  ;;  %v6591_v27 = vld [vmem:[#allocation14 + $0x4] ss:$8 sps:$4 sm:$0xff]  }
 0x8d2   : > { %4425 = vmatprep.mubr.bf16.mxu0 %v8662_v24  ;;  %4498 = vmatprep.mubr.bf16.mxu1 %v8662_v24  ;;  %v6589_v24 = vld [vmem:[#allocation14] ss:$8 sps:$4 sm:$0xff]  }
 0x8d3   : > { %5185 = vmatprep.subr.bf16.mxu0 %v6591_v27 }
 0x8d4   : > { %5186 = vmatpush1.bf16.msra.mxu0 %v6589_v24 }
 0x8d9   : > { %4426 = vmatmul.mubr.bf16.gmra.mrb[68].mxu0 %v8664_v53  ;;  %4499 = vmatmul.mubr.bf16.gmra.mrb[116].mxu1 %v8664_v53  ;;  %v6594_v53 = vld [vmem:[#allocation14 + $0x14] ss:$8 sps:$4 sm:$0xff]  }
 0x8da   : > { %4435 = vmatprep.mubr.bf16.mxu0 %v8678_v40  ;;  %4508 = vmatprep.mubr.bf16.mxu1 %v8678_v40  ;;  %v6597_v40 = vld [vmem:[#allocation14 + $0x24] ss:$8 sps:$4 sm:$0xff]  }
 0x8db   : > { %5187 = vmatprep.subr.bf16.mxu0 %v6594_v53 }
 0x8dc   : > { %5188 = vmatpush1.bf16.msra.mxu0 %v6592_v0 }
 0x8dd   : > { %5189 = vmatprep.subr.bf16.mxu0 %v6597_v40 }
 0x8e0   : > { %5190 = vmatpush1.bf16.msra.mxu0 %v6595_v38 }
 0x8e1   : > { %4436 = vmatmul.mubr.bf16.gmra.mrb[72].mxu0 %v8680_v12  ;;  %4509 = vmatmul.mubr.bf16.gmra.mrb[120].mxu1 %v8680_v12  ;;  %v6600_v12 = vld [vmem:[#allocation14 + $0x34] ss:$8 sps:$4 sm:$0xff]  }
 0x8e2   : > { %4445 = vmatprep.mubr.bf16.mxu0 %v8694_v26  ;;  %4518 = vmatprep.mubr.bf16.mxu1 %v8694_v26  ;;  %v6618_v26 = vld [vmem:[#allocation14 + $0x94] ss:$8 sps:$4 sm:$0xff]  }
 0x8e3   : > { %5191 = vmatprep.subr.bf16.mxu0 %v6600_v12 }
 0x8e4   : > { %5192 = vmatpush1.bf16.msra.mxu0 %v6598_v31 }
 0x8e5   : > { %5193 = vmatprep.subr.bf16.mxu0 %v6603_v56 }
 0x8e8   : > { %5194 = vmatpush1.bf16.msra.mxu0 %v6601_v37 }
 0x8e9   : > { %4446 = vmatmul.mubr.bf16.gmra.mrb[76].mxu0 %v8696_v18  ;;  %4519 = vmatmul.mubr.bf16.gmra.mrb[124].mxu1 %v8696_v18  ;;  %v6616_v18 = vld [vmem:[#allocation14 + $0x90] ss:$8 sps:$4 sm:$0xff]  }
 0x8ea   : > { %5195 = vmatprep.subr.bf16.mxu0 %v6606_v14 }
 0x8ec   : > { %5196 = vmatpush1.bf16.msra.mxu0 %v6604_v36 }
 0x8ed   : > { %5197 = vmatprep.subr.bf16.mxu0 %v6609_v42 }
 0x8f0   : > { %5198 = vmatpush1.bf16.msra.mxu0 %v6607_v61 }
 0x8f1   : > { %5199 = vmatprep.subr.bf16.mxu0 %v6612_v47 }
 0x8f4   : > { %5200 = vmatpush1.bf16.msra.mxu0 %v6610_v54 }
 0x8f5   : > { %5201 = vmatprep.subr.bf16.mxu0 %v6615_v19 }
 0x8f8   : > { %5202 = vmatpush1.bf16.msra.mxu0 %v6613_v17 }
 0x8f9   : > { %5203 = vmatprep.subr.bf16.mxu0 %v6618_v26 }
 0x8fc   : > { %5204 = vmatpush1.bf16.msra.mxu0 %v6616_v18 }
 0x8fd   : > { %5205 = vmatprep.subr.bf16.mxu0 %v6621_v13 }
 0x900   : > { %5206 = vmatpush1.bf16.msra.mxu0 %v6619_v2 }
 0x901   : > { %5207 = vmatprep.subr.bf16.mxu0 %v6624_v21 }
 0x904   : > { %5208 = vmatpush1.bf16.msra.mxu0 %v6622_v45 }
 0x905   : > { %5209 = vmatprep.subr.bf16.mxu0 %v6627_v62 }
 0x908   : > { %5210 = vmatpush1.bf16.msra.mxu0 %v6625_v39 }
 0x909   : > { %5211 = vmatprep.subr.bf16.mxu0 %v6630_v10 }
 0x90c   : > { %5212 = vmatpush1.bf16.msra.mxu0 %v6628_v1 }
 0x90d   : > { %5213 = vmatprep.subr.bf16.mxu0 %v6633_v57 }
 0x910   : > { %5214 = vmatpush1.bf16.msra.mxu0 %v6631_v58 }
 0x911   : > { %5215 = vmatprep.subr.bf16.mxu0 %v6636_v25 }
 0x914   : > { %5216 = vmatpush1.bf16.msra.mxu0 %v6634_v11 }
 0x915   : > { %5258 = vmatprep.subr.bf16.mxu0 %v6639_v59 }
 0x963   : > { %v8718_v8 = vpop.f32.mrb[48].mxu0  ;;  %v8720_v29 = vpop.f32.mrb[96].mxu1 }
 0x964   : > { %v8722_v63 = vpop.f32.mrb[49].mxu0  ;;  %v8724_v3 = vpop.f32.mrb[97].mxu1  ;;  %v5884_v32 = vmul.f32 -1.442695, %v8718_v8  ;;  %v5886_v9 = vmul.f32 -1.442695, %v8720_v29 }
 0x965   : > { %v8726_v4 = vpop.f32.mrb[50].mxu0  ;;  %v8728_v5 = vpop.f32.mrb[98].mxu1  ;;  %v5885_v43 = vmul.f32 -1.442695, %v8722_v63  ;;  %v5887_v48 = vmul.f32 -1.442695, %v8724_v3 }
 0x966   : > { %v8730_v52 = vpop.f32.mrb[51].mxu0  ;;  %v8732_v16 = vpop.f32.mrb[99].mxu1  ;;  %6845 = vpow2.f32 %v5884_v32  ;;  %v5888_v30 = vmul.f32 -1.442695, %v8726_v4  ;;  %v5890_v53 = vmul.f32 -1.442695, %v8728_v5 }
 0x967   : > { %6847 = vpow2.f32 %v5886_v9  ;;  %v5889_v38 = vmul.f32 -1.442695, %v8730_v52  ;;  %v5891_v31 = vmul.f32 -1.442695, %v8732_v16 }
 0x968   : > { %6849 = vpow2.f32 %v5885_v43 }
 0x969   : > { %6851 = vpow2.f32 %v5887_v48 }
 0x96a   : > { %6853 = vpow2.f32 %v5888_v30 }
 0x96b   : > { %6855 = vpow2.f32 %v5890_v53 }
 0x96c   : > { %6857 = vpow2.f32 %v5889_v38 }
 0x96d   : > { %6859 = vpow2.f32 %v5891_v31 }
 0x96e   : > { %v8738_v33 = vpop.f32.mrb[52].mxu0  ;;  %v8740_v41 = vpop.f32.mrb[100].mxu1 }
 0x96f   : > { %v8743_v27 = vpop.f32.mrb[53].mxu0  ;;  %v8745_v24 = vpop.f32.mrb[101].mxu1  ;;  %v5892_v37 = vmul.f32 -1.442695, %v8738_v33  ;;  %v5894_v14 = vmul.f32 -1.442695, %v8740_v41 }
 0x970   : > { %v8748_v0 = vpop.f32.mrb[54].mxu0  ;;  %v8750_v40 = vpop.f32.mrb[102].mxu1  ;;  %v5893_v42 = vmul.f32 -1.442695, %v8743_v27  ;;  %v5895_v47 = vmul.f32 -1.442695, %v8745_v24 }
 0x971   : > { %v8753_v12 = vpop.f32.mrb[55].mxu0  ;;  %v8756_v56 = vpop.f32.mrb[103].mxu1  ;;  %6861 = vpow2.f32 %v5892_v37  ;;  %v5896_v25 = vmul.f32 -1.442695, %v8748_v0  ;;  %v5898_v59 = vmul.f32 -1.442695, %v8750_v40 }
 0x972   : > { %v6846_v36 = vpop.eup %6845  ;;  %6863 = vpow2.f32 %v5894_v14  ;;  %v5897_v32 = vmul.f32 -1.442695, %v8753_v12  ;;  %v5899_v53 = vmul.f32 -1.442695, %v8756_v56 }
 0x973   : > { %v6848_v61 = vpop.eup %6847  ;;  %v4625_v17 = vadd.f32 1.0, %v6846_v36  ;;  %6865 = vpow2.f32 %v5893_v42 }
 0x974   : > { %v6850_v54 = vpop.eup %6849  ;;  %v4627_v18 = vadd.f32 1.0, %v6848_v61  ;;  %6867 = vpow2.f32 %v5895_v47 }
 0x975   : > { %v6852_v19 = vpop.eup %6851  ;;  %v4626_v2 = vadd.f32 1.0, %v6850_v54  ;;  %6869 = vrcp.f32 %v4625_v17 }
 0x976   : > { %v6854_v26 = vpop.eup %6853  ;;  %v4628_v45 = vadd.f32 1.0, %v6852_v19  ;;  %6871 = vrcp.f32 %v4627_v18 }
 0x977   : > { %v6856_v13 = vpop.eup %6855  ;;  %v4629_v39 = vadd.f32 1.0, %v6854_v26  ;;  %6873 = vrcp.f32 %v4626_v2 }
 0x978   : > { %v6858_v21 = vpop.eup %6857  ;;  %v4631_v10 = vadd.f32 1.0, %v6856_v13  ;;  %6875 = vrcp.f32 %v4628_v45 }
 0x979   : > { %v6860_v62 = vpop.eup %6859  ;;  %v4630_v1 = vadd.f32 1.0, %v6858_v21  ;;  %6877 = vrcp.f32 %v4629_v39 }
 0x97a   : > { %v4632_v57 = vadd.f32 1.0, %v6860_v62  ;;  %6879 = vrcp.f32 %v4631_v10 }
 0x97b   : > { %v6862_v58 = vpop.eup %6861  ;;  %6881 = vrcp.f32 %v4630_v1 }
 0x97c   : > { %v6864_v11 = vpop.eup %6863  ;;  %6883 = vrcp.f32 %v4632_v57  ;;  %v4633_v43 = vadd.f32 1.0, %v6862_v58 }
 0x97d   : > { %v6866_v9 = vpop.eup %6865  ;;  %v4635_v30 = vadd.f32 1.0, %v6864_v11  ;;  %6885 = vpow2.f32 %v5896_v25 }
 0x97e   : > { %v6868_v48 = vpop.eup %6867  ;;  %6887 = vpow2.f32 %v5898_v59  ;;  %v4634_v31 = vadd.f32 1.0, %v6866_v9 }
 0x97f   : > { %v8766_v38 = vpop.eup %6869  ;;  %6889 = vpow2.f32 %v5897_v32  ;;  %v4636_v42 = vadd.f32 1.0, %v6868_v48 }
 0x980   : > { %v8772_v36 = vpop.eup %6871  ;;  %6891 = vrcp.f32 %v4633_v43 }
 0x981   : > { %v8776_v47 = vpop.eup %6873  ;;  %6893 = vrcp.f32 %v4635_v30 }
 0x982   : > { %v8783_v26 = vpop.eup %6875  ;;  %6895 = vpow2.f32 %v5899_v53 }
 0x983   : > { %v8788_v2 = vpop.eup %6877  ;;  %6897 = vrcp.f32 %v4634_v31 }
 0x984   : > { %v8795_v39 = vpop.eup %6879  ;;  %6899 = vrcp.f32 %v4636_v42 }
 0x985   : > { %v8798_v1 = vpop.eup %6881 }
 0x986   : > { %v8801_v58 = vpop.eup %6883 }
 0x987   : > { %v6886_v11 = vpop.eup %6885 }
 0x988   : > { %v6888_v43 = vpop.eup %6887  ;;  %v4637_v46 = vadd.f32 1.0, %v6886_v11 }
 0x989   : > { %v6890_v31 = vpop.eup %6889  ;;  %v4639_v51 = vadd.f32 1.0, %v6888_v43 }
 0x98a   : > { %v8768_v37 = vpop.f32.mrb[56].mxu0  ;;  %v8770_v14 = vpop.f32.mrb[104].mxu1  ;;  %v4638_v34 = vadd.f32 1.0, %v6890_v31 }
 0x98b   : > { %v8774_v61 = vpop.f32.mrb[57].mxu0  ;;  %v5900_v54 = vmul.f32 -1.442695, %v8768_v37  ;;  %v8779_v19 = vpop.f32.mrb[105].mxu1  ;;  %v5902_v18 = vmul.f32 -1.442695, %v8770_v14 }
 0x98c   : > { %v8781_v17 = vpop.f32.mrb[58].mxu0  ;;  %v8786_v13 = vpop.f32.mrb[106].mxu1  ;;  %v5901_v21 = vmul.f32 -1.442695, %v8774_v61  ;;  %v5903_v10 = vmul.f32 -1.442695, %v8779_v19 }
 0x98d   : > { %v8791_v45 = vpop.f32.mrb[59].mxu0  ;;  %v8793_v62 = vpop.f32.mrb[107].mxu1  ;;  %6901 = vpow2.f32 %v5900_v54  ;;  %v5904_v57 = vmul.f32 -1.442695, %v8781_v17  ;;  %v5906_v25 = vmul.f32 -1.442695, %v8786_v13 }
 0x98e   : > { %6903 = vpow2.f32 %v5902_v18  ;;  %v5905_v59 = vmul.f32 -1.442695, %v8791_v45  ;;  %v5907_v48 = vmul.f32 -1.442695, %v8793_v62 }
 0x98f   : > { %6905 = vpow2.f32 %v5901_v21  ;;  %v6892_v21 = vpop.eup %6891 }
 0x990   : > { %6907 = vpow2.f32 %v5903_v10  ;;  %v6894_v7 = vpop.eup %6893 }
 0x991   : > { %6909 = vpow2.f32 %v5904_v57  ;;  %v6896_v35 = vpop.eup %6895 }
 0x992   : > { %v8805_v32 = vpop.f32.mrb[60].mxu0  ;;  %v8807_v9 = vpop.f32.mrb[108].mxu1  ;;  %6911 = vpow2.f32 %v5906_v25 }
 0x993   : > { %v8810_v30 = vpop.f32.mrb[61].mxu0  ;;  %v8812_v53 = vpop.f32.mrb[109].mxu1  ;;  %v5908_v42 = vmul.f32 -1.442695, %v8805_v32  ;;  %6913 = vpow2.f32 %v5905_v59  ;;  %v5910_v23 = vmul.f32 -1.442695, %v8807_v9 }
 0x994   : > { %v8815_v54 = vpop.f32.mrb[62].mxu0  ;;  %v8817_v18 = vpop.f32.mrb[110].mxu1  ;;  %6915 = vpow2.f32 %v5907_v48  ;;  %v5909_v25 = vmul.f32 -1.442695, %v8810_v30  ;;  %v5911_v50 = vmul.f32 -1.442695, %v8812_v53 }
 0x995   : > { %v8819_v60 = vpop.f32.mrb[63].mxu0  ;;  %v8821_v10 = vpop.f32.mrb[111].mxu1  ;;  %6917 = vpow2.f32 %v5908_v42  ;;  %v5912_v59 = vmul.f32 -1.442695, %v8815_v54  ;;  %v4640_v48 = vadd.f32 1.0, %v6896_v35 }
 0x996   : > { %v8823_v57 = vpop.eup %6897  ;;  %6919 = vrcp.f32 %v4637_v46 }
 0x997   : > { %v8826_v49 = vpop.eup %6899  ;;  %6921 = vrcp.f32 %v4639_v51  ;;  %v4721_v51 = vmul.f32 %v8766_v38, %v8718_v8  ;;  %v4727_v8 = vmul.f32 %v8795_v39, %v8728_v5 }
 0x998   : > { %v6902_v11 = vpop.eup %6901  ;;  %6923 = vrcp.f32 %v4638_v34  ;;  %v4723_v34 = vmul.f32 %v8772_v36, %v8720_v29  ;;  %v4726_v36 = vmul.f32 %v8798_v1, %v8730_v52 }
 0x999   : > { %v6904_v44 = vpop.eup %6903  ;;  %6925 = vpow2.f32 %v5910_v23  ;;  %v4641_v42 = vadd.f32 1.0, %v6902_v11  ;;  %v4722_v23 = vmul.f32 %v8776_v47, %v8722_v63  ;;  %v4725_v11 = vmul.f32 %v8788_v2, %v8726_v4 }
 0x99a   : > { %v6906_v43 = vpop.eup %6905  ;;  %6927 = vpow2.f32 %v5909_v25  ;;  %v4643_v55 = vadd.f32 1.0, %v6904_v44  ;;  %v4724_v44 = vmul.f32 %v8783_v26, %v8724_v3  ;;  %v4728_v63 = vmul.f32 %v8801_v58, %v8732_v16 }
 0x99b   : > { %v6908_v31 = vpop.eup %6907  ;;  %6929 = vpow2.f32 %v5911_v50  ;;  %v4642_v28 = vadd.f32 1.0, %v6906_v43  ;;  %v4731_v26 = vmul.f32 %v6894_v7, %v8740_v41  ;;  %v5913_v58 = vmul.f32 -1.442695, %v8819_v60 }
 0x99c   : > { %v6910_v6 = vpop.eup %6909  ;;  %6931 = vpow2.f32 %v5912_v59  ;;  %v4644_v22 = vadd.f32 1.0, %v6908_v31 }
 0x99d   : > { %v6912_v46 = vpop.eup %6911  ;;  %6933 = vrcp.f32 %v4640_v48  ;;  %v4645_v50 = vadd.f32 1.0, %v6910_v6  ;;  %v4729_v6 = vmul.f32 %v6892_v21, %v8738_v33 }
 0x99e   : > { %v6914_v20 = vpop.eup %6913  ;;  %6935 = vrcp.f32 %v4641_v42  ;;  %v4647_v29 = vadd.f32 1.0, %v6912_v46 }
 0x99f   : > { %v6916_v35 = vpop.eup %6915  ;;  %6937 = vrcp.f32 %v4643_v55  ;;  %v4646_v3 = vadd.f32 1.0, %v6914_v20  ;;  %v5914_v20 = vmul.f32 -1.442695, %v8817_v18 }
 0x9a0   : > { %v6918_v25 = vpop.eup %6917  ;;  %6939 = vrcp.f32 %v4642_v28  ;;  %v4648_v4 = vadd.f32 1.0, %v6916_v35 }
 0x9a1   : > { %v6920_v38 = vpop.eup %6919  ;;  %6941 = vrcp.f32 %v4644_v22  ;;  %v4649_v39 = vadd.f32 1.0, %v6918_v25 }
 0x9a2   : > { %v6922_v47 = vpop.eup %6921  ;;  %6943 = vrcp.f32 %v4645_v50 }
 0x9a3   : > { %v6924_v55 = vpop.eup %6923  ;;  %6945 = vrcp.f32 %v4647_v29 }
 0x9a4   : > { %v4417_v2 = vpop.f32.mrb[64].mxu0  ;;  %v4490_v5 = vpop.f32.mrb[112].mxu1  ;;  %6947 = vrcp.f32 %v4646_v3 }
 0x9a5   : > { %v4753_v59 = vmul.f32 %v4721_v51, %v4417_v2  ;;  %v8849_v43 = vmul.f32 %v4723_v34, %v4490_v5  ;;  %v4419_v52 = vpop.f32.mrb[65].mxu0  ;;  %v4492_v1 = vpop.f32.mrb[113].mxu1  ;;  %6949 = vrcp.f32 %v4648_v4  ;;  %v5915_v51 = vmul.f32 -1.442695, %v8821_v10  ;;  %v6637_v4 = vld [vmem:[#allocation14 + $0x100] ss:$8 sps:$4 sm:$0xff]  }
 0x9a6   : > { %v6926_v16 = vpop.eup %6925  ;;  %v4754_v28 = vmul.f32 %v4722_v23, %v4419_v52  ;;  %v8852_v33 = vmul.f32 %v4724_v44, %v4492_v1  ;;  %v4421_v7 = vpop.f32.mrb[66].mxu0  ;;  %6951 = vrcp.f32 %v4649_v39  ;;  %v6642_v39 = vld [vmem:[#allocation14 + $0x114] ss:$8 sps:$4 sm:$0xff]   ;;  %v4733_v52 = vmul.f32 %v6920_v38, %v8748_v0 }
 0x9a7   : > { %v4494_v22 = vpop.f32.mrb[114].mxu1  ;;  %v6928_v41 = vpop.eup %6927  ;;  %v4757_v21 = vmul.f32 %v4725_v11, %v4421_v7  ;;  %v4651_v44 = vadd.f32 1.0, %v6926_v16  ;;  %6953 = vpow2.f32 %v5914_v20  ;;  %v4735_v1 = vmul.f32 %v6922_v47, %v8750_v40 }
 0x9a8   : > { %v8855_v48 = vmul.f32 %v4727_v8, %v4494_v22  ;;  %v4423_v31 = vpop.f32.mrb[67].mxu0  ;;  %v4496_v42 = vpop.f32.mrb[115].mxu1  ;;  %v4650_v11 = vadd.f32 1.0, %v6928_v41  ;;  %6955 = vpow2.f32 %v5913_v58  ;;  %v4734_v22 = vmul.f32 %v6924_v55, %v8753_v12 }
 0x9a9   : > { %v6930_v46 = vpop.eup %6929  ;;  %v4758_v34 = vmul.f32 %v4726_v36, %v4423_v31  ;;  %v8858_v35 = vmul.f32 %v4728_v63, %v4496_v42  ;;  %v4785_v50 = vpack.c.bf16 %v4757_v21, %v4753_v59  ;;  %v4730_v36 = vmul.f32 %v8823_v57, %v8743_v27  ;;  %v6640_v21 = vld [vmem:[#allocation14 + $0x110] ss:$8 sps:$4 sm:$0xff]   ;;  %v6645_v42 = vld [vmem:[#allocation14 + $0x124] ss:$8 sps:$4 sm:$0xff]  }
 0x9aa   : > { %v6932_v23 = vpop.eup %6931  ;;  %v4787_v25 = vpack.c.bf16 %v8855_v48, %v8849_v43  ;;  %v4732_v63 = vmul.f32 %v8826_v49, %v8745_v24  ;;  %v4652_v5 = vadd.f32 1.0, %v6930_v46  ;;  %6957 = vpow2.f32 %v5915_v51 }
 0x9ab   : > { %v6934_v29 = vpop.eup %6933  ;;  %v4786_v8 = vpack.c.bf16 %v4758_v34, %v4754_v28  ;;  %v4788_v3 = vpack.c.bf16 %v8858_v35, %v8852_v33  ;;  %v4653_v16 = vadd.f32 1.0, %v6932_v23  ;;  %6959 = vrcp.f32 %v4651_v44  ;;  %v6678_v33 = vld [vmem:[#allocation14 + $0x1d4] ss:$8 sps:$4 sm:$0xff]   ;;  %v6676_v35 = vld [vmem:[#allocation14 + $0x1d0] ss:$8 sps:$4 sm:$0xff]  }
 0x9ac   : > { %v6936_v2 = vpop.eup %6935  ;;  %v4427_v20 = vpop.f32.mrb[68].mxu0  ;;  %v4736_v0 = vmul.f32 %v6934_v29, %v8756_v56  ;;  %6961 = vrcp.f32 %v4650_v11 }
 0x9ad   : > { %v6938_v59 = vpop.eup %6937  ;;  %v4500_v28 = vpop.f32.mrb[116].mxu1  ;;  %5217 = vmatprep.mubr.bf16.mxu0 %v4786_v8  ;;  %v4761_v27 = vmul.f32 %v4729_v6, %v4427_v20  ;;  %6963 = vrcp.f32 %v4652_v5  ;;  %v6643_v8 = vld [vmem:[#allocation14 + $0x120] ss:$8 sps:$4 sm:$0xff]   ;;  %v6648_v5 = vld [vmem:[#allocation14 + $0x134] ss:$8 sps:$4 sm:$0xff]  }
 0x9ae   : > { %v6940_v7 = vpop.eup %6939  ;;  %v8871_v57 = vmul.f32 %v4731_v26, %v4500_v28  ;;  %v4429_v49 = vpop.f32.mrb[69].mxu0  ;;  %5218 = vmatmul.mubr.bf16.vlgmr.msra.gmra.mrb[80].mxu0 %v4785_v50  ;;  %6965 = vrcp.f32 %v4653_v16 }
 0x9af   : > { %v4502_v24 = vpop.f32.mrb[117].mxu1  ;;  %v6942_v41 = vpop.eup %6941  ;;  %v4762_v40 = vmul.f32 %v4730_v36, %v4429_v49  ;;  %5259 = vmatpush1.bf16.msra.mxu0 %v6637_v4  ;;  %v4737_v36 = vmul.f32 %v6936_v2, %v8768_v37 }
 0x9b0   : > { %v8874_v38 = vmul.f32 %v4732_v63, %v4502_v24  ;;  %v4431_v47 = vpop.f32.mrb[70].mxu0  ;;  %v4504_v58 = vpop.f32.mrb[118].mxu1  ;;  %5260 = vmatprep.subr.bf16.mxu0 %v6642_v39  ;;  %v4739_v63 = vmul.f32 %v6938_v59, %v8770_v14 }
 0x9b1   : > { %v6944_v31 = vpop.eup %6943  ;;  %v4765_v12 = vmul.f32 %v4733_v52, %v4431_v47  ;;  %v8876_v6 = vmul.f32 %v4735_v1, %v4504_v58  ;;  %v4433_v26 = vpop.f32.mrb[71].mxu0  ;;  %v4738_v52 = vmul.f32 %v6940_v7, %v8774_v61  ;;  %v4740_v1 = vmul.f32 %v6942_v41, %v8779_v19 }
 0x9b2   : > { %v4506_v55 = vpop.f32.mrb[119].mxu1  ;;  %v6946_v46 = vpop.eup %6945  ;;  %v4766_v56 = vmul.f32 %v4734_v22, %v4433_v26  ;;  %v4741_v16 = vmul.f32 %v6944_v31, %v8781_v17  ;;  %v6651_v26 = vld [vmem:[#allocation14 + $0x144] ss:$8 sps:$4 sm:$0xff]  }
 0x9b3   : > { %v8878_v51 = vmul.f32 %v4736_v0, %v4506_v55  ;;  %v6948_v34 = vpop.eup %6947  ;;  %v4789_v23 = vpack.c.bf16 %v4765_v12, %v4761_v27  ;;  %v4791_v44 = vpack.c.bf16 %v8876_v6, %v8871_v57  ;;  %5261 = vmatpush1.bf16.msra.mxu0 %v6640_v21  ;;  %v4743_v20 = vmul.f32 %v6946_v46, %v8786_v13 }
 0x9b4   : > { %v6950_v50 = vpop.eup %6949  ;;  %v4790_v29 = vpack.c.bf16 %v4766_v56, %v4762_v40  ;;  %5262 = vmatprep.subr.bf16.mxu0 %v6645_v42  ;;  %v4437_v28 = vpop.f32.mrb[72].mxu0  ;;  %v4742_v49 = vmul.f32 %v6948_v34, %v8791_v45  ;;  %v6646_v40 = vld [vmem:[#allocation14 + $0x130] ss:$8 sps:$4 sm:$0xff]  }
 0x9b5   : > { %v4792_v11 = vpack.c.bf16 %v8878_v51, %v8874_v38  ;;  %v6952_v4 = vpop.eup %6951  ;;  %v4510_v22 = vpop.f32.mrb[120].mxu1  ;;  %v4769_v2 = vmul.f32 %v4737_v36, %v4437_v28  ;;  %v4744_v19 = vmul.f32 %v6950_v50, %v8793_v62  ;;  %v9145_v38 = vld [vmem:[#allocation27_spill] sm:$0xff] }
 0x9b6   : > { %v6954_v39 = vpop.eup %6953  ;;  %5227 = vmatprep.mubr.bf16.mxu0 %v4790_v29  ;;  %v8891_v14 = vmul.f32 %v4739_v63, %v4510_v22  ;;  %v4439_v59 = vpop.f32.mrb[73].mxu0  ;;  %v4745_v36 = vmul.f32 %v6952_v4, %v8805_v32 }
 0x9b7   : > { %v6956_v27 = vpop.eup %6955  ;;  %v4655_v37 = vadd.f32 1.0, %v6954_v39  ;;  %v4512_v24 = vpop.f32.mrb[121].mxu1  ;;  %5228 = vmatmul.mubr.bf16.gmra.mrb[84].mxu0 %v4789_v23  ;;  %v4770_v17 = vmul.f32 %v4738_v52, %v4439_v59 }
 0x9b8   : > { %v6958_v61 = vpop.eup %6957  ;;  %v4654_v7 = vadd.f32 1.0, %v6956_v27  ;;  %v8894_v41 = vmul.f32 %v4740_v1, %v4512_v24  ;;  %5263 = vmatpush1.bf16.msra.mxu0 %v6643_v8  ;;  %v4441_v13 = vpop.f32.mrb[74].mxu0  ;;  %v6649_v8 = vld [vmem:[#allocation14 + $0x140] ss:$8 sps:$4 sm:$0xff]   ;;  %v6657_v24 = vld [vmem:[#allocation14 + $0x164] ss:$8 sps:$4 sm:$0xff]  }
 0x9b9   : > { %v4514_v0 = vpop.f32.mrb[122].mxu1  ;;  %v6960_v47 = vpop.eup %6959  ;;  %6967 = vrcp.f32 %v4655_v37  ;;  %v4656_v45 = vadd.f32 1.0, %v6958_v61  ;;  %v4773_v58 = vmul.f32 %v4741_v16, %v4441_v13  ;;  %5264 = vmatprep.subr.bf16.mxu0 %v6648_v5  ;;  %v6654_v5 = vld [vmem:[#allocation14 + $0x154] ss:$8 sps:$4 sm:$0xff]  }
 0x9ba   : > { %v8896_v21 = vmul.f32 %v4743_v20, %v4514_v0  ;;  %v4443_v31 = vpop.f32.mrb[75].mxu0  ;;  %v4516_v12 = vpop.f32.mrb[123].mxu1  ;;  %6969 = vrcp.f32 %v4654_v7  ;;  %v4747_v63 = vmul.f32 %v6960_v47, %v8807_v9 }
 0x9bb   : > { %v6962_v55 = vpop.eup %6961  ;;  %v4774_v62 = vmul.f32 %v4742_v49, %v4443_v31  ;;  %v8898_v42 = vmul.f32 %v4744_v19, %v4516_v12  ;;  %6971 = vrcp.f32 %v4656_v45  ;;  %v4793_v56 = vpack.c.bf16 %v4773_v58, %v4769_v2 }
 0x9bc   : > { %v6964_v46 = vpop.eup %6963  ;;  %v4795_v34 = vpack.c.bf16 %v8896_v21, %v8891_v14  ;;  %5265 = vmatpush1.bf16.msra.mxu0 %v6646_v40  ;;  %v4746_v39 = vmul.f32 %v6962_v55, %v8810_v30  ;;  %v4447_v1 = vpop.f32.mrb[76].mxu0  ;;  %v6652_v30 = vld [vmem:[#allocation14 + $0x150] ss:$8 sps:$4 sm:$0xff]   ;;  %v6660_v40 = vld [vmem:[#allocation14 + $0x174] ss:$8 sps:$4 sm:$0xff]  }
 0x9bd   : > { %v6966_v23 = vpop.eup %6965  ;;  %v4794_v50 = vpack.c.bf16 %v4774_v62, %v4770_v17  ;;  %v4796_v29 = vpack.c.bf16 %v8898_v42, %v8894_v41  ;;  %5266 = vmatprep.subr.bf16.mxu0 %v6651_v26  ;;  %v4748_v52 = vmul.f32 %v6964_v46, %v8812_v53  ;;  %v4520_v16 = vpop.f32.mrb[124].mxu1  ;;  %v4777_v28 = vmul.f32 %v4745_v36, %v4447_v1  ;;  %v6655_v17 = vld [vmem:[#allocation14 + $0x160] ss:$8 sps:$4 sm:$0xff]   ;;  %v6658_v55 = vld [vmem:[#allocation14 + $0x170] ss:$8 sps:$4 sm:$0xff]  }
 0x9be   : > { %v4749_v20 = vmul.f32 %v6966_v23, %v8815_v54  ;;  %v8909_v22 = vmul.f32 %v4747_v63, %v4520_v16  ;;  %v4449_v27 = vpop.f32.mrb[77].mxu0  ;;  %v4522_v49 = vpop.f32.mrb[125].mxu1  ;;  %v6663_v62 = vld [vmem:[#allocation14 + $0x184] ss:$8 sps:$4 sm:$0xff]   ;;  %v6664_v46 = vld [vmem:[#allocation14 + $0x190] ss:$8 sps:$4 sm:$0xff]  }
 0x9bf   : > { %5237 = vmatprep.mubr.bf16.mxu0 %v4794_v50  ;;  %v4778_v32 = vmul.f32 %v4746_v39, %v4449_v27  ;;  %v8911_v4 = vmul.f32 %v4748_v52, %v4522_v49  ;;  %v4451_v9 = vpop.f32.mrb[78].mxu0  ;;  %v4524_v37 = vpop.f32.mrb[126].mxu1  ;;  %v6667_v23 = vld [vmem:[#allocation14 + $0x1a0] ss:$8 sps:$4 sm:$0xff]   ;;  %v6672_v50 = vld [vmem:[#allocation14 + $0x1b4] ss:$8 sps:$4 sm:$0xff]  }
 0x9c0   : > { %5238 = vmatmul.mubr.bf16.gmra.mrb[88].mxu0 %v4793_v56  ;;  %v4781_v2 = vmul.f32 %v4749_v20, %v4451_v9  ;;  %v4453_v53 = vpop.f32.mrb[79].mxu0  ;;  %v4526_v59 = vpop.f32.mrb[127].mxu1  ;;  %v6669_v56 = vld [vmem:[#allocation14 + $0x1a4] ss:$8 sps:$4 sm:$0xff]   ;;  %v6673_v63 = vld [vmem:[#allocation14 + $0x1c0] ss:$8 sps:$4 sm:$0xff]  }
 0x9c1   : > { %5267 = vmatpush1.bf16.msra.mxu0 %v6649_v8  ;;  %v6670_v8 = vld [vmem:[#allocation14 + $0x1b0] ss:$8 sps:$4 sm:$0xff]   ;;  %v6675_v36 = vld [vmem:[#allocation14 + $0x1c4] ss:$8 sps:$4 sm:$0xff]   ;;  %v6684_v39 = vld [vmem:[#allocation14 + $0x1f4] ss:$8 sps:$4 sm:$0xff]  }
 0x9c2   : > { %5268 = vmatprep.subr.bf16.mxu0 %v6654_v5  ;;  %v4797_v54 = vpack.c.bf16 %v4781_v2, %v4777_v28  ;;  %v6679_v5 = vld [vmem:[#allocation14 + $0x1e0] ss:$8 sps:$4 sm:$0xff]   ;;  %v6682_v52 = vld [vmem:[#allocation14 + $0x1f0] ss:$8 sps:$4 sm:$0xff]  }
 0x9c3   : > { %v6968_v61 = vpop.eup %6967  ;;  %v9146_v1 = vld [vmem:[#allocation28_spill] sm:$0xff]  ;;  %v9147_v16 = vld [vmem:[#allocation29_spill] sm:$0xff]  ;;  %v9148_v21 = vld [vmem:[#allocation30_spill] sm:$0xff] }
 0x9c4   : > { %v6970_v19 = vpop.eup %6969  ;;  %v4751_v7 = vmul.f32 %v6968_v61, %v8817_v18  ;;  %v9152_v2 = vld [vmem:[#allocation34_spill] sm:$0xff] }
 0x9c5   : > { %5269 = vmatpush1.bf16.msra.mxu0 %v6652_v30  ;;  %v6972_v13 = vpop.eup %6971  ;;  %v4750_v0 = vmul.f32 %v6970_v19, %v8819_v60  ;;  %v6661_v60 = vld [vmem:[#allocation14 + $0x180] ss:$8 sps:$4 sm:$0xff]  }
 0x9c6   : > { %5270 = vmatprep.subr.bf16.mxu0 %v6657_v24  ;;  %v4752_v47 = vmul.f32 %v6972_v13, %v8821_v10  ;;  %v4783_v45 = vmul.f32 %v4751_v7, %v4524_v37  ;;  %v6666_v10 = vld [vmem:[#allocation14 + $0x194] ss:$8 sps:$4 sm:$0xff]   ;;  %v9153_v24 = vld [vmem:[#allocation35_spill] sm:$0xff]  ;;  %v9154_v19 = vld [vmem:[#allocation36_spill] sm:$0xff] }
 0x9c7   : > { %v4782_v58 = vmul.f32 %v4750_v0, %v4453_v53  ;;  %v9155_v0 = vld [vmem:[#allocation37_spill] sm:$0xff] }
 0x9c8   : > { %v4799_v31 = vpack.c.bf16 %v4783_v45, %v8909_v22  ;;  %v4784_v12 = vmul.f32 %v4752_v47, %v4526_v59  ;;  %v9150_v22 = vld [vmem:[#allocation32_spill] sm:$0xff] }
 0x9c9   : > { %5271 = vmatpush1.bf16.msra.mxu0 %v6655_v17  ;;  %v4798_v26 = vpack.c.bf16 %v4782_v58, %v4778_v32  ;;  %v9156_v58 = vld [vmem:[#allocation38_spill] sm:$0xff] }
 0x9ca   : > { %5272 = vmatprep.subr.bf16.mxu0 %v6660_v40  ;;  %v4800_v18 = vpack.c.bf16 %v4784_v12, %v8911_v4  ;;  %v9151_v4 = vld [vmem:[#allocation33_spill] sm:$0xff] }
 0x9cb   : > { %5247 = vmatprep.mubr.bf16.mxu0 %v4798_v26  ;;  %v9157_v26 = vld [vmem:[#allocation39_spill] sm:$0xff] }
 0x9cc   : > { %5248 = vmatmul.mubr.bf16.gmra.mrb[92].mxu0 %v4797_v54 }
 0x9cd   : > { %5290 = vmatprep.mubr.bf16.mxu0 %v4788_v3  ;;  %5273 = vmatpush1.bf16.msra.mxu0 %v6658_v55  ;;  %v6681_v3 = vld [vmem:[#allocation14 + $0x1e4] ss:$8 sps:$4 sm:$0xff]  }
 0x9ce   : > { %5274 = vmatprep.subr.bf16.mxu0 %v6663_v62  ;;  %v9158_v62 = vld [vmem:[#allocation23_spill] sm:$0xff] }
 0x9d1   : > { %5275 = vmatpush1.bf16.msra.mxu0 %v6661_v60 }
 0x9d2   : > { %5276 = vmatprep.subr.bf16.mxu0 %v6666_v10 }
 0x9d5   : > { %5277 = vmatpush1.bf16.msra.mxu0 %v6664_v46 }
 0x9d6   : > { %5278 = vmatprep.subr.bf16.mxu0 %v6669_v56  ;;  %v9159_v56 = vld [vmem:[#allocation24_spill] sm:$0xff] }
 0x9d9   : > { %5279 = vmatpush1.bf16.msra.mxu0 %v6667_v23 }
 0x9da   : > { %5280 = vmatprep.subr.bf16.mxu0 %v6672_v50 }
 0x9dd   : > { %5281 = vmatpush1.bf16.msra.mxu0 %v6670_v8 }
 0x9de   : > { %5282 = vmatprep.subr.bf16.mxu0 %v6675_v36 }
 0x9e1   : > { %5283 = vmatpush1.bf16.msra.mxu0 %v6673_v63 }
 0x9e2   : > { %5284 = vmatprep.subr.bf16.mxu0 %v6678_v33 }
 0x9e5   : > { %5285 = vmatpush1.bf16.msra.mxu0 %v6676_v35 }
 0x9e6   : > { %5286 = vmatprep.subr.bf16.mxu0 %v6681_v3 }
 0x9e9   : > { %5287 = vmatpush1.bf16.msra.mxu0 %v6679_v5 }
 0x9ea   : > { %5288 = vmatprep.subr.bf16.mxu0 %v6684_v39 }
 0x9ed   : > { %5289 = vmatpush1.bf16.msra.mxu0 %v6682_v52 }
 0x9f0   : > { %5291 = vmatmul.mubr.bf16.vlgmr.msra.gmra.mrb[80].mxu0 %v4787_v25 }
 0x9f1   : > { %5300 = vmatprep.mubr.bf16.mxu0 %v4792_v11 }
 0x9f8   : > { %5301 = vmatmul.mubr.bf16.gmra.mrb[84].mxu0 %v4791_v44 }
 0x9f9   : > { %5310 = vmatprep.mubr.bf16.mxu0 %v4796_v29  ;;  %v9149_v29 = vld [vmem:[#allocation31_spill] sm:$0xff] }
 0xa00   : > { %5311 = vmatmul.mubr.bf16.gmra.mrb[88].mxu0 %v4795_v34 }
 0xa01   : > { %5320 = vmatprep.mubr.bf16.mxu0 %v4800_v18 }
 0xa08   : > { %5321 = vmatmul.mubr.bf16.gmra.mrb[92].mxu0 %v4799_v31 }
 0xac3   : > { %v5292_v43 = vpop.f32.mrb[80].mxu0 }
 0xac4   : > { %v5331_v48 = vadd.f32 %v5292_v43, %v8525_v15  ;;  %v5294_v25 = vpop.f32.mrb[81].mxu0 }
 0xac5   : > { %v5332_v51 = vadd.f32 %v5294_v25, %v9145_v38  ;;  %v5296_v11 = vpop.f32.mrb[82].mxu0 }
 0xac6   : > { %v5333_v57 = vadd.f32 %v5296_v11, %v9146_v1  ;;  %v5298_v6 = vpop.f32.mrb[83].mxu0 }
 0xac7   : > { %v5994_v44 = vpack.c.bf16 %v5332_v51, %v5331_v48  ;;  %v5334_v41 = vadd.f32 %v5298_v6, %v9147_v16 }
 0xac9   : > { %5395 = vst [vmem:[%s8942_s12] sm:$0xff] %v5994_v44  ;;  %v5995_v14 = vpack.c.bf16 %v5334_v41, %v5333_v57 }
 0xacb   : > { %5396 = vst [vmem:[%s8942_s12 + $0x8] sm:$0xff] %v5995_v14  ;;  %v5302_v15 = vpop.f32.mrb[84].mxu0 }
 0xacc   : > { %v5335_v42 = vadd.f32 %v5302_v15, %v9148_v21  ;;  %v5304_v34 = vpop.f32.mrb[85].mxu0 }
 0xacd   : > { %v5336_v20 = vadd.f32 %v5304_v34, %v9149_v29  ;;  %v5306_v28 = vpop.f32.mrb[86].mxu0 }
 0xace   : > { %v5337_v27 = vadd.f32 %v5306_v28, %v9150_v22  ;;  %v5308_v49 = vpop.f32.mrb[87].mxu0 }
 0xacf   : > { %v5996_v32 = vpack.c.bf16 %v5336_v20, %v5335_v42  ;;  %v5338_v9 = vadd.f32 %v5308_v49, %v9151_v4 }
 0xad1   : > { %5397 = vst [vmem:[%s8942_s12 + $0x10] sm:$0xff] %v5996_v32  ;;  %v5997_v37 = vpack.c.bf16 %v5338_v9, %v5337_v27 }
 0xad3   : > { %5398 = vst [vmem:[%s8942_s12 + $0x18] sm:$0xff] %v5997_v37  ;;  %v5312_v30 = vpop.f32.mrb[88].mxu0 }
 0xad4   : > { %v5339_v53 = vadd.f32 %v5312_v30, %v9152_v2  ;;  %v5314_v59 = vpop.f32.mrb[89].mxu0 }
 0xad5   : > { %v5340_v61 = vadd.f32 %v5314_v59, %v9153_v24  ;;  %v5316_v54 = vpop.f32.mrb[90].mxu0 }
 0xad6   : > { %v5341_v7 = vadd.f32 %v5316_v54, %v9154_v19  ;;  %v5318_v17 = vpop.f32.mrb[91].mxu0 }
 0xad7   : > { %v5998_v13 = vpack.c.bf16 %v5340_v61, %v5339_v53  ;;  %v5342_v40 = vadd.f32 %v5318_v17, %v9155_v0 }
 0xad9   : > { %5399 = vst [vmem:[%s8942_s12 + $0x20] sm:$0xff] %v5998_v13  ;;  %v5999_v47 = vpack.c.bf16 %v5342_v40, %v5341_v7 }
 0xadb   : > { %5400 = vst [vmem:[%s8942_s12 + $0x28] sm:$0xff] %v5999_v47  ;;  %v5322_v45 = vpop.f32.mrb[92].mxu0 }
 0xadc   : > { %v5343_v31 = vadd.f32 %v5322_v45, %v9156_v58  ;;  %v5324_v12 = vpop.f32.mrb[93].mxu0 }
 0xadd   : > { %v5344_v55 = vadd.f32 %v5324_v12, %v9157_v26  ;;  %v5326_v18 = vpop.f32.mrb[94].mxu0 }
 0xade   : > { %v5345_v60 = vadd.f32 %v5326_v18, %v9158_v62  ;;  %v5328_v10 = vpop.f32.mrb[95].mxu0 }
 0xadf   : > { %v6000_v46 = vpack.c.bf16 %v5344_v55, %v5343_v31  ;;  %v5346_v23 = vadd.f32 %v5328_v10, %v9159_v56 }
 0xae1   : > { %5401 = vst [vmem:[%s8942_s12 + $0x30] sm:$0xff] %v6000_v46  ;;  %v6001_v50 = vpack.c.bf16 %v5346_v23, %v5345_v60 }
 0xae3   : > { %5402 = vst [vmem:[%s8942_s12 + $0x38] sm:$0xff] %v6001_v50 }
 0xae4   : > { %7212 = shalt.err (!%p7209_p9)
}
 0xae5   : > { %s7213_s22 = scalar_lea.hbm %s8969_s7, 1024  ;;  %s7217_s12 = scalar_lea.hbm %s9160_s17, 2048 }
 0xae6   : > { %p7214_p4 = scmp.ne.s32.totalorder %s8969_s7, %s7213_s22  ;;  %p7218_p5 = scmp.lt.u32.totalorder %s8969_s7, %s9160_s17 }
 0xae7   : > { %p7219_p2 = scmp.lt.u32.totalorder %s7217_s12, %s7213_s22  ;;  %p7221_p10 = scmp.lt.u32.totalorder %s7213_s22, %s8969_s7 }
 0xae8   : > { %p7215_p3 = pnand %p7214_p4, %p9161_p1 }
 0xae9   : > { %p7220_p7 = por %p7219_p2, %p7218_p5 }
 0xaea   : > { %p7216_p0 = pneg %p7215_p3 }
 0xaeb   : > { %p7222_p11 = por %p7221_p10, %p7220_p7 }
 0xaed   : > { %p7223_p12 = pnand %p7222_p11, %p7216_p0 }
 0xaef   : > { %7226 = shalt.err (!%p7223_p12)
}
 0xaf0   : > { %s7303_s24 = smov 128   ;;  %s7304_s23 = smov 8  }
 0xaf1   : > { %6241 = dma.vmem_to_hbm [thread:$0]  (%p9161_p1), %s8963_s25, 1024, %s8969_s7, %s5404_s19, %s7303_s24, %s7303_s24, %s7304_s23  }
 0xaf2 PF: > { %s5432_s2 = sand.u32 1, %s7269_s13   ;;  %p9162_p13 = scmp.ne.s32.totalorder %s9075_s10, 0 }
 0xaf3   : > { %p9163_p8 = scmp.ge.s32.totalorder %s7281_s16, 2  ;;  %s5433_s20 = scalar_lea.sflag [#allocation4], %s5432_s2 }
 0xaf5   : > { %p6270_p6 = pnand %p9163_p8, %p9162_p13 }
 0xaf7   : > { %7264 = dma.done.wait (!%p6270_p6), %s5433_s20, 1024  }
 0xaf8   : > { %7266 = vsyncadd (!%p6270_p6), %s5433_s20, 4294966272  ;;  %p27_p9 = scmp.ge.s32.totalorder %s7569_s11, 4   ;;  %s9164_s13 = smov %s7273_s14 }
 0xaf9   : > { %s9165_s14 = smov %s7277_s15  ;;  %s9166_s15 = smov %s7581_s21 }
 0xafa   : > { %s9167_s16 = smov %s7569_s11  ;;  %29 = sbr.rel (!%p27_p9) target bundleno = 14 (0xe), region = 133 }
 0xb01   :  { %5438 = vsyncpa [#allocation3], 1 }
 0xb02   :  { %5440 = vsyncpa [#allocation3 + $0x1], 1 }
 0xb03   :  { %5441 = vsyncpa [#allocation6], 1 }
 0xb04   :  { %5442 = vsyncpa [#allocation9], 1 }
 0xb05   :  { %5443 = vsyncpa [#allocation12], 1 }
 0xb06   :  { %5444 = vsyncpa [#allocation15], 1 }
 0xb07   :  { %5445 = vsyncpa [#allocation4], 1 }
 0xb08   :  { %5447 = vsyncpa [#allocation4 + $0x1], 1 }

</bundles_post_ra>
